<compile_context>
chip_gen: v7x
topology: tpu7x:2x2x1
jax: 0.10.0
libtpu: 0.0.40
codegen_flags: <defaults>
</compile_context>

<pallas_src>
import numpy as np
import jax
import jax.numpy as jnp
from jax.experimental import pallas as pl
from jax.experimental.pallas import tpu as pltpu

FPN_DIM = 32               # cfg.FPN.DIM (small synthetic value)
NUM_STAGES = 4             # num_backbone_stages (FPN levels 2..5)
DIMS = [64, 48, 32, 16]    # fpn_level_info.dims, reversed order: [C5, C4, C3, C2]


def _rp(r):
    """Pad a flattened spatial extent up to a full lane multiple (>= 128)."""
    return max(128, ((r + 127) // 128) * 128)


# ---------------------------------------------------------------- fused Pallas kernel

def _make_fpn_kernel(hw):
    """hw: {level: (H, W)} for levels 2..5.  Returns the fused kernel body."""
    f32, bf16 = jnp.float32, jnp.bfloat16
    geom = {lvl: (h, w, h * w, _rp(h * w)) for lvl, (h, w) in hw.items()}

    def conv3x3(x, w_ref, b_ref, lvl):
        """Pad-1 3x3 conv on a channel-major (C, RP) map, fully in vregs.

        Taps = static lane shifts (XLU rotate, what pltpu.roll(axis=-1) would do, written
        as slices of a doubled buffer for unambiguous shift direction) * boundary mask;
        then one 288-deep MXU dot against the (Cout, 9*Cin) weight.
        """
        h, w, _, rp = geom[lvl]
        lw = w.bit_length() - 1                      # W is a power of two
        xb = x.astype(bf16)
        x2 = jnp.concatenate([xb, xb], axis=1)       # (C, 2*RP)
        lane = jax.lax.broadcasted_iota(jnp.int32, (1, rp), 1)
        yy = jnp.right_shift(lane, lw)               # lane // W
        xx = jnp.bitwise_and(lane, w - 1)            # lane %  W
        taps = []
        for dy in (-1, 0, 1):
            for dx in (-1, 0, 1):
                s = (dy * w + dx) % rp
                shifted = x2[:, s:s + rp]            # == x[:, (p + dy*W + dx) mod RP]
                ok = ((yy + dy >= 0) & (yy + dy < h) &
                      (xx + dx >= 0) & (xx + dx < w))
                taps.append(jnp.where(ok, shifted, jnp.zeros_like(shifted)))
        patches = jnp.concatenate(taps, axis=0)      # (9*C, RP) im2col block
        return jnp.dot(w_ref[...], patches, preferred_element_type=f32) + b_ref[...]

    def kernel(xp5_ref, xp4_ref, xp3_ref, xp2_ref,
               wb5_ref, wb4_ref, wb3_ref, wb2_ref,
               wt_ref, bt_ref,
               wl4_ref, bl4_ref, wl3_ref, bl3_ref, wl2_ref, bl2_ref,
               u54_ref, u43_ref, u32_ref,
               wp5_ref, bp5_ref, wp4_ref, bp4_ref,
               wp3_ref, bp3_ref, wp2_ref, bp2_ref,
               o6_ref, o5_ref, o4_ref, o3_ref, o2_ref):

        def mm(w_ref, x):                            # (Co,Ci)bf16 @ (Ci,L)bf16, f32 acc
            return jnp.dot(w_ref[...], x.astype(bf16), preferred_element_type=f32)

        # ---- level 5 (coarsest): backbone projection, conv_top, P5, P6 ----
        h5, w5, r5, _ = geom[5]
        res5 = mm(wb5_ref, xp5_ref[0])
        inner5 = mm(wt_ref, res5) + bt_ref[...]
        p5 = conv3x3(inner5, wp5_ref, bp5_ref, 5)
        o5_ref[0] = p5[:, :r5]
        # P6 = MaxPool(kernel=1, stride=2)(P5): stride-2 spatial subsample (lane select)
        cols = [(2 * y) * w5 + 2 * x
                for y in range((h5 + 1) // 2) for x in range((w5 + 1) // 2)]
        o6_ref[0] = jnp.concatenate([p5[:, c:c + 1] for c in cols], axis=1)

        # ---- levels 4, 3, 2: lateral 1x1 + nearest-2x top-down add, posthoc 3x3 ----
        top = inner5
        for lvl, xp_ref, wb_ref, wl_ref, bl_ref, u_ref, wp_ref, bp_ref, o_ref in (
                (4, xp4_ref, wb4_ref, wl4_ref, bl4_ref, u54_ref, wp4_ref, bp4_ref, o4_ref),
                (3, xp3_ref, wb3_ref, wl3_ref, bl3_ref, u43_ref, wp3_ref, bp3_ref, o3_ref),
                (2, xp2_ref, wb2_ref, wl2_ref, bl2_ref, u32_ref, wp2_ref, bp2_ref, o2_ref)):
            r = geom[lvl][2]
            res = mm(wb_ref, xp_ref[0])
            lat = mm(wl_ref, res) + bl_ref[...]
            # nearest-2x upsample of the bf16 top feature: exact 0/1 selection in a single
            # bf16 MXU pass (no HIGHEST multi-pass), tiny matrix.
            td = jnp.dot(top.astype(bf16), u_ref[...], preferred_element_type=f32)
            inner = lat + td
            o_ref[0] = conv3x3(inner, wp_ref, bp_ref, lvl)[:, :r]
            top = inner

    return kernel


# ---------------------------------------------------------------- host-side helpers

def _upsample_mat_cm(hs, ws):
    """Nearest-2x upsample of an (hs, ws) map as a 0/1 matrix acting on the lane
    (flattened-spatial) axis of a channel-major feature map, with lane padding."""
    rs, rd = hs * ws, (2 * hs) * (2 * ws)
    u = np.zeros((_rp(rs), _rp(rd)), np.float32)
    wd = 2 * ws
    for q in range(rd):
        qr, qc = q // wd, q % wd
        u[(qr // 2) * ws + (qc // 2), q] = 1.0
    return u


def _pool_pyramid(x_nchw):
    """Synthetic-backbone pooling glue: 2^k average pool of the input for levels 2..5,
    flattened channel-major, lane-padded, bf16 (exactly what the kernel consumes)."""
    n, c, h, w = x_nchw.shape
    xps, hw = {}, {}
    for lvl in (2, 3, 4, 5):
        f = 1 << lvl
        hk, wk = h // f, w // f
        p = x_nchw.reshape(n, c, hk, f, wk, f).mean(axis=(3, 5))
        r = hk * wk
        flat = p.reshape(n, c, r)
        pad = _rp(r) - r
        if pad:
            flat = jnp.pad(flat, ((0, 0), (0, 0), (0, pad)))
        xps[lvl] = flat.astype(jnp.bfloat16)
        hw[lvl] = (hk, wk)
    return xps, hw


def _composite_backbone_weights(params):
    """Fold the chained synthetic-backbone 1x1 convs (zero bias) into one composite
    (C_k, 3) projection per level (1x1 conv commutes with average pooling), so the whole
    backbone runs inside the fused kernel with no per-stage launches / HBM round trips."""
    comp, acc = {}, None
    for i in range(1, 6):
        w, _ = params["res%d" % i]           # torch-layout (Cout, Cin)
        acc = w if acc is None else w @ acc
        if i >= 2:
            comp[i] = acc                    # FPN level i consumes res_i
    return comp


# ---------------------------------------------------------------- wrapper

def fpn_fused(xps, hw, comp, params):
    """Whole FPN (backbone projections + top-down path + posthoc convs + P6) in ONE
    pallas_call.  grid=(batch,), one image per step, channel-major (N, 32, HW) outputs."""
    n = xps[2].shape[0]
    bf = lambda a: jnp.asarray(a, jnp.bfloat16)
    col = lambda b: jnp.asarray(b, jnp.float32).reshape(-1, 1)

    def w9(w):   # torch (Cout, Cin, 3, 3) -> (Cout, 9*Cin), tap d = (dy+1)*3 + (dx+1)
        co, ci = w.shape[0], w.shape[1]
        return jnp.transpose(w, (0, 2, 3, 1)).reshape(co, 9 * ci)

    wt, bt = params["conv_top"]
    lats = [params["lateral%d" % i] for i in range(NUM_STAGES - 1)]   # levels 4, 3, 2
    posts = [params["posthoc%d" % i] for i in range(NUM_STAGES)]      # levels 5, 4, 3, 2

    inputs = [
        xps[5], xps[4], xps[3], xps[2],
        bf(comp[5]), bf(comp[4]), bf(comp[3]), bf(comp[2]),
        bf(wt), col(bt),
        bf(lats[0][0]), col(lats[0][1]),
        bf(lats[1][0]), col(lats[1][1]),
        bf(lats[2][0]), col(lats[2][1]),
        bf(_upsample_mat_cm(*hw[5])),
        bf(_upsample_mat_cm(*hw[4])),
        bf(_upsample_mat_cm(*hw[3])),
        bf(w9(posts[0][0])), col(posts[0][1]),
        bf(w9(posts[1][0])), col(posts[1][1]),
        bf(w9(posts[2][0])), col(posts[2][1]),
        bf(w9(posts[3][0])), col(posts[3][1]),
    ]

    def img_spec(a):
        return pl.BlockSpec((1,) + a.shape[1:], lambda i: (i, 0, 0))

    def shared_spec(a):
        return pl.BlockSpec(a.shape, lambda i: (0, 0))

    in_specs = [img_spec(a) for a in inputs[:4]] + [shared_spec(a) for a in inputs[4:]]

    h5, w5 = hw[5]
    out_r = [((h5 + 1) // 2) * ((w5 + 1) // 2)] + [hw[l][0] * hw[l][1] for l in (5, 4, 3, 2)]
    out_shape = tuple(jax.ShapeDtypeStruct((n, FPN_DIM, r), jnp.float32) for r in out_r)
    out_specs = tuple(pl.BlockSpec((1, FPN_DIM, r), lambda i: (i, 0, 0)) for r in out_r)

    outs = pl.pallas_call(
        _make_fpn_kernel(hw),
        out_shape=out_shape,
        grid=(n,),
        in_specs=in_specs,
        out_specs=out_specs,
        # batch axis shared across TensorCores (v7x megacore).  With batch=1 a second
        # parallel axis splitting P2 rows would be added; not needed at batch=2.
        compiler_params=pltpu.CompilerParams(dimension_semantics=("parallel",)),
    )(*inputs)
    return list(outs)


# ---------------------------------------------------------------- FPN forward

def fpn_forward(x_nchw, params):
    # TODO(synk): conv_body is an external backbone in the PyTorch module; replaced by a
    # deterministic synthetic backbone (2x2 avg-pool chain + chained 1x1 projections,
    # algebraically folded into one composite 1x1 per level so it fuses into the kernel).
    xps, hw = _pool_pyramid(x_nchw)
    comp = _composite_backbone_weights(params)
    outs = fpn_fused(xps, hw, comp, params)           # [(N,32,R)] for [P6,P5,P4,P3,P2]
    n = x_nchw.shape[0]
    h5, w5 = hw[5]
    shapes = [((h5 + 1) // 2, (w5 + 1) // 2)] + [hw[l] for l in (5, 4, 3, 2)]
    # Outputs are already channel-major (NCHW-flat): the reshape below is free metadata.
    return [o.reshape(n, FPN_DIM, h, w) for o, (h, w) in zip(outs, shapes)]


# ---------------------------------------------------------------- params

def init_params(key):
    def xavier(k, cout, cin, ksz):   # Caffe2 XavierFill: U(-sqrt(3/fan_in), +)
        fan_in = cin * ksz * ksz
        bound = (3.0 / fan_in) ** 0.5
        return jax.random.uniform(k, (cout, cin, ksz, ksz), jnp.float32, -bound, bound)

    keys = jax.random.split(key, 16)
    ki = 0
    params = {}
    body = [(8, 3), (DIMS[3], 8), (DIMS[2], DIMS[3]), (DIMS[1], DIMS[2]), (DIMS[0], DIMS[1])]
    for i, (co, ci) in enumerate(body):
        w = xavier(keys[ki], co, ci, 1); ki += 1
        params["res%d" % (i + 1)] = (w[:, :, 0, 0], jnp.zeros((co,), jnp.float32))
    w = xavier(keys[ki], FPN_DIM, DIMS[0], 1); ki += 1
    params["conv_top"] = (w[:, :, 0, 0], jnp.zeros((FPN_DIM,), jnp.float32))
    for i in range(NUM_STAGES - 1):
        w = xavier(keys[ki], FPN_DIM, DIMS[i + 1], 1); ki += 1
        params["lateral%d" % i] = (w[:, :, 0, 0], jnp.zeros((FPN_DIM,), jnp.float32))
    for i in range(NUM_STAGES):
        w = xavier(keys[ki], FPN_DIM, FPN_DIM, 3); ki += 1
        params["posthoc%d" % i] = (w, jnp.zeros((FPN_DIM,), jnp.float32))
    return params


# ---------------------------------------------------------------- pure-JAX reference
# Same precision policy as the kernel: bf16 operands into every matmul/conv with f32
# accumulation, and top-down (upsampled) features consumed in bf16.

def fpn_forward_ref(x_nchw, params):
    f32, bf16 = jnp.float32, jnp.bfloat16
    xps, hw = _pool_pyramid(x_nchw)
    comp = _composite_backbone_weights(params)
    n = x_nchw.shape[0]

    def to_nhwc(lvl):
        h, w = hw[lvl]
        x = xps[lvl][:, :, :h * w].reshape(n, -1, h, w)
        return jnp.transpose(x, (0, 2, 3, 1))

    def c1x1(x, w, b):
        y = jnp.einsum("nhwc,oc->nhwo", x.astype(bf16), jnp.asarray(w, bf16),
                       preferred_element_type=f32)
        return y + jnp.asarray(b, f32).reshape(1, 1, 1, -1)

    def c3x3(x, w, b):
        y = jax.lax.conv_general_dilated(
            x.astype(bf16), jnp.transpose(jnp.asarray(w, bf16), (2, 3, 1, 0)),
            window_strides=(1, 1), padding=((1, 1), (1, 1)),
            dimension_numbers=("NHWC", "HWIO", "NHWC"),
            preferred_element_type=f32)
        return y + jnp.asarray(b, f32).reshape(1, 1, 1, -1)

    res = {lvl: c1x1(to_nhwc(lvl), comp[lvl],
                     np.zeros((comp[lvl].shape[0],), np.float32))
           for lvl in (2, 3, 4, 5)}
    inner = {5: c1x1(res[5], *params["conv_top"])}
    for i, lvl in enumerate((4, 3, 2)):
        top = inner[lvl + 1].astype(bf16).astype(f32)            # bf16 storage policy
        td = jnp.repeat(jnp.repeat(top, 2, axis=1), 2, axis=2)   # nearest 2x upsample
        inner[lvl] = c1x1(res[lvl], *params["lateral%d" % i]) + td
    p = {lvl: c3x3(inner[lvl], *params["posthoc%d" % i])
         for i, lvl in enumerate((5, 4, 3, 2))}
    outs = [p[5][:, ::2, ::2, :], p[5], p[4], p[3], p[2]]        # [P6, P5, P4, P3, P2]
    return [jnp.transpose(o, (0, 3, 1, 2)) for o in outs]


# ---------------------------------------------------------------- main

if __name__ == "__main__":
    key = jax.random.PRNGKey(0)
    kx, kp = jax.random.split(key)
    x = jax.random.normal(kx, (2, 3, 64, 64), jnp.float32)   # NCHW, like PyTorch
    params = init_params(kp)

    outs = jax.jit(fpn_forward)(x, params)                   # single fused Pallas call
    outs = jax.block_until_ready(outs)

    refs = fpn_forward_ref(x, params)                        # pure-JAX reference
    assert len(outs) == 5                                    # [P6, P5, P4, P3, P2]
    for o, r in zip(outs, refs):
        assert o.shape == r.shape, (o.shape, r.shape)
        err = float(jnp.max(jnp.abs(o - r)))
        assert jnp.allclose(o, r, atol=2e-3, rtol=2e-3), err

    print("KERNEL_OK")
</pallas_src>

<mosaic_0001>
module attributes {stable_mosaic.version = 11 : i64} {
  func.func @kernel(%arg0: i32, %arg1: memref<1x3x128xbf16, #tpu.memory_space<vmem>>, %arg2: memref<1x3x128xbf16, #tpu.memory_space<vmem>>, %arg3: memref<1x3x128xbf16, #tpu.memory_space<vmem>>, %arg4: memref<1x3x256xbf16, #tpu.memory_space<vmem>>, %arg5: memref<64x3xbf16, #tpu.memory_space<vmem>>, %arg6: memref<48x3xbf16, #tpu.memory_space<vmem>>, %arg7: memref<32x3xbf16, #tpu.memory_space<vmem>>, %arg8: memref<16x3xbf16, #tpu.memory_space<vmem>>, %arg9: memref<32x64xbf16, #tpu.memory_space<vmem>>, %arg10: memref<32x1xf32, #tpu.memory_space<vmem>>, %arg11: memref<32x48xbf16, #tpu.memory_space<vmem>>, %arg12: memref<32x1xf32, #tpu.memory_space<vmem>>, %arg13: memref<32x32xbf16, #tpu.memory_space<vmem>>, %arg14: memref<32x1xf32, #tpu.memory_space<vmem>>, %arg15: memref<32x16xbf16, #tpu.memory_space<vmem>>, %arg16: memref<32x1xf32, #tpu.memory_space<vmem>>, %arg17: memref<128x128xbf16, #tpu.memory_space<vmem>>, %arg18: memref<128x128xbf16, #tpu.memory_space<vmem>>, %arg19: memref<128x256xbf16, #tpu.memory_space<vmem>>, %arg20: memref<32x288xbf16, #tpu.memory_space<vmem>>, %arg21: memref<32x1xf32, #tpu.memory_space<vmem>>, %arg22: memref<32x288xbf16, #tpu.memory_space<vmem>>, %arg23: memref<32x1xf32, #tpu.memory_space<vmem>>, %arg24: memref<32x288xbf16, #tpu.memory_space<vmem>>, %arg25: memref<32x1xf32, #tpu.memory_space<vmem>>, %arg26: memref<32x288xbf16, #tpu.memory_space<vmem>>, %arg27: memref<32x1xf32, #tpu.memory_space<vmem>>, %arg28: memref<1x32x1xf32, #tpu.memory_space<vmem>>, %arg29: memref<1x32x4xf32, #tpu.memory_space<vmem>>, %arg30: memref<1x32x16xf32, #tpu.memory_space<vmem>>, %arg31: memref<1x32x64xf32, #tpu.memory_space<vmem>>, %arg32: memref<1x32x256xf32, #tpu.memory_space<vmem>>) attributes {dimension_semantics = [#tpu.dimension_semantics<parallel>], iteration_bounds = array<i64: 2>, scalar_prefetch = 0 : i64, scratch_operands = 0 : i64, tpu.core_type = #tpu.core_type<tc>, window_params = [{transform_indices = @transform_0, window_bounds = array<i64: 1, 3, 128>}, {transform_indices = @transform_1, window_bounds = array<i64: 1, 3, 128>}, {transform_indices = @transform_2, window_bounds = array<i64: 1, 3, 128>}, {transform_indices = @transform_3, window_bounds = array<i64: 1, 3, 256>}, {pipeline_mode = #tpu.pipeline_mode<synchronous>, transform_indices = @transform_4, window_bounds = array<i64: 64, 3>}, {pipeline_mode = #tpu.pipeline_mode<synchronous>, transform_indices = @transform_5, window_bounds = array<i64: 48, 3>}, {pipeline_mode = #tpu.pipeline_mode<synchronous>, transform_indices = @transform_6, window_bounds = array<i64: 32, 3>}, {pipeline_mode = #tpu.pipeline_mode<synchronous>, transform_indices = @transform_7, window_bounds = array<i64: 16, 3>}, {pipeline_mode = #tpu.pipeline_mode<synchronous>, transform_indices = @transform_8, window_bounds = array<i64: 32, 64>}, {pipeline_mode = #tpu.pipeline_mode<synchronous>, transform_indices = @transform_9, window_bounds = array<i64: 32, 1>}, {pipeline_mode = #tpu.pipeline_mode<synchronous>, transform_indices = @transform_10, window_bounds = array<i64: 32, 48>}, {pipeline_mode = #tpu.pipeline_mode<synchronous>, transform_indices = @transform_11, window_bounds = array<i64: 32, 1>}, {pipeline_mode = #tpu.pipeline_mode<synchronous>, transform_indices = @transform_12, window_bounds = array<i64: 32, 32>}, {pipeline_mode = #tpu.pipeline_mode<synchronous>, transform_indices = @transform_13, window_bounds = array<i64: 32, 1>}, {pipeline_mode = #tpu.pipeline_mode<synchronous>, transform_indices = @transform_14, window_bounds = array<i64: 32, 16>}, {pipeline_mode = #tpu.pipeline_mode<synchronous>, transform_indices = @transform_15, window_bounds = array<i64: 32, 1>}, {pipeline_mode = #tpu.pipeline_mode<synchronous>, transform_indices = @transform_16, window_bounds = array<i64: 128, 128>}, {pipeline_mode = #tpu.pipeline_mode<synchronous>, transform_indices = @transform_17, window_bounds = array<i64: 128, 128>}, {pipeline_mode = #tpu.pipeline_mode<synchronous>, transform_indices = @transform_18, window_bounds = array<i64: 128, 256>}, {pipeline_mode = #tpu.pipeline_mode<synchronous>, transform_indices = @transform_19, window_bounds = array<i64: 32, 288>}, {pipeline_mode = #tpu.pipeline_mode<synchronous>, transform_indices = @transform_20, window_bounds = array<i64: 32, 1>}, {pipeline_mode = #tpu.pipeline_mode<synchronous>, transform_indices = @transform_21, window_bounds = array<i64: 32, 288>}, {pipeline_mode = #tpu.pipeline_mode<synchronous>, transform_indices = @transform_22, window_bounds = array<i64: 32, 1>}, {pipeline_mode = #tpu.pipeline_mode<synchronous>, transform_indices = @transform_23, window_bounds = array<i64: 32, 288>}, {pipeline_mode = #tpu.pipeline_mode<synchronous>, transform_indices = @transform_24, window_bounds = array<i64: 32, 1>}, {pipeline_mode = #tpu.pipeline_mode<synchronous>, transform_indices = @transform_25, window_bounds = array<i64: 32, 288>}, {pipeline_mode = #tpu.pipeline_mode<synchronous>, transform_indices = @transform_26, window_bounds = array<i64: 32, 1>}, {transform_indices = @transform_27, window_bounds = array<i64: 1, 32, 1>}, {transform_indices = @transform_28, window_bounds = array<i64: 1, 32, 4>}, {transform_indices = @transform_29, window_bounds = array<i64: 1, 32, 16>}, {transform_indices = @transform_30, window_bounds = array<i64: 1, 32, 64>}, {transform_indices = @transform_31, window_bounds = array<i64: 1, 32, 256>}]} {
    %c0 = arith.constant 0 : index
    %c0_0 = arith.constant 0 : index
    %c0_1 = arith.constant 0 : index
    %0 = vector.load %arg1[%c0, %c0_0, %c0_1] : memref<1x3x128xbf16, #tpu.memory_space<vmem>>, vector<1x3x128xbf16>
    %1 = vector.shape_cast %0 : vector<1x3x128xbf16> to vector<3x128xbf16>
    %c0_2 = arith.constant 0 : index
    %c0_3 = arith.constant 0 : index
    %2 = vector.load %arg5[%c0_2, %c0_3] : memref<64x3xbf16, #tpu.memory_space<vmem>>, vector<64x3xbf16>
    %cst = arith.constant dense<0.000000e+00> : vector<64x128xf32>
    %3 = tpu.matmul %2, %1, %cst {dimension_numbers = #tpu.dot_dimension_numbers<[1], [0], [0], [1], [0, 0, 1, 1], [], []>} : vector<64x3xbf16>, vector<3x128xbf16>, vector<64x128xf32> -> vector<64x128xf32>
    %c0_4 = arith.constant 0 : index
    %c0_5 = arith.constant 0 : index
    %4 = vector.load %arg9[%c0_4, %c0_5] : memref<32x64xbf16, #tpu.memory_space<vmem>>, vector<32x64xbf16>
    %5 = arith.truncf %3 : vector<64x128xf32> to vector<64x128xbf16>
    %cst_6 = arith.constant dense<0.000000e+00> : vector<32x128xf32>
    %6 = tpu.matmul %4, %5, %cst_6 {dimension_numbers = #tpu.dot_dimension_numbers<[1], [0], [0], [1], [0, 0, 1, 1], [], []>} : vector<32x64xbf16>, vector<64x128xbf16>, vector<32x128xf32> -> vector<32x128xf32>
    %c0_7 = arith.constant 0 : index
    %c0_8 = arith.constant 0 : index
    %7 = vector.load %arg10[%c0_7, %c0_8] : memref<32x1xf32, #tpu.memory_space<vmem>>, vector<32x1xf32>
    %8 = vector.broadcast %7 : vector<32x1xf32> to vector<32x128xf32>
    %9 = arith.addf %6, %8 : vector<32x128xf32>
    %10 = arith.truncf %9 : vector<32x128xf32> to vector<32x128xbf16>
    %11 = tpu.concatenate %10, %10 in 1 : vector<32x128xbf16>, vector<32x128xbf16> -> vector<32x256xbf16>
    %12 = tpu.iota {dimensions = array<i32: 1>} : vector<1x128xi32>
    %c1_i32 = arith.constant 1 : i32
    %13 = vector.broadcast %c1_i32 : i32 to vector<1x128xi32>
    %14 = arith.shrsi %12, %13 : vector<1x128xi32>
    %c1_i32_9 = arith.constant 1 : i32
    %15 = vector.broadcast %c1_i32_9 : i32 to vector<1x128xi32>
    %16 = arith.andi %12, %15 : vector<1x128xi32>
    %17 = vector.extract_strided_slice %11 {offsets = [0, 125], sizes = [32, 128], strides = [1, 1]} : vector<32x256xbf16> to vector<32x128xbf16>
    %c-1_i32 = arith.constant -1 : i32
    %18 = vector.broadcast %c-1_i32 : i32 to vector<1x128xi32>
    %19 = arith.addi %14, %18 : vector<1x128xi32>
    %c0_i32 = arith.constant 0 : i32
    %20 = vector.broadcast %c0_i32 : i32 to vector<1x128xi32>
    %21 = arith.cmpi sge, %19, %20 : vector<1x128xi32>
    %c-1_i32_10 = arith.constant -1 : i32
    %22 = vector.broadcast %c-1_i32_10 : i32 to vector<1x128xi32>
    %23 = arith.addi %14, %22 : vector<1x128xi32>
    %c2_i32 = arith.constant 2 : i32
    %24 = vector.broadcast %c2_i32 : i32 to vector<1x128xi32>
    %25 = arith.cmpi slt, %23, %24 : vector<1x128xi32>
    %26 = arith.andi %21, %25 : vector<1x128xi1>
    %c-1_i32_11 = arith.constant -1 : i32
    %27 = vector.broadcast %c-1_i32_11 : i32 to vector<1x128xi32>
    %28 = arith.addi %16, %27 : vector<1x128xi32>
    %c0_i32_12 = arith.constant 0 : i32
    %29 = vector.broadcast %c0_i32_12 : i32 to vector<1x128xi32>
    %30 = arith.cmpi sge, %28, %29 : vector<1x128xi32>
    %31 = arith.andi %26, %30 : vector<1x128xi1>
    %c-1_i32_13 = arith.constant -1 : i32
    %32 = vector.broadcast %c-1_i32_13 : i32 to vector<1x128xi32>
    %33 = arith.addi %16, %32 : vector<1x128xi32>
    %c2_i32_14 = arith.constant 2 : i32
    %34 = vector.broadcast %c2_i32_14 : i32 to vector<1x128xi32>
    %35 = arith.cmpi slt, %33, %34 : vector<1x128xi32>
    %36 = arith.andi %31, %35 : vector<1x128xi1>
    %cst_15 = arith.constant 0.000000e+00 : bf16
    %37 = vector.broadcast %cst_15 : bf16 to vector<32x128xbf16>
    %38 = vector.shape_cast %36 : vector<1x128xi1> to vector<1x128xi1>
    %39 = vector.broadcast %38 : vector<1x128xi1> to vector<32x128xi1>
    %40 = arith.select %39, %17, %37 : vector<32x128xi1>, vector<32x128xbf16>
    %41 = vector.extract_strided_slice %11 {offsets = [0, 126], sizes = [32, 128], strides = [1, 1]} : vector<32x256xbf16> to vector<32x128xbf16>
    %c-1_i32_16 = arith.constant -1 : i32
    %42 = vector.broadcast %c-1_i32_16 : i32 to vector<1x128xi32>
    %43 = arith.addi %14, %42 : vector<1x128xi32>
    %c0_i32_17 = arith.constant 0 : i32
    %44 = vector.broadcast %c0_i32_17 : i32 to vector<1x128xi32>
    %45 = arith.cmpi sge, %43, %44 : vector<1x128xi32>
    %c-1_i32_18 = arith.constant -1 : i32
    %46 = vector.broadcast %c-1_i32_18 : i32 to vector<1x128xi32>
    %47 = arith.addi %14, %46 : vector<1x128xi32>
    %c2_i32_19 = arith.constant 2 : i32
    %48 = vector.broadcast %c2_i32_19 : i32 to vector<1x128xi32>
    %49 = arith.cmpi slt, %47, %48 : vector<1x128xi32>
    %50 = arith.andi %45, %49 : vector<1x128xi1>
    %c0_i32_20 = arith.constant 0 : i32
    %51 = vector.broadcast %c0_i32_20 : i32 to vector<1x128xi32>
    %52 = arith.addi %16, %51 : vector<1x128xi32>
    %c0_i32_21 = arith.constant 0 : i32
    %53 = vector.broadcast %c0_i32_21 : i32 to vector<1x128xi32>
    %54 = arith.cmpi sge, %52, %53 : vector<1x128xi32>
    %55 = arith.andi %50, %54 : vector<1x128xi1>
    %c0_i32_22 = arith.constant 0 : i32
    %56 = vector.broadcast %c0_i32_22 : i32 to vector<1x128xi32>
    %57 = arith.addi %16, %56 : vector<1x128xi32>
    %c2_i32_23 = arith.constant 2 : i32
    %58 = vector.broadcast %c2_i32_23 : i32 to vector<1x128xi32>
    %59 = arith.cmpi slt, %57, %58 : vector<1x128xi32>
    %60 = arith.andi %55, %59 : vector<1x128xi1>
    %cst_24 = arith.constant 0.000000e+00 : bf16
    %61 = vector.broadcast %cst_24 : bf16 to vector<32x128xbf16>
    %62 = vector.shape_cast %60 : vector<1x128xi1> to vector<1x128xi1>
    %63 = vector.broadcast %62 : vector<1x128xi1> to vector<32x128xi1>
    %64 = arith.select %63, %41, %61 : vector<32x128xi1>, vector<32x128xbf16>
    %65 = vector.extract_strided_slice %11 {offsets = [0, 127], sizes = [32, 128], strides = [1, 1]} : vector<32x256xbf16> to vector<32x128xbf16>
    %c-1_i32_25 = arith.constant -1 : i32
    %66 = vector.broadcast %c-1_i32_25 : i32 to vector<1x128xi32>
    %67 = arith.addi %14, %66 : vector<1x128xi32>
    %c0_i32_26 = arith.constant 0 : i32
    %68 = vector.broadcast %c0_i32_26 : i32 to vector<1x128xi32>
    %69 = arith.cmpi sge, %67, %68 : vector<1x128xi32>
    %c-1_i32_27 = arith.constant -1 : i32
    %70 = vector.broadcast %c-1_i32_27 : i32 to vector<1x128xi32>
    %71 = arith.addi %14, %70 : vector<1x128xi32>
    %c2_i32_28 = arith.constant 2 : i32
    %72 = vector.broadcast %c2_i32_28 : i32 to vector<1x128xi32>
    %73 = arith.cmpi slt, %71, %72 : vector<1x128xi32>
    %74 = arith.andi %69, %73 : vector<1x128xi1>
    %c1_i32_29 = arith.constant 1 : i32
    %75 = vector.broadcast %c1_i32_29 : i32 to vector<1x128xi32>
    %76 = arith.addi %16, %75 : vector<1x128xi32>
    %c0_i32_30 = arith.constant 0 : i32
    %77 = vector.broadcast %c0_i32_30 : i32 to vector<1x128xi32>
    %78 = arith.cmpi sge, %76, %77 : vector<1x128xi32>
    %79 = arith.andi %74, %78 : vector<1x128xi1>
    %c1_i32_31 = arith.constant 1 : i32
    %80 = vector.broadcast %c1_i32_31 : i32 to vector<1x128xi32>
    %81 = arith.addi %16, %80 : vector<1x128xi32>
    %c2_i32_32 = arith.constant 2 : i32
    %82 = vector.broadcast %c2_i32_32 : i32 to vector<1x128xi32>
    %83 = arith.cmpi slt, %81, %82 : vector<1x128xi32>
    %84 = arith.andi %79, %83 : vector<1x128xi1>
    %cst_33 = arith.constant 0.000000e+00 : bf16
    %85 = vector.broadcast %cst_33 : bf16 to vector<32x128xbf16>
    %86 = vector.shape_cast %84 : vector<1x128xi1> to vector<1x128xi1>
    %87 = vector.broadcast %86 : vector<1x128xi1> to vector<32x128xi1>
    %88 = arith.select %87, %65, %85 : vector<32x128xi1>, vector<32x128xbf16>
    %89 = vector.extract_strided_slice %11 {offsets = [0, 127], sizes = [32, 128], strides = [1, 1]} : vector<32x256xbf16> to vector<32x128xbf16>
    %c0_i32_34 = arith.constant 0 : i32
    %90 = vector.broadcast %c0_i32_34 : i32 to vector<1x128xi32>
    %91 = arith.addi %14, %90 : vector<1x128xi32>
    %c0_i32_35 = arith.constant 0 : i32
    %92 = vector.broadcast %c0_i32_35 : i32 to vector<1x128xi32>
    %93 = arith.cmpi sge, %91, %92 : vector<1x128xi32>
    %c0_i32_36 = arith.constant 0 : i32
    %94 = vector.broadcast %c0_i32_36 : i32 to vector<1x128xi32>
    %95 = arith.addi %14, %94 : vector<1x128xi32>
    %c2_i32_37 = arith.constant 2 : i32
    %96 = vector.broadcast %c2_i32_37 : i32 to vector<1x128xi32>
    %97 = arith.cmpi slt, %95, %96 : vector<1x128xi32>
    %98 = arith.andi %93, %97 : vector<1x128xi1>
    %c-1_i32_38 = arith.constant -1 : i32
    %99 = vector.broadcast %c-1_i32_38 : i32 to vector<1x128xi32>
    %100 = arith.addi %16, %99 : vector<1x128xi32>
    %c0_i32_39 = arith.constant 0 : i32
    %101 = vector.broadcast %c0_i32_39 : i32 to vector<1x128xi32>
    %102 = arith.cmpi sge, %100, %101 : vector<1x128xi32>
    %103 = arith.andi %98, %102 : vector<1x128xi1>
    %c-1_i32_40 = arith.constant -1 : i32
    %104 = vector.broadcast %c-1_i32_40 : i32 to vector<1x128xi32>
    %105 = arith.addi %16, %104 : vector<1x128xi32>
    %c2_i32_41 = arith.constant 2 : i32
    %106 = vector.broadcast %c2_i32_41 : i32 to vector<1x128xi32>
    %107 = arith.cmpi slt, %105, %106 : vector<1x128xi32>
    %108 = arith.andi %103, %107 : vector<1x128xi1>
    %cst_42 = arith.constant 0.000000e+00 : bf16
    %109 = vector.broadcast %cst_42 : bf16 to vector<32x128xbf16>
    %110 = vector.shape_cast %108 : vector<1x128xi1> to vector<1x128xi1>
    %111 = vector.broadcast %110 : vector<1x128xi1> to vector<32x128xi1>
    %112 = arith.select %111, %89, %109 : vector<32x128xi1>, vector<32x128xbf16>
    %113 = vector.extract_strided_slice %11 {offsets = [0, 0], sizes = [32, 128], strides = [1, 1]} : vector<32x256xbf16> to vector<32x128xbf16>
    %c0_i32_43 = arith.constant 0 : i32
    %114 = vector.broadcast %c0_i32_43 : i32 to vector<1x128xi32>
    %115 = arith.addi %14, %114 : vector<1x128xi32>
    %c0_i32_44 = arith.constant 0 : i32
    %116 = vector.broadcast %c0_i32_44 : i32 to vector<1x128xi32>
    %117 = arith.cmpi sge, %115, %116 : vector<1x128xi32>
    %c0_i32_45 = arith.constant 0 : i32
    %118 = vector.broadcast %c0_i32_45 : i32 to vector<1x128xi32>
    %119 = arith.addi %14, %118 : vector<1x128xi32>
    %c2_i32_46 = arith.constant 2 : i32
    %120 = vector.broadcast %c2_i32_46 : i32 to vector<1x128xi32>
    %121 = arith.cmpi slt, %119, %120 : vector<1x128xi32>
    %122 = arith.andi %117, %121 : vector<1x128xi1>
    %c0_i32_47 = arith.constant 0 : i32
    %123 = vector.broadcast %c0_i32_47 : i32 to vector<1x128xi32>
    %124 = arith.addi %16, %123 : vector<1x128xi32>
    %c0_i32_48 = arith.constant 0 : i32
    %125 = vector.broadcast %c0_i32_48 : i32 to vector<1x128xi32>
    %126 = arith.cmpi sge, %124, %125 : vector<1x128xi32>
    %127 = arith.andi %122, %126 : vector<1x128xi1>
    %c0_i32_49 = arith.constant 0 : i32
    %128 = vector.broadcast %c0_i32_49 : i32 to vector<1x128xi32>
    %129 = arith.addi %16, %128 : vector<1x128xi32>
    %c2_i32_50 = arith.constant 2 : i32
    %130 = vector.broadcast %c2_i32_50 : i32 to vector<1x128xi32>
    %131 = arith.cmpi slt, %129, %130 : vector<1x128xi32>
    %132 = arith.andi %127, %131 : vector<1x128xi1>
    %cst_51 = arith.constant 0.000000e+00 : bf16
    %133 = vector.broadcast %cst_51 : bf16 to vector<32x128xbf16>
    %134 = vector.shape_cast %132 : vector<1x128xi1> to vector<1x128xi1>
    %135 = vector.broadcast %134 : vector<1x128xi1> to vector<32x128xi1>
    %136 = arith.select %135, %113, %133 : vector<32x128xi1>, vector<32x128xbf16>
    %137 = vector.extract_strided_slice %11 {offsets = [0, 1], sizes = [32, 128], strides = [1, 1]} : vector<32x256xbf16> to vector<32x128xbf16>
    %c0_i32_52 = arith.constant 0 : i32
    %138 = vector.broadcast %c0_i32_52 : i32 to vector<1x128xi32>
    %139 = arith.addi %14, %138 : vector<1x128xi32>
    %c0_i32_53 = arith.constant 0 : i32
    %140 = vector.broadcast %c0_i32_53 : i32 to vector<1x128xi32>
    %141 = arith.cmpi sge, %139, %140 : vector<1x128xi32>
    %c0_i32_54 = arith.constant 0 : i32
    %142 = vector.broadcast %c0_i32_54 : i32 to vector<1x128xi32>
    %143 = arith.addi %14, %142 : vector<1x128xi32>
    %c2_i32_55 = arith.constant 2 : i32
    %144 = vector.broadcast %c2_i32_55 : i32 to vector<1x128xi32>
    %145 = arith.cmpi slt, %143, %144 : vector<1x128xi32>
    %146 = arith.andi %141, %145 : vector<1x128xi1>
    %c1_i32_56 = arith.constant 1 : i32
    %147 = vector.broadcast %c1_i32_56 : i32 to vector<1x128xi32>
    %148 = arith.addi %16, %147 : vector<1x128xi32>
    %c0_i32_57 = arith.constant 0 : i32
    %149 = vector.broadcast %c0_i32_57 : i32 to vector<1x128xi32>
    %150 = arith.cmpi sge, %148, %149 : vector<1x128xi32>
    %151 = arith.andi %146, %150 : vector<1x128xi1>
    %c1_i32_58 = arith.constant 1 : i32
    %152 = vector.broadcast %c1_i32_58 : i32 to vector<1x128xi32>
    %153 = arith.addi %16, %152 : vector<1x128xi32>
    %c2_i32_59 = arith.constant 2 : i32
    %154 = vector.broadcast %c2_i32_59 : i32 to vector<1x128xi32>
    %155 = arith.cmpi slt, %153, %154 : vector<1x128xi32>
    %156 = arith.andi %151, %155 : vector<1x128xi1>
    %cst_60 = arith.constant 0.000000e+00 : bf16
    %157 = vector.broadcast %cst_60 : bf16 to vector<32x128xbf16>
    %158 = vector.shape_cast %156 : vector<1x128xi1> to vector<1x128xi1>
    %159 = vector.broadcast %158 : vector<1x128xi1> to vector<32x128xi1>
    %160 = arith.select %159, %137, %157 : vector<32x128xi1>, vector<32x128xbf16>
    %161 = vector.extract_strided_slice %11 {offsets = [0, 1], sizes = [32, 128], strides = [1, 1]} : vector<32x256xbf16> to vector<32x128xbf16>
    %c1_i32_61 = arith.constant 1 : i32
    %162 = vector.broadcast %c1_i32_61 : i32 to vector<1x128xi32>
    %163 = arith.addi %14, %162 : vector<1x128xi32>
    %c0_i32_62 = arith.constant 0 : i32
    %164 = vector.broadcast %c0_i32_62 : i32 to vector<1x128xi32>
    %165 = arith.cmpi sge, %163, %164 : vector<1x128xi32>
    %c1_i32_63 = arith.constant 1 : i32
    %166 = vector.broadcast %c1_i32_63 : i32 to vector<1x128xi32>
    %167 = arith.addi %14, %166 : vector<1x128xi32>
    %c2_i32_64 = arith.constant 2 : i32
    %168 = vector.broadcast %c2_i32_64 : i32 to vector<1x128xi32>
    %169 = arith.cmpi slt, %167, %168 : vector<1x128xi32>
    %170 = arith.andi %165, %169 : vector<1x128xi1>
    %c-1_i32_65 = arith.constant -1 : i32
    %171 = vector.broadcast %c-1_i32_65 : i32 to vector<1x128xi32>
    %172 = arith.addi %16, %171 : vector<1x128xi32>
    %c0_i32_66 = arith.constant 0 : i32
    %173 = vector.broadcast %c0_i32_66 : i32 to vector<1x128xi32>
    %174 = arith.cmpi sge, %172, %173 : vector<1x128xi32>
    %175 = arith.andi %170, %174 : vector<1x128xi1>
    %c-1_i32_67 = arith.constant -1 : i32
    %176 = vector.broadcast %c-1_i32_67 : i32 to vector<1x128xi32>
    %177 = arith.addi %16, %176 : vector<1x128xi32>
    %c2_i32_68 = arith.constant 2 : i32
    %178 = vector.broadcast %c2_i32_68 : i32 to vector<1x128xi32>
    %179 = arith.cmpi slt, %177, %178 : vector<1x128xi32>
    %180 = arith.andi %175, %179 : vector<1x128xi1>
    %cst_69 = arith.constant 0.000000e+00 : bf16
    %181 = vector.broadcast %cst_69 : bf16 to vector<32x128xbf16>
    %182 = vector.shape_cast %180 : vector<1x128xi1> to vector<1x128xi1>
    %183 = vector.broadcast %182 : vector<1x128xi1> to vector<32x128xi1>
    %184 = arith.select %183, %161, %181 : vector<32x128xi1>, vector<32x128xbf16>
    %185 = vector.extract_strided_slice %11 {offsets = [0, 2], sizes = [32, 128], strides = [1, 1]} : vector<32x256xbf16> to vector<32x128xbf16>
    %c1_i32_70 = arith.constant 1 : i32
    %186 = vector.broadcast %c1_i32_70 : i32 to vector<1x128xi32>
    %187 = arith.addi %14, %186 : vector<1x128xi32>
    %c0_i32_71 = arith.constant 0 : i32
    %188 = vector.broadcast %c0_i32_71 : i32 to vector<1x128xi32>
    %189 = arith.cmpi sge, %187, %188 : vector<1x128xi32>
    %c1_i32_72 = arith.constant 1 : i32
    %190 = vector.broadcast %c1_i32_72 : i32 to vector<1x128xi32>
    %191 = arith.addi %14, %190 : vector<1x128xi32>
    %c2_i32_73 = arith.constant 2 : i32
    %192 = vector.broadcast %c2_i32_73 : i32 to vector<1x128xi32>
    %193 = arith.cmpi slt, %191, %192 : vector<1x128xi32>
    %194 = arith.andi %189, %193 : vector<1x128xi1>
    %c0_i32_74 = arith.constant 0 : i32
    %195 = vector.broadcast %c0_i32_74 : i32 to vector<1x128xi32>
    %196 = arith.addi %16, %195 : vector<1x128xi32>
    %c0_i32_75 = arith.constant 0 : i32
    %197 = vector.broadcast %c0_i32_75 : i32 to vector<1x128xi32>
    %198 = arith.cmpi sge, %196, %197 : vector<1x128xi32>
    %199 = arith.andi %194, %198 : vector<1x128xi1>
    %c0_i32_76 = arith.constant 0 : i32
    %200 = vector.broadcast %c0_i32_76 : i32 to vector<1x128xi32>
    %201 = arith.addi %16, %200 : vector<1x128xi32>
    %c2_i32_77 = arith.constant 2 : i32
    %202 = vector.broadcast %c2_i32_77 : i32 to vector<1x128xi32>
    %203 = arith.cmpi slt, %201, %202 : vector<1x128xi32>
    %204 = arith.andi %199, %203 : vector<1x128xi1>
    %cst_78 = arith.constant 0.000000e+00 : bf16
    %205 = vector.broadcast %cst_78 : bf16 to vector<32x128xbf16>
    %206 = vector.shape_cast %204 : vector<1x128xi1> to vector<1x128xi1>
    %207 = vector.broadcast %206 : vector<1x128xi1> to vector<32x128xi1>
    %208 = arith.select %207, %185, %205 : vector<32x128xi1>, vector<32x128xbf16>
    %209 = vector.extract_strided_slice %11 {offsets = [0, 3], sizes = [32, 128], strides = [1, 1]} : vector<32x256xbf16> to vector<32x128xbf16>
    %c1_i32_79 = arith.constant 1 : i32
    %210 = vector.broadcast %c1_i32_79 : i32 to vector<1x128xi32>
    %211 = arith.addi %14, %210 : vector<1x128xi32>
    %c0_i32_80 = arith.constant 0 : i32
    %212 = vector.broadcast %c0_i32_80 : i32 to vector<1x128xi32>
    %213 = arith.cmpi sge, %211, %212 : vector<1x128xi32>
    %c1_i32_81 = arith.constant 1 : i32
    %214 = vector.broadcast %c1_i32_81 : i32 to vector<1x128xi32>
    %215 = arith.addi %14, %214 : vector<1x128xi32>
    %c2_i32_82 = arith.constant 2 : i32
    %216 = vector.broadcast %c2_i32_82 : i32 to vector<1x128xi32>
    %217 = arith.cmpi slt, %215, %216 : vector<1x128xi32>
    %218 = arith.andi %213, %217 : vector<1x128xi1>
    %c1_i32_83 = arith.constant 1 : i32
    %219 = vector.broadcast %c1_i32_83 : i32 to vector<1x128xi32>
    %220 = arith.addi %16, %219 : vector<1x128xi32>
    %c0_i32_84 = arith.constant 0 : i32
    %221 = vector.broadcast %c0_i32_84 : i32 to vector<1x128xi32>
    %222 = arith.cmpi sge, %220, %221 : vector<1x128xi32>
    %223 = arith.andi %218, %222 : vector<1x128xi1>
    %c1_i32_85 = arith.constant 1 : i32
    %224 = vector.broadcast %c1_i32_85 : i32 to vector<1x128xi32>
    %225 = arith.addi %16, %224 : vector<1x128xi32>
    %c2_i32_86 = arith.constant 2 : i32
    %226 = vector.broadcast %c2_i32_86 : i32 to vector<1x128xi32>
    %227 = arith.cmpi slt, %225, %226 : vector<1x128xi32>
    %228 = arith.andi %223, %227 : vector<1x128xi1>
    %cst_87 = arith.constant 0.000000e+00 : bf16
    %229 = vector.broadcast %cst_87 : bf16 to vector<32x128xbf16>
    %230 = vector.shape_cast %228 : vector<1x128xi1> to vector<1x128xi1>
    %231 = vector.broadcast %230 : vector<1x128xi1> to vector<32x128xi1>
    %232 = arith.select %231, %209, %229 : vector<32x128xi1>, vector<32x128xbf16>
    %233 = tpu.concatenate %40, %64, %88, %112, %136, %160, %184, %208, %232 in 0 : vector<32x128xbf16>, vector<32x128xbf16>, vector<32x128xbf16>, vector<32x128xbf16>, vector<32x128xbf16>, vector<32x128xbf16>, vector<32x128xbf16>, vector<32x128xbf16>, vector<32x128xbf16> -> vector<288x128xbf16>
    %c0_88 = arith.constant 0 : index
    %c0_89 = arith.constant 0 : index
    %234 = vector.load %arg20[%c0_88, %c0_89] : memref<32x288xbf16, #tpu.memory_space<vmem>>, vector<32x288xbf16>
    %cst_90 = arith.constant dense<0.000000e+00> : vector<32x128xf32>
    %235 = tpu.matmul %234, %233, %cst_90 {dimension_numbers = #tpu.dot_dimension_numbers<[1], [0], [0], [1], [0, 0, 1, 1], [], []>} : vector<32x288xbf16>, vector<288x128xbf16>, vector<32x128xf32> -> vector<32x128xf32>
    %c0_91 = arith.constant 0 : index
    %c0_92 = arith.constant 0 : index
    %236 = vector.load %arg21[%c0_91, %c0_92] : memref<32x1xf32, #tpu.memory_space<vmem>>, vector<32x1xf32>
    %237 = vector.broadcast %236 : vector<32x1xf32> to vector<32x128xf32>
    %238 = arith.addf %235, %237 : vector<32x128xf32>
    %239 = vector.extract_strided_slice %238 {offsets = [0, 0], sizes = [32, 4], strides = [1, 1]} : vector<32x128xf32> to vector<32x4xf32>
    %c0_93 = arith.constant 0 : index
    %c0_94 = arith.constant 0 : index
    %c0_95 = arith.constant 0 : index
    %240 = vector.load %arg29[%c0_93, %c0_94, %c0_95] : memref<1x32x4xf32, #tpu.memory_space<vmem>>, vector<1x32x4xf32>
    %241 = vector.shape_cast %240 : vector<1x32x4xf32> to vector<32x4xf32>
    %242 = vector.shape_cast %239 : vector<32x4xf32> to vector<1x32x4xf32>
    tpu.vector_store %arg29[%c0_93, %c0_94, %c0_95], %242 {strides = array<i32>} : memref<1x32x4xf32, #tpu.memory_space<vmem>>, vector<1x32x4xf32>,
    %243 = vector.extract_strided_slice %238 {offsets = [0, 0], sizes = [32, 1], strides = [1, 1]} : vector<32x128xf32> to vector<32x1xf32>
    %c0_96 = arith.constant 0 : index
    %c0_97 = arith.constant 0 : index
    %c0_98 = arith.constant 0 : index
    %244 = vector.load %arg28[%c0_96, %c0_97, %c0_98] : memref<1x32x1xf32, #tpu.memory_space<vmem>>, vector<1x32x1xf32>
    %245 = vector.shape_cast %244 : vector<1x32x1xf32> to vector<32x1xf32>
    %246 = vector.shape_cast %243 : vector<32x1xf32> to vector<1x32x1xf32>
    tpu.vector_store %arg28[%c0_96, %c0_97, %c0_98], %246 {strides = array<i32>} : memref<1x32x1xf32, #tpu.memory_space<vmem>>, vector<1x32x1xf32>,
    %c0_99 = arith.constant 0 : index
    %c0_100 = arith.constant 0 : index
    %c0_101 = arith.constant 0 : index
    %247 = vector.load %arg2[%c0_99, %c0_100, %c0_101] : memref<1x3x128xbf16, #tpu.memory_space<vmem>>, vector<1x3x128xbf16>
    %248 = vector.shape_cast %247 : vector<1x3x128xbf16> to vector<3x128xbf16>
    %c0_102 = arith.constant 0 : index
    %c0_103 = arith.constant 0 : index
    %249 = vector.load %arg6[%c0_102, %c0_103] : memref<48x3xbf16, #tpu.memory_space<vmem>>, vector<48x3xbf16>
    %cst_104 = arith.constant dense<0.000000e+00> : vector<48x128xf32>
    %250 = tpu.matmul %249, %248, %cst_104 {dimension_numbers = #tpu.dot_dimension_numbers<[1], [0], [0], [1], [0, 0, 1, 1], [], []>} : vector<48x3xbf16>, vector<3x128xbf16>, vector<48x128xf32> -> vector<48x128xf32>
    %c0_105 = arith.constant 0 : index
    %c0_106 = arith.constant 0 : index
    %251 = vector.load %arg11[%c0_105, %c0_106] : memref<32x48xbf16, #tpu.memory_space<vmem>>, vector<32x48xbf16>
    %252 = arith.truncf %250 : vector<48x128xf32> to vector<48x128xbf16>
    %cst_107 = arith.constant dense<0.000000e+00> : vector<32x128xf32>
    %253 = tpu.matmul %251, %252, %cst_107 {dimension_numbers = #tpu.dot_dimension_numbers<[1], [0], [0], [1], [0, 0, 1, 1], [], []>} : vector<32x48xbf16>, vector<48x128xbf16>, vector<32x128xf32> -> vector<32x128xf32>
    %c0_108 = arith.constant 0 : index
    %c0_109 = arith.constant 0 : index
    %254 = vector.load %arg12[%c0_108, %c0_109] : memref<32x1xf32, #tpu.memory_space<vmem>>, vector<32x1xf32>
    %255 = vector.broadcast %254 : vector<32x1xf32> to vector<32x128xf32>
    %256 = arith.addf %253, %255 : vector<32x128xf32>
    %257 = arith.truncf %9 : vector<32x128xf32> to vector<32x128xbf16>
    %c0_110 = arith.constant 0 : index
    %c0_111 = arith.constant 0 : index
    %258 = vector.load %arg17[%c0_110, %c0_111] : memref<128x128xbf16, #tpu.memory_space<vmem>>, vector<128x128xbf16>
    %cst_112 = arith.constant dense<0.000000e+00> : vector<32x128xf32>
    %259 = tpu.matmul %257, %258, %cst_112 {dimension_numbers = #tpu.dot_dimension_numbers<[1], [0], [0], [1], [0, 0, 1, 1], [], []>} : vector<32x128xbf16>, vector<128x128xbf16>, vector<32x128xf32> -> vector<32x128xf32>
    %260 = arith.addf %256, %259 : vector<32x128xf32>
    %261 = arith.truncf %260 : vector<32x128xf32> to vector<32x128xbf16>
    %262 = tpu.concatenate %261, %261 in 1 : vector<32x128xbf16>, vector<32x128xbf16> -> vector<32x256xbf16>
    %263 = tpu.iota {dimensions = array<i32: 1>} : vector<1x128xi32>
    %c2_i32_113 = arith.constant 2 : i32
    %264 = vector.broadcast %c2_i32_113 : i32 to vector<1x128xi32>
    %265 = arith.shrsi %263, %264 : vector<1x128xi32>
    %c3_i32 = arith.constant 3 : i32
    %266 = vector.broadcast %c3_i32 : i32 to vector<1x128xi32>
    %267 = arith.andi %263, %266 : vector<1x128xi32>
    %268 = vector.extract_strided_slice %262 {offsets = [0, 123], sizes = [32, 128], strides = [1, 1]} : vector<32x256xbf16> to vector<32x128xbf16>
    %c-1_i32_114 = arith.constant -1 : i32
    %269 = vector.broadcast %c-1_i32_114 : i32 to vector<1x128xi32>
    %270 = arith.addi %265, %269 : vector<1x128xi32>
    %c0_i32_115 = arith.constant 0 : i32
    %271 = vector.broadcast %c0_i32_115 : i32 to vector<1x128xi32>
    %272 = arith.cmpi sge, %270, %271 : vector<1x128xi32>
    %c-1_i32_116 = arith.constant -1 : i32
    %273 = vector.broadcast %c-1_i32_116 : i32 to vector<1x128xi32>
    %274 = arith.addi %265, %273 : vector<1x128xi32>
    %c4_i32 = arith.constant 4 : i32
    %275 = vector.broadcast %c4_i32 : i32 to vector<1x128xi32>
    %276 = arith.cmpi slt, %274, %275 : vector<1x128xi32>
    %277 = arith.andi %272, %276 : vector<1x128xi1>
    %c-1_i32_117 = arith.constant -1 : i32
    %278 = vector.broadcast %c-1_i32_117 : i32 to vector<1x128xi32>
    %279 = arith.addi %267, %278 : vector<1x128xi32>
    %c0_i32_118 = arith.constant 0 : i32
    %280 = vector.broadcast %c0_i32_118 : i32 to vector<1x128xi32>
    %281 = arith.cmpi sge, %279, %280 : vector<1x128xi32>
    %282 = arith.andi %277, %281 : vector<1x128xi1>
    %c-1_i32_119 = arith.constant -1 : i32
    %283 = vector.broadcast %c-1_i32_119 : i32 to vector<1x128xi32>
    %284 = arith.addi %267, %283 : vector<1x128xi32>
    %c4_i32_120 = arith.constant 4 : i32
    %285 = vector.broadcast %c4_i32_120 : i32 to vector<1x128xi32>
    %286 = arith.cmpi slt, %284, %285 : vector<1x128xi32>
    %287 = arith.andi %282, %286 : vector<1x128xi1>
    %cst_121 = arith.constant 0.000000e+00 : bf16
    %288 = vector.broadcast %cst_121 : bf16 to vector<32x128xbf16>
    %289 = vector.shape_cast %287 : vector<1x128xi1> to vector<1x128xi1>
    %290 = vector.broadcast %289 : vector<1x128xi1> to vector<32x128xi1>
    %291 = arith.select %290, %268, %288 : vector<32x128xi1>, vector<32x128xbf16>
    %292 = vector.extract_strided_slice %262 {offsets = [0, 124], sizes = [32, 128], strides = [1, 1]} : vector<32x256xbf16> to vector<32x128xbf16>
    %c-1_i32_122 = arith.constant -1 : i32
    %293 = vector.broadcast %c-1_i32_122 : i32 to vector<1x128xi32>
    %294 = arith.addi %265, %293 : vector<1x128xi32>
    %c0_i32_123 = arith.constant 0 : i32
    %295 = vector.broadcast %c0_i32_123 : i32 to vector<1x128xi32>
    %296 = arith.cmpi sge, %294, %295 : vector<1x128xi32>
    %c-1_i32_124 = arith.constant -1 : i32
    %297 = vector.broadcast %c-1_i32_124 : i32 to vector<1x128xi32>
    %298 = arith.addi %265, %297 : vector<1x128xi32>
    %c4_i32_125 = arith.constant 4 : i32
    %299 = vector.broadcast %c4_i32_125 : i32 to vector<1x128xi32>
    %300 = arith.cmpi slt, %298, %299 : vector<1x128xi32>
    %301 = arith.andi %296, %300 : vector<1x128xi1>
    %c0_i32_126 = arith.constant 0 : i32
    %302 = vector.broadcast %c0_i32_126 : i32 to vector<1x128xi32>
    %303 = arith.addi %267, %302 : vector<1x128xi32>
    %c0_i32_127 = arith.constant 0 : i32
    %304 = vector.broadcast %c0_i32_127 : i32 to vector<1x128xi32>
    %305 = arith.cmpi sge, %303, %304 : vector<1x128xi32>
    %306 = arith.andi %301, %305 : vector<1x128xi1>
    %c0_i32_128 = arith.constant 0 : i32
    %307 = vector.broadcast %c0_i32_128 : i32 to vector<1x128xi32>
    %308 = arith.addi %267, %307 : vector<1x128xi32>
    %c4_i32_129 = arith.constant 4 : i32
    %309 = vector.broadcast %c4_i32_129 : i32 to vector<1x128xi32>
    %310 = arith.cmpi slt, %308, %309 : vector<1x128xi32>
    %311 = arith.andi %306, %310 : vector<1x128xi1>
    %cst_130 = arith.constant 0.000000e+00 : bf16
    %312 = vector.broadcast %cst_130 : bf16 to vector<32x128xbf16>
    %313 = vector.shape_cast %311 : vector<1x128xi1> to vector<1x128xi1>
    %314 = vector.broadcast %313 : vector<1x128xi1> to vector<32x128xi1>
    %315 = arith.select %314, %292, %312 : vector<32x128xi1>, vector<32x128xbf16>
    %316 = vector.extract_strided_slice %262 {offsets = [0, 125], sizes = [32, 128], strides = [1, 1]} : vector<32x256xbf16> to vector<32x128xbf16>
    %c-1_i32_131 = arith.constant -1 : i32
    %317 = vector.broadcast %c-1_i32_131 : i32 to vector<1x128xi32>
    %318 = arith.addi %265, %317 : vector<1x128xi32>
    %c0_i32_132 = arith.constant 0 : i32
    %319 = vector.broadcast %c0_i32_132 : i32 to vector<1x128xi32>
    %320 = arith.cmpi sge, %318, %319 : vector<1x128xi32>
    %c-1_i32_133 = arith.constant -1 : i32
    %321 = vector.broadcast %c-1_i32_133 : i32 to vector<1x128xi32>
    %322 = arith.addi %265, %321 : vector<1x128xi32>
    %c4_i32_134 = arith.constant 4 : i32
    %323 = vector.broadcast %c4_i32_134 : i32 to vector<1x128xi32>
    %324 = arith.cmpi slt, %322, %323 : vector<1x128xi32>
    %325 = arith.andi %320, %324 : vector<1x128xi1>
    %c1_i32_135 = arith.constant 1 : i32
    %326 = vector.broadcast %c1_i32_135 : i32 to vector<1x128xi32>
    %327 = arith.addi %267, %326 : vector<1x128xi32>
    %c0_i32_136 = arith.constant 0 : i32
    %328 = vector.broadcast %c0_i32_136 : i32 to vector<1x128xi32>
    %329 = arith.cmpi sge, %327, %328 : vector<1x128xi32>
    %330 = arith.andi %325, %329 : vector<1x128xi1>
    %c1_i32_137 = arith.constant 1 : i32
    %331 = vector.broadcast %c1_i32_137 : i32 to vector<1x128xi32>
    %332 = arith.addi %267, %331 : vector<1x128xi32>
    %c4_i32_138 = arith.constant 4 : i32
    %333 = vector.broadcast %c4_i32_138 : i32 to vector<1x128xi32>
    %334 = arith.cmpi slt, %332, %333 : vector<1x128xi32>
    %335 = arith.andi %330, %334 : vector<1x128xi1>
    %cst_139 = arith.constant 0.000000e+00 : bf16
    %336 = vector.broadcast %cst_139 : bf16 to vector<32x128xbf16>
    %337 = vector.shape_cast %335 : vector<1x128xi1> to vector<1x128xi1>
    %338 = vector.broadcast %337 : vector<1x128xi1> to vector<32x128xi1>
    %339 = arith.select %338, %316, %336 : vector<32x128xi1>, vector<32x128xbf16>
    %340 = vector.extract_strided_slice %262 {offsets = [0, 127], sizes = [32, 128], strides = [1, 1]} : vector<32x256xbf16> to vector<32x128xbf16>
    %c0_i32_140 = arith.constant 0 : i32
    %341 = vector.broadcast %c0_i32_140 : i32 to vector<1x128xi32>
    %342 = arith.addi %265, %341 : vector<1x128xi32>
    %c0_i32_141 = arith.constant 0 : i32
    %343 = vector.broadcast %c0_i32_141 : i32 to vector<1x128xi32>
    %344 = arith.cmpi sge, %342, %343 : vector<1x128xi32>
    %c0_i32_142 = arith.constant 0 : i32
    %345 = vector.broadcast %c0_i32_142 : i32 to vector<1x128xi32>
    %346 = arith.addi %265, %345 : vector<1x128xi32>
    %c4_i32_143 = arith.constant 4 : i32
    %347 = vector.broadcast %c4_i32_143 : i32 to vector<1x128xi32>
    %348 = arith.cmpi slt, %346, %347 : vector<1x128xi32>
    %349 = arith.andi %344, %348 : vector<1x128xi1>
    %c-1_i32_144 = arith.constant -1 : i32
    %350 = vector.broadcast %c-1_i32_144 : i32 to vector<1x128xi32>
    %351 = arith.addi %267, %350 : vector<1x128xi32>
    %c0_i32_145 = arith.constant 0 : i32
    %352 = vector.broadcast %c0_i32_145 : i32 to vector<1x128xi32>
    %353 = arith.cmpi sge, %351, %352 : vector<1x128xi32>
    %354 = arith.andi %349, %353 : vector<1x128xi1>
    %c-1_i32_146 = arith.constant -1 : i32
    %355 = vector.broadcast %c-1_i32_146 : i32 to vector<1x128xi32>
    %356 = arith.addi %267, %355 : vector<1x128xi32>
    %c4_i32_147 = arith.constant 4 : i32
    %357 = vector.broadcast %c4_i32_147 : i32 to vector<1x128xi32>
    %358 = arith.cmpi slt, %356, %357 : vector<1x128xi32>
    %359 = arith.andi %354, %358 : vector<1x128xi1>
    %cst_148 = arith.constant 0.000000e+00 : bf16
    %360 = vector.broadcast %cst_148 : bf16 to vector<32x128xbf16>
    %361 = vector.shape_cast %359 : vector<1x128xi1> to vector<1x128xi1>
    %362 = vector.broadcast %361 : vector<1x128xi1> to vector<32x128xi1>
    %363 = arith.select %362, %340, %360 : vector<32x128xi1>, vector<32x128xbf16>
    %364 = vector.extract_strided_slice %262 {offsets = [0, 0], sizes = [32, 128], strides = [1, 1]} : vector<32x256xbf16> to vector<32x128xbf16>
    %c0_i32_149 = arith.constant 0 : i32
    %365 = vector.broadcast %c0_i32_149 : i32 to vector<1x128xi32>
    %366 = arith.addi %265, %365 : vector<1x128xi32>
    %c0_i32_150 = arith.constant 0 : i32
    %367 = vector.broadcast %c0_i32_150 : i32 to vector<1x128xi32>
    %368 = arith.cmpi sge, %366, %367 : vector<1x128xi32>
    %c0_i32_151 = arith.constant 0 : i32
    %369 = vector.broadcast %c0_i32_151 : i32 to vector<1x128xi32>
    %370 = arith.addi %265, %369 : vector<1x128xi32>
    %c4_i32_152 = arith.constant 4 : i32
    %371 = vector.broadcast %c4_i32_152 : i32 to vector<1x128xi32>
    %372 = arith.cmpi slt, %370, %371 : vector<1x128xi32>
    %373 = arith.andi %368, %372 : vector<1x128xi1>
    %c0_i32_153 = arith.constant 0 : i32
    %374 = vector.broadcast %c0_i32_153 : i32 to vector<1x128xi32>
    %375 = arith.addi %267, %374 : vector<1x128xi32>
    %c0_i32_154 = arith.constant 0 : i32
    %376 = vector.broadcast %c0_i32_154 : i32 to vector<1x128xi32>
    %377 = arith.cmpi sge, %375, %376 : vector<1x128xi32>
    %378 = arith.andi %373, %377 : vector<1x128xi1>
    %c0_i32_155 = arith.constant 0 : i32
    %379 = vector.broadcast %c0_i32_155 : i32 to vector<1x128xi32>
    %380 = arith.addi %267, %379 : vector<1x128xi32>
    %c4_i32_156 = arith.constant 4 : i32
    %381 = vector.broadcast %c4_i32_156 : i32 to vector<1x128xi32>
    %382 = arith.cmpi slt, %380, %381 : vector<1x128xi32>
    %383 = arith.andi %378, %382 : vector<1x128xi1>
    %cst_157 = arith.constant 0.000000e+00 : bf16
    %384 = vector.broadcast %cst_157 : bf16 to vector<32x128xbf16>
    %385 = vector.shape_cast %383 : vector<1x128xi1> to vector<1x128xi1>
    %386 = vector.broadcast %385 : vector<1x128xi1> to vector<32x128xi1>
    %387 = arith.select %386, %364, %384 : vector<32x128xi1>, vector<32x128xbf16>
    %388 = vector.extract_strided_slice %262 {offsets = [0, 1], sizes = [32, 128], strides = [1, 1]} : vector<32x256xbf16> to vector<32x128xbf16>
    %c0_i32_158 = arith.constant 0 : i32
    %389 = vector.broadcast %c0_i32_158 : i32 to vector<1x128xi32>
    %390 = arith.addi %265, %389 : vector<1x128xi32>
    %c0_i32_159 = arith.constant 0 : i32
    %391 = vector.broadcast %c0_i32_159 : i32 to vector<1x128xi32>
    %392 = arith.cmpi sge, %390, %391 : vector<1x128xi32>
    %c0_i32_160 = arith.constant 0 : i32
    %393 = vector.broadcast %c0_i32_160 : i32 to vector<1x128xi32>
    %394 = arith.addi %265, %393 : vector<1x128xi32>
    %c4_i32_161 = arith.constant 4 : i32
    %395 = vector.broadcast %c4_i32_161 : i32 to vector<1x128xi32>
    %396 = arith.cmpi slt, %394, %395 : vector<1x128xi32>
    %397 = arith.andi %392, %396 : vector<1x128xi1>
    %c1_i32_162 = arith.constant 1 : i32
    %398 = vector.broadcast %c1_i32_162 : i32 to vector<1x128xi32>
    %399 = arith.addi %267, %398 : vector<1x128xi32>
    %c0_i32_163 = arith.constant 0 : i32
    %400 = vector.broadcast %c0_i32_163 : i32 to vector<1x128xi32>
    %401 = arith.cmpi sge, %399, %400 : vector<1x128xi32>
    %402 = arith.andi %397, %401 : vector<1x128xi1>
    %c1_i32_164 = arith.constant 1 : i32
    %403 = vector.broadcast %c1_i32_164 : i32 to vector<1x128xi32>
    %404 = arith.addi %267, %403 : vector<1x128xi32>
    %c4_i32_165 = arith.constant 4 : i32
    %405 = vector.broadcast %c4_i32_165 : i32 to vector<1x128xi32>
    %406 = arith.cmpi slt, %404, %405 : vector<1x128xi32>
    %407 = arith.andi %402, %406 : vector<1x128xi1>
    %cst_166 = arith.constant 0.000000e+00 : bf16
    %408 = vector.broadcast %cst_166 : bf16 to vector<32x128xbf16>
    %409 = vector.shape_cast %407 : vector<1x128xi1> to vector<1x128xi1>
    %410 = vector.broadcast %409 : vector<1x128xi1> to vector<32x128xi1>
    %411 = arith.select %410, %388, %408 : vector<32x128xi1>, vector<32x128xbf16>
    %412 = vector.extract_strided_slice %262 {offsets = [0, 3], sizes = [32, 128], strides = [1, 1]} : vector<32x256xbf16> to vector<32x128xbf16>
    %c1_i32_167 = arith.constant 1 : i32
    %413 = vector.broadcast %c1_i32_167 : i32 to vector<1x128xi32>
    %414 = arith.addi %265, %413 : vector<1x128xi32>
    %c0_i32_168 = arith.constant 0 : i32
    %415 = vector.broadcast %c0_i32_168 : i32 to vector<1x128xi32>
    %416 = arith.cmpi sge, %414, %415 : vector<1x128xi32>
    %c1_i32_169 = arith.constant 1 : i32
    %417 = vector.broadcast %c1_i32_169 : i32 to vector<1x128xi32>
    %418 = arith.addi %265, %417 : vector<1x128xi32>
    %c4_i32_170 = arith.constant 4 : i32
    %419 = vector.broadcast %c4_i32_170 : i32 to vector<1x128xi32>
    %420 = arith.cmpi slt, %418, %419 : vector<1x128xi32>
    %421 = arith.andi %416, %420 : vector<1x128xi1>
    %c-1_i32_171 = arith.constant -1 : i32
    %422 = vector.broadcast %c-1_i32_171 : i32 to vector<1x128xi32>
    %423 = arith.addi %267, %422 : vector<1x128xi32>
    %c0_i32_172 = arith.constant 0 : i32
    %424 = vector.broadcast %c0_i32_172 : i32 to vector<1x128xi32>
    %425 = arith.cmpi sge, %423, %424 : vector<1x128xi32>
    %426 = arith.andi %421, %425 : vector<1x128xi1>
    %c-1_i32_173 = arith.constant -1 : i32
    %427 = vector.broadcast %c-1_i32_173 : i32 to vector<1x128xi32>
    %428 = arith.addi %267, %427 : vector<1x128xi32>
    %c4_i32_174 = arith.constant 4 : i32
    %429 = vector.broadcast %c4_i32_174 : i32 to vector<1x128xi32>
    %430 = arith.cmpi slt, %428, %429 : vector<1x128xi32>
    %431 = arith.andi %426, %430 : vector<1x128xi1>
    %cst_175 = arith.constant 0.000000e+00 : bf16
    %432 = vector.broadcast %cst_175 : bf16 to vector<32x128xbf16>
    %433 = vector.shape_cast %431 : vector<1x128xi1> to vector<1x128xi1>
    %434 = vector.broadcast %433 : vector<1x128xi1> to vector<32x128xi1>
    %435 = arith.select %434, %412, %432 : vector<32x128xi1>, vector<32x128xbf16>
    %436 = vector.extract_strided_slice %262 {offsets = [0, 4], sizes = [32, 128], strides = [1, 1]} : vector<32x256xbf16> to vector<32x128xbf16>
    %c1_i32_176 = arith.constant 1 : i32
    %437 = vector.broadcast %c1_i32_176 : i32 to vector<1x128xi32>
    %438 = arith.addi %265, %437 : vector<1x128xi32>
    %c0_i32_177 = arith.constant 0 : i32
    %439 = vector.broadcast %c0_i32_177 : i32 to vector<1x128xi32>
    %440 = arith.cmpi sge, %438, %439 : vector<1x128xi32>
    %c1_i32_178 = arith.constant 1 : i32
    %441 = vector.broadcast %c1_i32_178 : i32 to vector<1x128xi32>
    %442 = arith.addi %265, %441 : vector<1x128xi32>
    %c4_i32_179 = arith.constant 4 : i32
    %443 = vector.broadcast %c4_i32_179 : i32 to vector<1x128xi32>
    %444 = arith.cmpi slt, %442, %443 : vector<1x128xi32>
    %445 = arith.andi %440, %444 : vector<1x128xi1>
    %c0_i32_180 = arith.constant 0 : i32
    %446 = vector.broadcast %c0_i32_180 : i32 to vector<1x128xi32>
    %447 = arith.addi %267, %446 : vector<1x128xi32>
    %c0_i32_181 = arith.constant 0 : i32
    %448 = vector.broadcast %c0_i32_181 : i32 to vector<1x128xi32>
    %449 = arith.cmpi sge, %447, %448 : vector<1x128xi32>
    %450 = arith.andi %445, %449 : vector<1x128xi1>
    %c0_i32_182 = arith.constant 0 : i32
    %451 = vector.broadcast %c0_i32_182 : i32 to vector<1x128xi32>
    %452 = arith.addi %267, %451 : vector<1x128xi32>
    %c4_i32_183 = arith.constant 4 : i32
    %453 = vector.broadcast %c4_i32_183 : i32 to vector<1x128xi32>
    %454 = arith.cmpi slt, %452, %453 : vector<1x128xi32>
    %455 = arith.andi %450, %454 : vector<1x128xi1>
    %cst_184 = arith.constant 0.000000e+00 : bf16
    %456 = vector.broadcast %cst_184 : bf16 to vector<32x128xbf16>
    %457 = vector.shape_cast %455 : vector<1x128xi1> to vector<1x128xi1>
    %458 = vector.broadcast %457 : vector<1x128xi1> to vector<32x128xi1>
    %459 = arith.select %458, %436, %456 : vector<32x128xi1>, vector<32x128xbf16>
    %460 = vector.extract_strided_slice %262 {offsets = [0, 5], sizes = [32, 128], strides = [1, 1]} : vector<32x256xbf16> to vector<32x128xbf16>
    %c1_i32_185 = arith.constant 1 : i32
    %461 = vector.broadcast %c1_i32_185 : i32 to vector<1x128xi32>
    %462 = arith.addi %265, %461 : vector<1x128xi32>
    %c0_i32_186 = arith.constant 0 : i32
    %463 = vector.broadcast %c0_i32_186 : i32 to vector<1x128xi32>
    %464 = arith.cmpi sge, %462, %463 : vector<1x128xi32>
    %c1_i32_187 = arith.constant 1 : i32
    %465 = vector.broadcast %c1_i32_187 : i32 to vector<1x128xi32>
    %466 = arith.addi %265, %465 : vector<1x128xi32>
    %c4_i32_188 = arith.constant 4 : i32
    %467 = vector.broadcast %c4_i32_188 : i32 to vector<1x128xi32>
    %468 = arith.cmpi slt, %466, %467 : vector<1x128xi32>
    %469 = arith.andi %464, %468 : vector<1x128xi1>
    %c1_i32_189 = arith.constant 1 : i32
    %470 = vector.broadcast %c1_i32_189 : i32 to vector<1x128xi32>
    %471 = arith.addi %267, %470 : vector<1x128xi32>
    %c0_i32_190 = arith.constant 0 : i32
    %472 = vector.broadcast %c0_i32_190 : i32 to vector<1x128xi32>
    %473 = arith.cmpi sge, %471, %472 : vector<1x128xi32>
    %474 = arith.andi %469, %473 : vector<1x128xi1>
    %c1_i32_191 = arith.constant 1 : i32
    %475 = vector.broadcast %c1_i32_191 : i32 to vector<1x128xi32>
    %476 = arith.addi %267, %475 : vector<1x128xi32>
    %c4_i32_192 = arith.constant 4 : i32
    %477 = vector.broadcast %c4_i32_192 : i32 to vector<1x128xi32>
    %478 = arith.cmpi slt, %476, %477 : vector<1x128xi32>
    %479 = arith.andi %474, %478 : vector<1x128xi1>
    %cst_193 = arith.constant 0.000000e+00 : bf16
    %480 = vector.broadcast %cst_193 : bf16 to vector<32x128xbf16>
    %481 = vector.shape_cast %479 : vector<1x128xi1> to vector<1x128xi1>
    %482 = vector.broadcast %481 : vector<1x128xi1> to vector<32x128xi1>
    %483 = arith.select %482, %460, %480 : vector<32x128xi1>, vector<32x128xbf16>
    %484 = tpu.concatenate %291, %315, %339, %363, %387, %411, %435, %459, %483 in 0 : vector<32x128xbf16>, vector<32x128xbf16>, vector<32x128xbf16>, vector<32x128xbf16>, vector<32x128xbf16>, vector<32x128xbf16>, vector<32x128xbf16>, vector<32x128xbf16>, vector<32x128xbf16> -> vector<288x128xbf16>
    %c0_194 = arith.constant 0 : index
    %c0_195 = arith.constant 0 : index
    %485 = vector.load %arg22[%c0_194, %c0_195] : memref<32x288xbf16, #tpu.memory_space<vmem>>, vector<32x288xbf16>
    %cst_196 = arith.constant dense<0.000000e+00> : vector<32x128xf32>
    %486 = tpu.matmul %485, %484, %cst_196 {dimension_numbers = #tpu.dot_dimension_numbers<[1], [0], [0], [1], [0, 0, 1, 1], [], []>} : vector<32x288xbf16>, vector<288x128xbf16>, vector<32x128xf32> -> vector<32x128xf32>
    %c0_197 = arith.constant 0 : index
    %c0_198 = arith.constant 0 : index
    %487 = vector.load %arg23[%c0_197, %c0_198] : memref<32x1xf32, #tpu.memory_space<vmem>>, vector<32x1xf32>
    %488 = vector.broadcast %487 : vector<32x1xf32> to vector<32x128xf32>
    %489 = arith.addf %486, %488 : vector<32x128xf32>
    %490 = vector.extract_strided_slice %489 {offsets = [0, 0], sizes = [32, 16], strides = [1, 1]} : vector<32x128xf32> to vector<32x16xf32>
    %c0_199 = arith.constant 0 : index
    %c0_200 = arith.constant 0 : index
    %c0_201 = arith.constant 0 : index
    %491 = vector.load %arg30[%c0_199, %c0_200, %c0_201] : memref<1x32x16xf32, #tpu.memory_space<vmem>>, vector<1x32x16xf32>
    %492 = vector.shape_cast %491 : vector<1x32x16xf32> to vector<32x16xf32>
    %493 = vector.shape_cast %490 : vector<32x16xf32> to vector<1x32x16xf32>
    tpu.vector_store %arg30[%c0_199, %c0_200, %c0_201], %493 {strides = array<i32>} : memref<1x32x16xf32, #tpu.memory_space<vmem>>, vector<1x32x16xf32>,
    %c0_202 = arith.constant 0 : index
    %c0_203 = arith.constant 0 : index
    %c0_204 = arith.constant 0 : index
    %494 = vector.load %arg3[%c0_202, %c0_203, %c0_204] : memref<1x3x128xbf16, #tpu.memory_space<vmem>>, vector<1x3x128xbf16>
    %495 = vector.shape_cast %494 : vector<1x3x128xbf16> to vector<3x128xbf16>
    %c0_205 = arith.constant 0 : index
    %c0_206 = arith.constant 0 : index
    %496 = vector.load %arg7[%c0_205, %c0_206] : memref<32x3xbf16, #tpu.memory_space<vmem>>, vector<32x3xbf16>
    %cst_207 = arith.constant dense<0.000000e+00> : vector<32x128xf32>
    %497 = tpu.matmul %496, %495, %cst_207 {dimension_numbers = #tpu.dot_dimension_numbers<[1], [0], [0], [1], [0, 0, 1, 1], [], []>} : vector<32x3xbf16>, vector<3x128xbf16>, vector<32x128xf32> -> vector<32x128xf32>
    %c0_208 = arith.constant 0 : index
    %c0_209 = arith.constant 0 : index
    %498 = vector.load %arg13[%c0_208, %c0_209] : memref<32x32xbf16, #tpu.memory_space<vmem>>, vector<32x32xbf16>
    %499 = arith.truncf %497 : vector<32x128xf32> to vector<32x128xbf16>
    %cst_210 = arith.constant dense<0.000000e+00> : vector<32x128xf32>
    %500 = tpu.matmul %498, %499, %cst_210 {dimension_numbers = #tpu.dot_dimension_numbers<[1], [0], [0], [1], [0, 0, 1, 1], [], []>} : vector<32x32xbf16>, vector<32x128xbf16>, vector<32x128xf32> -> vector<32x128xf32>
    %c0_211 = arith.constant 0 : index
    %c0_212 = arith.constant 0 : index
    %501 = vector.load %arg14[%c0_211, %c0_212] : memref<32x1xf32, #tpu.memory_space<vmem>>, vector<32x1xf32>
    %502 = vector.broadcast %501 : vector<32x1xf32> to vector<32x128xf32>
    %503 = arith.addf %500, %502 : vector<32x128xf32>
    %504 = arith.truncf %260 : vector<32x128xf32> to vector<32x128xbf16>
    %c0_213 = arith.constant 0 : index
    %c0_214 = arith.constant 0 : index
    %505 = vector.load %arg18[%c0_213, %c0_214] : memref<128x128xbf16, #tpu.memory_space<vmem>>, vector<128x128xbf16>
    %cst_215 = arith.constant dense<0.000000e+00> : vector<32x128xf32>
    %506 = tpu.matmul %504, %505, %cst_215 {dimension_numbers = #tpu.dot_dimension_numbers<[1], [0], [0], [1], [0, 0, 1, 1], [], []>} : vector<32x128xbf16>, vector<128x128xbf16>, vector<32x128xf32> -> vector<32x128xf32>
    %507 = arith.addf %503, %506 : vector<32x128xf32>
    %508 = arith.truncf %507 : vector<32x128xf32> to vector<32x128xbf16>
    %509 = tpu.concatenate %508, %508 in 1 : vector<32x128xbf16>, vector<32x128xbf16> -> vector<32x256xbf16>
    %510 = tpu.iota {dimensions = array<i32: 1>} : vector<1x128xi32>
    %c3_i32_216 = arith.constant 3 : i32
    %511 = vector.broadcast %c3_i32_216 : i32 to vector<1x128xi32>
    %512 = arith.shrsi %510, %511 : vector<1x128xi32>
    %c7_i32 = arith.constant 7 : i32
    %513 = vector.broadcast %c7_i32 : i32 to vector<1x128xi32>
    %514 = arith.andi %510, %513 : vector<1x128xi32>
    %515 = vector.extract_strided_slice %509 {offsets = [0, 119], sizes = [32, 128], strides = [1, 1]} : vector<32x256xbf16> to vector<32x128xbf16>
    %c-1_i32_217 = arith.constant -1 : i32
    %516 = vector.broadcast %c-1_i32_217 : i32 to vector<1x128xi32>
    %517 = arith.addi %512, %516 : vector<1x128xi32>
    %c0_i32_218 = arith.constant 0 : i32
    %518 = vector.broadcast %c0_i32_218 : i32 to vector<1x128xi32>
    %519 = arith.cmpi sge, %517, %518 : vector<1x128xi32>
    %c-1_i32_219 = arith.constant -1 : i32
    %520 = vector.broadcast %c-1_i32_219 : i32 to vector<1x128xi32>
    %521 = arith.addi %512, %520 : vector<1x128xi32>
    %c8_i32 = arith.constant 8 : i32
    %522 = vector.broadcast %c8_i32 : i32 to vector<1x128xi32>
    %523 = arith.cmpi slt, %521, %522 : vector<1x128xi32>
    %524 = arith.andi %519, %523 : vector<1x128xi1>
    %c-1_i32_220 = arith.constant -1 : i32
    %525 = vector.broadcast %c-1_i32_220 : i32 to vector<1x128xi32>
    %526 = arith.addi %514, %525 : vector<1x128xi32>
    %c0_i32_221 = arith.constant 0 : i32
    %527 = vector.broadcast %c0_i32_221 : i32 to vector<1x128xi32>
    %528 = arith.cmpi sge, %526, %527 : vector<1x128xi32>
    %529 = arith.andi %524, %528 : vector<1x128xi1>
    %c-1_i32_222 = arith.constant -1 : i32
    %530 = vector.broadcast %c-1_i32_222 : i32 to vector<1x128xi32>
    %531 = arith.addi %514, %530 : vector<1x128xi32>
    %c8_i32_223 = arith.constant 8 : i32
    %532 = vector.broadcast %c8_i32_223 : i32 to vector<1x128xi32>
    %533 = arith.cmpi slt, %531, %532 : vector<1x128xi32>
    %534 = arith.andi %529, %533 : vector<1x128xi1>
    %cst_224 = arith.constant 0.000000e+00 : bf16
    %535 = vector.broadcast %cst_224 : bf16 to vector<32x128xbf16>
    %536 = vector.shape_cast %534 : vector<1x128xi1> to vector<1x128xi1>
    %537 = vector.broadcast %536 : vector<1x128xi1> to vector<32x128xi1>
    %538 = arith.select %537, %515, %535 : vector<32x128xi1>, vector<32x128xbf16>
    %539 = vector.extract_strided_slice %509 {offsets = [0, 120], sizes = [32, 128], strides = [1, 1]} : vector<32x256xbf16> to vector<32x128xbf16>
    %c-1_i32_225 = arith.constant -1 : i32
    %540 = vector.broadcast %c-1_i32_225 : i32 to vector<1x128xi32>
    %541 = arith.addi %512, %540 : vector<1x128xi32>
    %c0_i32_226 = arith.constant 0 : i32
    %542 = vector.broadcast %c0_i32_226 : i32 to vector<1x128xi32>
    %543 = arith.cmpi sge, %541, %542 : vector<1x128xi32>
    %c-1_i32_227 = arith.constant -1 : i32
    %544 = vector.broadcast %c-1_i32_227 : i32 to vector<1x128xi32>
    %545 = arith.addi %512, %544 : vector<1x128xi32>
    %c8_i32_228 = arith.constant 8 : i32
    %546 = vector.broadcast %c8_i32_228 : i32 to vector<1x128xi32>
    %547 = arith.cmpi slt, %545, %546 : vector<1x128xi32>
    %548 = arith.andi %543, %547 : vector<1x128xi1>
    %c0_i32_229 = arith.constant 0 : i32
    %549 = vector.broadcast %c0_i32_229 : i32 to vector<1x128xi32>
    %550 = arith.addi %514, %549 : vector<1x128xi32>
    %c0_i32_230 = arith.constant 0 : i32
    %551 = vector.broadcast %c0_i32_230 : i32 to vector<1x128xi32>
    %552 = arith.cmpi sge, %550, %551 : vector<1x128xi32>
    %553 = arith.andi %548, %552 : vector<1x128xi1>
    %c0_i32_231 = arith.constant 0 : i32
    %554 = vector.broadcast %c0_i32_231 : i32 to vector<1x128xi32>
    %555 = arith.addi %514, %554 : vector<1x128xi32>
    %c8_i32_232 = arith.constant 8 : i32
    %556 = vector.broadcast %c8_i32_232 : i32 to vector<1x128xi32>
    %557 = arith.cmpi slt, %555, %556 : vector<1x128xi32>
    %558 = arith.andi %553, %557 : vector<1x128xi1>
    %cst_233 = arith.constant 0.000000e+00 : bf16
    %559 = vector.broadcast %cst_233 : bf16 to vector<32x128xbf16>
    %560 = vector.shape_cast %558 : vector<1x128xi1> to vector<1x128xi1>
    %561 = vector.broadcast %560 : vector<1x128xi1> to vector<32x128xi1>
    %562 = arith.select %561, %539, %559 : vector<32x128xi1>, vector<32x128xbf16>
    %563 = vector.extract_strided_slice %509 {offsets = [0, 121], sizes = [32, 128], strides = [1, 1]} : vector<32x256xbf16> to vector<32x128xbf16>
    %c-1_i32_234 = arith.constant -1 : i32
    %564 = vector.broadcast %c-1_i32_234 : i32 to vector<1x128xi32>
    %565 = arith.addi %512, %564 : vector<1x128xi32>
    %c0_i32_235 = arith.constant 0 : i32
    %566 = vector.broadcast %c0_i32_235 : i32 to vector<1x128xi32>
    %567 = arith.cmpi sge, %565, %566 : vector<1x128xi32>
    %c-1_i32_236 = arith.constant -1 : i32
    %568 = vector.broadcast %c-1_i32_236 : i32 to vector<1x128xi32>
    %569 = arith.addi %512, %568 : vector<1x128xi32>
    %c8_i32_237 = arith.constant 8 : i32
    %570 = vector.broadcast %c8_i32_237 : i32 to vector<1x128xi32>
    %571 = arith.cmpi slt, %569, %570 : vector<1x128xi32>
    %572 = arith.andi %567, %571 : vector<1x128xi1>
    %c1_i32_238 = arith.constant 1 : i32
    %573 = vector.broadcast %c1_i32_238 : i32 to vector<1x128xi32>
    %574 = arith.addi %514, %573 : vector<1x128xi32>
    %c0_i32_239 = arith.constant 0 : i32
    %575 = vector.broadcast %c0_i32_239 : i32 to vector<1x128xi32>
    %576 = arith.cmpi sge, %574, %575 : vector<1x128xi32>
    %577 = arith.andi %572, %576 : vector<1x128xi1>
    %c1_i32_240 = arith.constant 1 : i32
    %578 = vector.broadcast %c1_i32_240 : i32 to vector<1x128xi32>
    %579 = arith.addi %514, %578 : vector<1x128xi32>
    %c8_i32_241 = arith.constant 8 : i32
    %580 = vector.broadcast %c8_i32_241 : i32 to vector<1x128xi32>
    %581 = arith.cmpi slt, %579, %580 : vector<1x128xi32>
    %582 = arith.andi %577, %581 : vector<1x128xi1>
    %cst_242 = arith.constant 0.000000e+00 : bf16
    %583 = vector.broadcast %cst_242 : bf16 to vector<32x128xbf16>
    %584 = vector.shape_cast %582 : vector<1x128xi1> to vector<1x128xi1>
    %585 = vector.broadcast %584 : vector<1x128xi1> to vector<32x128xi1>
    %586 = arith.select %585, %563, %583 : vector<32x128xi1>, vector<32x128xbf16>
    %587 = vector.extract_strided_slice %509 {offsets = [0, 127], sizes = [32, 128], strides = [1, 1]} : vector<32x256xbf16> to vector<32x128xbf16>
    %c0_i32_243 = arith.constant 0 : i32
    %588 = vector.broadcast %c0_i32_243 : i32 to vector<1x128xi32>
    %589 = arith.addi %512, %588 : vector<1x128xi32>
    %c0_i32_244 = arith.constant 0 : i32
    %590 = vector.broadcast %c0_i32_244 : i32 to vector<1x128xi32>
    %591 = arith.cmpi sge, %589, %590 : vector<1x128xi32>
    %c0_i32_245 = arith.constant 0 : i32
    %592 = vector.broadcast %c0_i32_245 : i32 to vector<1x128xi32>
    %593 = arith.addi %512, %592 : vector<1x128xi32>
    %c8_i32_246 = arith.constant 8 : i32
    %594 = vector.broadcast %c8_i32_246 : i32 to vector<1x128xi32>
    %595 = arith.cmpi slt, %593, %594 : vector<1x128xi32>
    %596 = arith.andi %591, %595 : vector<1x128xi1>
    %c-1_i32_247 = arith.constant -1 : i32
    %597 = vector.broadcast %c-1_i32_247 : i32 to vector<1x128xi32>
    %598 = arith.addi %514, %597 : vector<1x128xi32>
    %c0_i32_248 = arith.constant 0 : i32
    %599 = vector.broadcast %c0_i32_248 : i32 to vector<1x128xi32>
    %600 = arith.cmpi sge, %598, %599 : vector<1x128xi32>
    %601 = arith.andi %596, %600 : vector<1x128xi1>
    %c-1_i32_249 = arith.constant -1 : i32
    %602 = vector.broadcast %c-1_i32_249 : i32 to vector<1x128xi32>
    %603 = arith.addi %514, %602 : vector<1x128xi32>
    %c8_i32_250 = arith.constant 8 : i32
    %604 = vector.broadcast %c8_i32_250 : i32 to vector<1x128xi32>
    %605 = arith.cmpi slt, %603, %604 : vector<1x128xi32>
    %606 = arith.andi %601, %605 : vector<1x128xi1>
    %cst_251 = arith.constant 0.000000e+00 : bf16
    %607 = vector.broadcast %cst_251 : bf16 to vector<32x128xbf16>
    %608 = vector.shape_cast %606 : vector<1x128xi1> to vector<1x128xi1>
    %609 = vector.broadcast %608 : vector<1x128xi1> to vector<32x128xi1>
    %610 = arith.select %609, %587, %607 : vector<32x128xi1>, vector<32x128xbf16>
    %611 = vector.extract_strided_slice %509 {offsets = [0, 0], sizes = [32, 128], strides = [1, 1]} : vector<32x256xbf16> to vector<32x128xbf16>
    %c0_i32_252 = arith.constant 0 : i32
    %612 = vector.broadcast %c0_i32_252 : i32 to vector<1x128xi32>
    %613 = arith.addi %512, %612 : vector<1x128xi32>
    %c0_i32_253 = arith.constant 0 : i32
    %614 = vector.broadcast %c0_i32_253 : i32 to vector<1x128xi32>
    %615 = arith.cmpi sge, %613, %614 : vector<1x128xi32>
    %c0_i32_254 = arith.constant 0 : i32
    %616 = vector.broadcast %c0_i32_254 : i32 to vector<1x128xi32>
    %617 = arith.addi %512, %616 : vector<1x128xi32>
    %c8_i32_255 = arith.constant 8 : i32
    %618 = vector.broadcast %c8_i32_255 : i32 to vector<1x128xi32>
    %619 = arith.cmpi slt, %617, %618 : vector<1x128xi32>
    %620 = arith.andi %615, %619 : vector<1x128xi1>
    %c0_i32_256 = arith.constant 0 : i32
    %621 = vector.broadcast %c0_i32_256 : i32 to vector<1x128xi32>
    %622 = arith.addi %514, %621 : vector<1x128xi32>
    %c0_i32_257 = arith.constant 0 : i32
    %623 = vector.broadcast %c0_i32_257 : i32 to vector<1x128xi32>
    %624 = arith.cmpi sge, %622, %623 : vector<1x128xi32>
    %625 = arith.andi %620, %624 : vector<1x128xi1>
    %c0_i32_258 = arith.constant 0 : i32
    %626 = vector.broadcast %c0_i32_258 : i32 to vector<1x128xi32>
    %627 = arith.addi %514, %626 : vector<1x128xi32>
    %c8_i32_259 = arith.constant 8 : i32
    %628 = vector.broadcast %c8_i32_259 : i32 to vector<1x128xi32>
    %629 = arith.cmpi slt, %627, %628 : vector<1x128xi32>
    %630 = arith.andi %625, %629 : vector<1x128xi1>
    %cst_260 = arith.constant 0.000000e+00 : bf16
    %631 = vector.broadcast %cst_260 : bf16 to vector<32x128xbf16>
    %632 = vector.shape_cast %630 : vector<1x128xi1> to vector<1x128xi1>
    %633 = vector.broadcast %632 : vector<1x128xi1> to vector<32x128xi1>
    %634 = arith.select %633, %611, %631 : vector<32x128xi1>, vector<32x128xbf16>
    %635 = vector.extract_strided_slice %509 {offsets = [0, 1], sizes = [32, 128], strides = [1, 1]} : vector<32x256xbf16> to vector<32x128xbf16>
    %c0_i32_261 = arith.constant 0 : i32
    %636 = vector.broadcast %c0_i32_261 : i32 to vector<1x128xi32>
    %637 = arith.addi %512, %636 : vector<1x128xi32>
    %c0_i32_262 = arith.constant 0 : i32
    %638 = vector.broadcast %c0_i32_262 : i32 to vector<1x128xi32>
    %639 = arith.cmpi sge, %637, %638 : vector<1x128xi32>
    %c0_i32_263 = arith.constant 0 : i32
    %640 = vector.broadcast %c0_i32_263 : i32 to vector<1x128xi32>
    %641 = arith.addi %512, %640 : vector<1x128xi32>
    %c8_i32_264 = arith.constant 8 : i32
    %642 = vector.broadcast %c8_i32_264 : i32 to vector<1x128xi32>
    %643 = arith.cmpi slt, %641, %642 : vector<1x128xi32>
    %644 = arith.andi %639, %643 : vector<1x128xi1>
    %c1_i32_265 = arith.constant 1 : i32
    %645 = vector.broadcast %c1_i32_265 : i32 to vector<1x128xi32>
    %646 = arith.addi %514, %645 : vector<1x128xi32>
    %c0_i32_266 = arith.constant 0 : i32
    %647 = vector.broadcast %c0_i32_266 : i32 to vector<1x128xi32>
    %648 = arith.cmpi sge, %646, %647 : vector<1x128xi32>
    %649 = arith.andi %644, %648 : vector<1x128xi1>
    %c1_i32_267 = arith.constant 1 : i32
    %650 = vector.broadcast %c1_i32_267 : i32 to vector<1x128xi32>
    %651 = arith.addi %514, %650 : vector<1x128xi32>
    %c8_i32_268 = arith.constant 8 : i32
    %652 = vector.broadcast %c8_i32_268 : i32 to vector<1x128xi32>
    %653 = arith.cmpi slt, %651, %652 : vector<1x128xi32>
    %654 = arith.andi %649, %653 : vector<1x128xi1>
    %cst_269 = arith.constant 0.000000e+00 : bf16
    %655 = vector.broadcast %cst_269 : bf16 to vector<32x128xbf16>
    %656 = vector.shape_cast %654 : vector<1x128xi1> to vector<1x128xi1>
    %657 = vector.broadcast %656 : vector<1x128xi1> to vector<32x128xi1>
    %658 = arith.select %657, %635, %655 : vector<32x128xi1>, vector<32x128xbf16>
    %659 = vector.extract_strided_slice %509 {offsets = [0, 7], sizes = [32, 128], strides = [1, 1]} : vector<32x256xbf16> to vector<32x128xbf16>
    %c1_i32_270 = arith.constant 1 : i32
    %660 = vector.broadcast %c1_i32_270 : i32 to vector<1x128xi32>
    %661 = arith.addi %512, %660 : vector<1x128xi32>
    %c0_i32_271 = arith.constant 0 : i32
    %662 = vector.broadcast %c0_i32_271 : i32 to vector<1x128xi32>
    %663 = arith.cmpi sge, %661, %662 : vector<1x128xi32>
    %c1_i32_272 = arith.constant 1 : i32
    %664 = vector.broadcast %c1_i32_272 : i32 to vector<1x128xi32>
    %665 = arith.addi %512, %664 : vector<1x128xi32>
    %c8_i32_273 = arith.constant 8 : i32
    %666 = vector.broadcast %c8_i32_273 : i32 to vector<1x128xi32>
    %667 = arith.cmpi slt, %665, %666 : vector<1x128xi32>
    %668 = arith.andi %663, %667 : vector<1x128xi1>
    %c-1_i32_274 = arith.constant -1 : i32
    %669 = vector.broadcast %c-1_i32_274 : i32 to vector<1x128xi32>
    %670 = arith.addi %514, %669 : vector<1x128xi32>
    %c0_i32_275 = arith.constant 0 : i32
    %671 = vector.broadcast %c0_i32_275 : i32 to vector<1x128xi32>
    %672 = arith.cmpi sge, %670, %671 : vector<1x128xi32>
    %673 = arith.andi %668, %672 : vector<1x128xi1>
    %c-1_i32_276 = arith.constant -1 : i32
    %674 = vector.broadcast %c-1_i32_276 : i32 to vector<1x128xi32>
    %675 = arith.addi %514, %674 : vector<1x128xi32>
    %c8_i32_277 = arith.constant 8 : i32
    %676 = vector.broadcast %c8_i32_277 : i32 to vector<1x128xi32>
    %677 = arith.cmpi slt, %675, %676 : vector<1x128xi32>
    %678 = arith.andi %673, %677 : vector<1x128xi1>
    %cst_278 = arith.constant 0.000000e+00 : bf16
    %679 = vector.broadcast %cst_278 : bf16 to vector<32x128xbf16>
    %680 = vector.shape_cast %678 : vector<1x128xi1> to vector<1x128xi1>
    %681 = vector.broadcast %680 : vector<1x128xi1> to vector<32x128xi1>
    %682 = arith.select %681, %659, %679 : vector<32x128xi1>, vector<32x128xbf16>
    %683 = vector.extract_strided_slice %509 {offsets = [0, 8], sizes = [32, 128], strides = [1, 1]} : vector<32x256xbf16> to vector<32x128xbf16>
    %c1_i32_279 = arith.constant 1 : i32
    %684 = vector.broadcast %c1_i32_279 : i32 to vector<1x128xi32>
    %685 = arith.addi %512, %684 : vector<1x128xi32>
    %c0_i32_280 = arith.constant 0 : i32
    %686 = vector.broadcast %c0_i32_280 : i32 to vector<1x128xi32>
    %687 = arith.cmpi sge, %685, %686 : vector<1x128xi32>
    %c1_i32_281 = arith.constant 1 : i32
    %688 = vector.broadcast %c1_i32_281 : i32 to vector<1x128xi32>
    %689 = arith.addi %512, %688 : vector<1x128xi32>
    %c8_i32_282 = arith.constant 8 : i32
    %690 = vector.broadcast %c8_i32_282 : i32 to vector<1x128xi32>
    %691 = arith.cmpi slt, %689, %690 : vector<1x128xi32>
    %692 = arith.andi %687, %691 : vector<1x128xi1>
    %c0_i32_283 = arith.constant 0 : i32
    %693 = vector.broadcast %c0_i32_283 : i32 to vector<1x128xi32>
    %694 = arith.addi %514, %693 : vector<1x128xi32>
    %c0_i32_284 = arith.constant 0 : i32
    %695 = vector.broadcast %c0_i32_284 : i32 to vector<1x128xi32>
    %696 = arith.cmpi sge, %694, %695 : vector<1x128xi32>
    %697 = arith.andi %692, %696 : vector<1x128xi1>
    %c0_i32_285 = arith.constant 0 : i32
    %698 = vector.broadcast %c0_i32_285 : i32 to vector<1x128xi32>
    %699 = arith.addi %514, %698 : vector<1x128xi32>
    %c8_i32_286 = arith.constant 8 : i32
    %700 = vector.broadcast %c8_i32_286 : i32 to vector<1x128xi32>
    %701 = arith.cmpi slt, %699, %700 : vector<1x128xi32>
    %702 = arith.andi %697, %701 : vector<1x128xi1>
    %cst_287 = arith.constant 0.000000e+00 : bf16
    %703 = vector.broadcast %cst_287 : bf16 to vector<32x128xbf16>
    %704 = vector.shape_cast %702 : vector<1x128xi1> to vector<1x128xi1>
    %705 = vector.broadcast %704 : vector<1x128xi1> to vector<32x128xi1>
    %706 = arith.select %705, %683, %703 : vector<32x128xi1>, vector<32x128xbf16>
    %707 = vector.extract_strided_slice %509 {offsets = [0, 9], sizes = [32, 128], strides = [1, 1]} : vector<32x256xbf16> to vector<32x128xbf16>
    %c1_i32_288 = arith.constant 1 : i32
    %708 = vector.broadcast %c1_i32_288 : i32 to vector<1x128xi32>
    %709 = arith.addi %512, %708 : vector<1x128xi32>
    %c0_i32_289 = arith.constant 0 : i32
    %710 = vector.broadcast %c0_i32_289 : i32 to vector<1x128xi32>
    %711 = arith.cmpi sge, %709, %710 : vector<1x128xi32>
    %c1_i32_290 = arith.constant 1 : i32
    %712 = vector.broadcast %c1_i32_290 : i32 to vector<1x128xi32>
    %713 = arith.addi %512, %712 : vector<1x128xi32>
    %c8_i32_291 = arith.constant 8 : i32
    %714 = vector.broadcast %c8_i32_291 : i32 to vector<1x128xi32>
    %715 = arith.cmpi slt, %713, %714 : vector<1x128xi32>
    %716 = arith.andi %711, %715 : vector<1x128xi1>
    %c1_i32_292 = arith.constant 1 : i32
    %717 = vector.broadcast %c1_i32_292 : i32 to vector<1x128xi32>
    %718 = arith.addi %514, %717 : vector<1x128xi32>
    %c0_i32_293 = arith.constant 0 : i32
    %719 = vector.broadcast %c0_i32_293 : i32 to vector<1x128xi32>
    %720 = arith.cmpi sge, %718, %719 : vector<1x128xi32>
    %721 = arith.andi %716, %720 : vector<1x128xi1>
    %c1_i32_294 = arith.constant 1 : i32
    %722 = vector.broadcast %c1_i32_294 : i32 to vector<1x128xi32>
    %723 = arith.addi %514, %722 : vector<1x128xi32>
    %c8_i32_295 = arith.constant 8 : i32
    %724 = vector.broadcast %c8_i32_295 : i32 to vector<1x128xi32>
    %725 = arith.cmpi slt, %723, %724 : vector<1x128xi32>
    %726 = arith.andi %721, %725 : vector<1x128xi1>
    %cst_296 = arith.constant 0.000000e+00 : bf16
    %727 = vector.broadcast %cst_296 : bf16 to vector<32x128xbf16>
    %728 = vector.shape_cast %726 : vector<1x128xi1> to vector<1x128xi1>
    %729 = vector.broadcast %728 : vector<1x128xi1> to vector<32x128xi1>
    %730 = arith.select %729, %707, %727 : vector<32x128xi1>, vector<32x128xbf16>
    %731 = tpu.concatenate %538, %562, %586, %610, %634, %658, %682, %706, %730 in 0 : vector<32x128xbf16>, vector<32x128xbf16>, vector<32x128xbf16>, vector<32x128xbf16>, vector<32x128xbf16>, vector<32x128xbf16>, vector<32x128xbf16>, vector<32x128xbf16>, vector<32x128xbf16> -> vector<288x128xbf16>
    %c0_297 = arith.constant 0 : index
    %c0_298 = arith.constant 0 : index
    %732 = vector.load %arg24[%c0_297, %c0_298] : memref<32x288xbf16, #tpu.memory_space<vmem>>, vector<32x288xbf16>
    %cst_299 = arith.constant dense<0.000000e+00> : vector<32x128xf32>
    %733 = tpu.matmul %732, %731, %cst_299 {dimension_numbers = #tpu.dot_dimension_numbers<[1], [0], [0], [1], [0, 0, 1, 1], [], []>} : vector<32x288xbf16>, vector<288x128xbf16>, vector<32x128xf32> -> vector<32x128xf32>
    %c0_300 = arith.constant 0 : index
    %c0_301 = arith.constant 0 : index
    %734 = vector.load %arg25[%c0_300, %c0_301] : memref<32x1xf32, #tpu.memory_space<vmem>>, vector<32x1xf32>
    %735 = vector.broadcast %734 : vector<32x1xf32> to vector<32x128xf32>
    %736 = arith.addf %733, %735 : vector<32x128xf32>
    %737 = vector.extract_strided_slice %736 {offsets = [0, 0], sizes = [32, 64], strides = [1, 1]} : vector<32x128xf32> to vector<32x64xf32>
    %c0_302 = arith.constant 0 : index
    %c0_303 = arith.constant 0 : index
    %c0_304 = arith.constant 0 : index
    %738 = vector.load %arg31[%c0_302, %c0_303, %c0_304] : memref<1x32x64xf32, #tpu.memory_space<vmem>>, vector<1x32x64xf32>
    %739 = vector.shape_cast %738 : vector<1x32x64xf32> to vector<32x64xf32>
    %740 = vector.shape_cast %737 : vector<32x64xf32> to vector<1x32x64xf32>
    tpu.vector_store %arg31[%c0_302, %c0_303, %c0_304], %740 {strides = array<i32>} : memref<1x32x64xf32, #tpu.memory_space<vmem>>, vector<1x32x64xf32>,
    %c0_305 = arith.constant 0 : index
    %c0_306 = arith.constant 0 : index
    %c0_307 = arith.constant 0 : index
    %741 = vector.load %arg4[%c0_305, %c0_306, %c0_307] : memref<1x3x256xbf16, #tpu.memory_space<vmem>>, vector<1x3x256xbf16>
    %742 = vector.shape_cast %741 : vector<1x3x256xbf16> to vector<3x256xbf16>
    %c0_308 = arith.constant 0 : index
    %c0_309 = arith.constant 0 : index
    %743 = vector.load %arg8[%c0_308, %c0_309] : memref<16x3xbf16, #tpu.memory_space<vmem>>, vector<16x3xbf16>
    %cst_310 = arith.constant dense<0.000000e+00> : vector<16x256xf32>
    %744 = tpu.matmul %743, %742, %cst_310 {dimension_numbers = #tpu.dot_dimension_numbers<[1], [0], [0], [1], [0, 0, 1, 1], [], []>} : vector<16x3xbf16>, vector<3x256xbf16>, vector<16x256xf32> -> vector<16x256xf32>
    %c0_311 = arith.constant 0 : index
    %c0_312 = arith.constant 0 : index
    %745 = vector.load %arg15[%c0_311, %c0_312] : memref<32x16xbf16, #tpu.memory_space<vmem>>, vector<32x16xbf16>
    %746 = arith.truncf %744 : vector<16x256xf32> to vector<16x256xbf16>
    %cst_313 = arith.constant dense<0.000000e+00> : vector<32x256xf32>
    %747 = tpu.matmul %745, %746, %cst_313 {dimension_numbers = #tpu.dot_dimension_numbers<[1], [0], [0], [1], [0, 0, 1, 1], [], []>} : vector<32x16xbf16>, vector<16x256xbf16>, vector<32x256xf32> -> vector<32x256xf32>
    %c0_314 = arith.constant 0 : index
    %c0_315 = arith.constant 0 : index
    %748 = vector.load %arg16[%c0_314, %c0_315] : memref<32x1xf32, #tpu.memory_space<vmem>>, vector<32x1xf32>
    %749 = vector.broadcast %748 : vector<32x1xf32> to vector<32x256xf32>
    %750 = arith.addf %747, %749 : vector<32x256xf32>
    %751 = arith.truncf %507 : vector<32x128xf32> to vector<32x128xbf16>
    %c0_316 = arith.constant 0 : index
    %c0_317 = arith.constant 0 : index
    %752 = vector.load %arg19[%c0_316, %c0_317] : memref<128x256xbf16, #tpu.memory_space<vmem>>, vector<128x256xbf16>
    %cst_318 = arith.constant dense<0.000000e+00> : vector<32x256xf32>
    %753 = tpu.matmul %751, %752, %cst_318 {dimension_numbers = #tpu.dot_dimension_numbers<[1], [0], [0], [1], [0, 0, 1, 1], [], []>} : vector<32x128xbf16>, vector<128x256xbf16>, vector<32x256xf32> -> vector<32x256xf32>
    %754 = arith.addf %750, %753 : vector<32x256xf32>
    %755 = arith.truncf %754 : vector<32x256xf32> to vector<32x256xbf16>
    %756 = tpu.concatenate %755, %755 in 1 : vector<32x256xbf16>, vector<32x256xbf16> -> vector<32x512xbf16>
    %757 = tpu.iota {dimensions = array<i32: 1>} : vector<1x256xi32>
    %c4_i32_319 = arith.constant 4 : i32
    %758 = vector.broadcast %c4_i32_319 : i32 to vector<1x256xi32>
    %759 = arith.shrsi %757, %758 : vector<1x256xi32>
    %c15_i32 = arith.constant 15 : i32
    %760 = vector.broadcast %c15_i32 : i32 to vector<1x256xi32>
    %761 = arith.andi %757, %760 : vector<1x256xi32>
    %762 = vector.extract_strided_slice %756 {offsets = [0, 239], sizes = [32, 256], strides = [1, 1]} : vector<32x512xbf16> to vector<32x256xbf16>
    %c-1_i32_320 = arith.constant -1 : i32
    %763 = vector.broadcast %c-1_i32_320 : i32 to vector<1x256xi32>
    %764 = arith.addi %759, %763 : vector<1x256xi32>
    %c0_i32_321 = arith.constant 0 : i32
    %765 = vector.broadcast %c0_i32_321 : i32 to vector<1x256xi32>
    %766 = arith.cmpi sge, %764, %765 : vector<1x256xi32>
    %c-1_i32_322 = arith.constant -1 : i32
    %767 = vector.broadcast %c-1_i32_322 : i32 to vector<1x256xi32>
    %768 = arith.addi %759, %767 : vector<1x256xi32>
    %c16_i32 = arith.constant 16 : i32
    %769 = vector.broadcast %c16_i32 : i32 to vector<1x256xi32>
    %770 = arith.cmpi slt, %768, %769 : vector<1x256xi32>
    %771 = arith.andi %766, %770 : vector<1x256xi1>
    %c-1_i32_323 = arith.constant -1 : i32
    %772 = vector.broadcast %c-1_i32_323 : i32 to vector<1x256xi32>
    %773 = arith.addi %761, %772 : vector<1x256xi32>
    %c0_i32_324 = arith.constant 0 : i32
    %774 = vector.broadcast %c0_i32_324 : i32 to vector<1x256xi32>
    %775 = arith.cmpi sge, %773, %774 : vector<1x256xi32>
    %776 = arith.andi %771, %775 : vector<1x256xi1>
    %c-1_i32_325 = arith.constant -1 : i32
    %777 = vector.broadcast %c-1_i32_325 : i32 to vector<1x256xi32>
    %778 = arith.addi %761, %777 : vector<1x256xi32>
    %c16_i32_326 = arith.constant 16 : i32
    %779 = vector.broadcast %c16_i32_326 : i32 to vector<1x256xi32>
    %780 = arith.cmpi slt, %778, %779 : vector<1x256xi32>
    %781 = arith.andi %776, %780 : vector<1x256xi1>
    %cst_327 = arith.constant 0.000000e+00 : bf16
    %782 = vector.broadcast %cst_327 : bf16 to vector<32x256xbf16>
    %783 = vector.shape_cast %781 : vector<1x256xi1> to vector<1x256xi1>
    %784 = vector.broadcast %783 : vector<1x256xi1> to vector<32x256xi1>
    %785 = arith.select %784, %762, %782 : vector<32x256xi1>, vector<32x256xbf16>
    %786 = vector.extract_strided_slice %756 {offsets = [0, 240], sizes = [32, 256], strides = [1, 1]} : vector<32x512xbf16> to vector<32x256xbf16>
    %c-1_i32_328 = arith.constant -1 : i32
    %787 = vector.broadcast %c-1_i32_328 : i32 to vector<1x256xi32>
    %788 = arith.addi %759, %787 : vector<1x256xi32>
    %c0_i32_329 = arith.constant 0 : i32
    %789 = vector.broadcast %c0_i32_329 : i32 to vector<1x256xi32>
    %790 = arith.cmpi sge, %788, %789 : vector<1x256xi32>
    %c-1_i32_330 = arith.constant -1 : i32
    %791 = vector.broadcast %c-1_i32_330 : i32 to vector<1x256xi32>
    %792 = arith.addi %759, %791 : vector<1x256xi32>
    %c16_i32_331 = arith.constant 16 : i32
    %793 = vector.broadcast %c16_i32_331 : i32 to vector<1x256xi32>
    %794 = arith.cmpi slt, %792, %793 : vector<1x256xi32>
    %795 = arith.andi %790, %794 : vector<1x256xi1>
    %c0_i32_332 = arith.constant 0 : i32
    %796 = vector.broadcast %c0_i32_332 : i32 to vector<1x256xi32>
    %797 = arith.addi %761, %796 : vector<1x256xi32>
    %c0_i32_333 = arith.constant 0 : i32
    %798 = vector.broadcast %c0_i32_333 : i32 to vector<1x256xi32>
    %799 = arith.cmpi sge, %797, %798 : vector<1x256xi32>
    %800 = arith.andi %795, %799 : vector<1x256xi1>
    %c0_i32_334 = arith.constant 0 : i32
    %801 = vector.broadcast %c0_i32_334 : i32 to vector<1x256xi32>
    %802 = arith.addi %761, %801 : vector<1x256xi32>
    %c16_i32_335 = arith.constant 16 : i32
    %803 = vector.broadcast %c16_i32_335 : i32 to vector<1x256xi32>
    %804 = arith.cmpi slt, %802, %803 : vector<1x256xi32>
    %805 = arith.andi %800, %804 : vector<1x256xi1>
    %cst_336 = arith.constant 0.000000e+00 : bf16
    %806 = vector.broadcast %cst_336 : bf16 to vector<32x256xbf16>
    %807 = vector.shape_cast %805 : vector<1x256xi1> to vector<1x256xi1>
    %808 = vector.broadcast %807 : vector<1x256xi1> to vector<32x256xi1>
    %809 = arith.select %808, %786, %806 : vector<32x256xi1>, vector<32x256xbf16>
    %810 = vector.extract_strided_slice %756 {offsets = [0, 241], sizes = [32, 256], strides = [1, 1]} : vector<32x512xbf16> to vector<32x256xbf16>
    %c-1_i32_337 = arith.constant -1 : i32
    %811 = vector.broadcast %c-1_i32_337 : i32 to vector<1x256xi32>
    %812 = arith.addi %759, %811 : vector<1x256xi32>
    %c0_i32_338 = arith.constant 0 : i32
    %813 = vector.broadcast %c0_i32_338 : i32 to vector<1x256xi32>
    %814 = arith.cmpi sge, %812, %813 : vector<1x256xi32>
    %c-1_i32_339 = arith.constant -1 : i32
    %815 = vector.broadcast %c-1_i32_339 : i32 to vector<1x256xi32>
    %816 = arith.addi %759, %815 : vector<1x256xi32>
    %c16_i32_340 = arith.constant 16 : i32
    %817 = vector.broadcast %c16_i32_340 : i32 to vector<1x256xi32>
    %818 = arith.cmpi slt, %816, %817 : vector<1x256xi32>
    %819 = arith.andi %814, %818 : vector<1x256xi1>
    %c1_i32_341 = arith.constant 1 : i32
    %820 = vector.broadcast %c1_i32_341 : i32 to vector<1x256xi32>
    %821 = arith.addi %761, %820 : vector<1x256xi32>
    %c0_i32_342 = arith.constant 0 : i32
    %822 = vector.broadcast %c0_i32_342 : i32 to vector<1x256xi32>
    %823 = arith.cmpi sge, %821, %822 : vector<1x256xi32>
    %824 = arith.andi %819, %823 : vector<1x256xi1>
    %c1_i32_343 = arith.constant 1 : i32
    %825 = vector.broadcast %c1_i32_343 : i32 to vector<1x256xi32>
    %826 = arith.addi %761, %825 : vector<1x256xi32>
    %c16_i32_344 = arith.constant 16 : i32
    %827 = vector.broadcast %c16_i32_344 : i32 to vector<1x256xi32>
    %828 = arith.cmpi slt, %826, %827 : vector<1x256xi32>
    %829 = arith.andi %824, %828 : vector<1x256xi1>
    %cst_345 = arith.constant 0.000000e+00 : bf16
    %830 = vector.broadcast %cst_345 : bf16 to vector<32x256xbf16>
    %831 = vector.shape_cast %829 : vector<1x256xi1> to vector<1x256xi1>
    %832 = vector.broadcast %831 : vector<1x256xi1> to vector<32x256xi1>
    %833 = arith.select %832, %810, %830 : vector<32x256xi1>, vector<32x256xbf16>
    %834 = vector.extract_strided_slice %756 {offsets = [0, 255], sizes = [32, 256], strides = [1, 1]} : vector<32x512xbf16> to vector<32x256xbf16>
    %c0_i32_346 = arith.constant 0 : i32
    %835 = vector.broadcast %c0_i32_346 : i32 to vector<1x256xi32>
    %836 = arith.addi %759, %835 : vector<1x256xi32>
    %c0_i32_347 = arith.constant 0 : i32
    %837 = vector.broadcast %c0_i32_347 : i32 to vector<1x256xi32>
    %838 = arith.cmpi sge, %836, %837 : vector<1x256xi32>
    %c0_i32_348 = arith.constant 0 : i32
    %839 = vector.broadcast %c0_i32_348 : i32 to vector<1x256xi32>
    %840 = arith.addi %759, %839 : vector<1x256xi32>
    %c16_i32_349 = arith.constant 16 : i32
    %841 = vector.broadcast %c16_i32_349 : i32 to vector<1x256xi32>
    %842 = arith.cmpi slt, %840, %841 : vector<1x256xi32>
    %843 = arith.andi %838, %842 : vector<1x256xi1>
    %c-1_i32_350 = arith.constant -1 : i32
    %844 = vector.broadcast %c-1_i32_350 : i32 to vector<1x256xi32>
    %845 = arith.addi %761, %844 : vector<1x256xi32>
    %c0_i32_351 = arith.constant 0 : i32
    %846 = vector.broadcast %c0_i32_351 : i32 to vector<1x256xi32>
    %847 = arith.cmpi sge, %845, %846 : vector<1x256xi32>
    %848 = arith.andi %843, %847 : vector<1x256xi1>
    %c-1_i32_352 = arith.constant -1 : i32
    %849 = vector.broadcast %c-1_i32_352 : i32 to vector<1x256xi32>
    %850 = arith.addi %761, %849 : vector<1x256xi32>
    %c16_i32_353 = arith.constant 16 : i32
    %851 = vector.broadcast %c16_i32_353 : i32 to vector<1x256xi32>
    %852 = arith.cmpi slt, %850, %851 : vector<1x256xi32>
    %853 = arith.andi %848, %852 : vector<1x256xi1>
    %cst_354 = arith.constant 0.000000e+00 : bf16
    %854 = vector.broadcast %cst_354 : bf16 to vector<32x256xbf16>
    %855 = vector.shape_cast %853 : vector<1x256xi1> to vector<1x256xi1>
    %856 = vector.broadcast %855 : vector<1x256xi1> to vector<32x256xi1>
    %857 = arith.select %856, %834, %854 : vector<32x256xi1>, vector<32x256xbf16>
    %858 = vector.extract_strided_slice %756 {offsets = [0, 0], sizes = [32, 256], strides = [1, 1]} : vector<32x512xbf16> to vector<32x256xbf16>
    %c0_i32_355 = arith.constant 0 : i32
    %859 = vector.broadcast %c0_i32_355 : i32 to vector<1x256xi32>
    %860 = arith.addi %759, %859 : vector<1x256xi32>
    %c0_i32_356 = arith.constant 0 : i32
    %861 = vector.broadcast %c0_i32_356 : i32 to vector<1x256xi32>
    %862 = arith.cmpi sge, %860, %861 : vector<1x256xi32>
    %c0_i32_357 = arith.constant 0 : i32
    %863 = vector.broadcast %c0_i32_357 : i32 to vector<1x256xi32>
    %864 = arith.addi %759, %863 : vector<1x256xi32>
    %c16_i32_358 = arith.constant 16 : i32
    %865 = vector.broadcast %c16_i32_358 : i32 to vector<1x256xi32>
    %866 = arith.cmpi slt, %864, %865 : vector<1x256xi32>
    %867 = arith.andi %862, %866 : vector<1x256xi1>
    %c0_i32_359 = arith.constant 0 : i32
    %868 = vector.broadcast %c0_i32_359 : i32 to vector<1x256xi32>
    %869 = arith.addi %761, %868 : vector<1x256xi32>
    %c0_i32_360 = arith.constant 0 : i32
    %870 = vector.broadcast %c0_i32_360 : i32 to vector<1x256xi32>
    %871 = arith.cmpi sge, %869, %870 : vector<1x256xi32>
    %872 = arith.andi %867, %871 : vector<1x256xi1>
    %c0_i32_361 = arith.constant 0 : i32
    %873 = vector.broadcast %c0_i32_361 : i32 to vector<1x256xi32>
    %874 = arith.addi %761, %873 : vector<1x256xi32>
    %c16_i32_362 = arith.constant 16 : i32
    %875 = vector.broadcast %c16_i32_362 : i32 to vector<1x256xi32>
    %876 = arith.cmpi slt, %874, %875 : vector<1x256xi32>
    %877 = arith.andi %872, %876 : vector<1x256xi1>
    %cst_363 = arith.constant 0.000000e+00 : bf16
    %878 = vector.broadcast %cst_363 : bf16 to vector<32x256xbf16>
    %879 = vector.shape_cast %877 : vector<1x256xi1> to vector<1x256xi1>
    %880 = vector.broadcast %879 : vector<1x256xi1> to vector<32x256xi1>
    %881 = arith.select %880, %858, %878 : vector<32x256xi1>, vector<32x256xbf16>
    %882 = vector.extract_strided_slice %756 {offsets = [0, 1], sizes = [32, 256], strides = [1, 1]} : vector<32x512xbf16> to vector<32x256xbf16>
    %c0_i32_364 = arith.constant 0 : i32
    %883 = vector.broadcast %c0_i32_364 : i32 to vector<1x256xi32>
    %884 = arith.addi %759, %883 : vector<1x256xi32>
    %c0_i32_365 = arith.constant 0 : i32
    %885 = vector.broadcast %c0_i32_365 : i32 to vector<1x256xi32>
    %886 = arith.cmpi sge, %884, %885 : vector<1x256xi32>
    %c0_i32_366 = arith.constant 0 : i32
    %887 = vector.broadcast %c0_i32_366 : i32 to vector<1x256xi32>
    %888 = arith.addi %759, %887 : vector<1x256xi32>
    %c16_i32_367 = arith.constant 16 : i32
    %889 = vector.broadcast %c16_i32_367 : i32 to vector<1x256xi32>
    %890 = arith.cmpi slt, %888, %889 : vector<1x256xi32>
    %891 = arith.andi %886, %890 : vector<1x256xi1>
    %c1_i32_368 = arith.constant 1 : i32
    %892 = vector.broadcast %c1_i32_368 : i32 to vector<1x256xi32>
    %893 = arith.addi %761, %892 : vector<1x256xi32>
    %c0_i32_369 = arith.constant 0 : i32
    %894 = vector.broadcast %c0_i32_369 : i32 to vector<1x256xi32>
    %895 = arith.cmpi sge, %893, %894 : vector<1x256xi32>
    %896 = arith.andi %891, %895 : vector<1x256xi1>
    %c1_i32_370 = arith.constant 1 : i32
    %897 = vector.broadcast %c1_i32_370 : i32 to vector<1x256xi32>
    %898 = arith.addi %761, %897 : vector<1x256xi32>
    %c16_i32_371 = arith.constant 16 : i32
    %899 = vector.broadcast %c16_i32_371 : i32 to vector<1x256xi32>
    %900 = arith.cmpi slt, %898, %899 : vector<1x256xi32>
    %901 = arith.andi %896, %900 : vector<1x256xi1>
    %cst_372 = arith.constant 0.000000e+00 : bf16
    %902 = vector.broadcast %cst_372 : bf16 to vector<32x256xbf16>
    %903 = vector.shape_cast %901 : vector<1x256xi1> to vector<1x256xi1>
    %904 = vector.broadcast %903 : vector<1x256xi1> to vector<32x256xi1>
    %905 = arith.select %904, %882, %902 : vector<32x256xi1>, vector<32x256xbf16>
    %906 = vector.extract_strided_slice %756 {offsets = [0, 15], sizes = [32, 256], strides = [1, 1]} : vector<32x512xbf16> to vector<32x256xbf16>
    %c1_i32_373 = arith.constant 1 : i32
    %907 = vector.broadcast %c1_i32_373 : i32 to vector<1x256xi32>
    %908 = arith.addi %759, %907 : vector<1x256xi32>
    %c0_i32_374 = arith.constant 0 : i32
    %909 = vector.broadcast %c0_i32_374 : i32 to vector<1x256xi32>
    %910 = arith.cmpi sge, %908, %909 : vector<1x256xi32>
    %c1_i32_375 = arith.constant 1 : i32
    %911 = vector.broadcast %c1_i32_375 : i32 to vector<1x256xi32>
    %912 = arith.addi %759, %911 : vector<1x256xi32>
    %c16_i32_376 = arith.constant 16 : i32
    %913 = vector.broadcast %c16_i32_376 : i32 to vector<1x256xi32>
    %914 = arith.cmpi slt, %912, %913 : vector<1x256xi32>
    %915 = arith.andi %910, %914 : vector<1x256xi1>
    %c-1_i32_377 = arith.constant -1 : i32
    %916 = vector.broadcast %c-1_i32_377 : i32 to vector<1x256xi32>
    %917 = arith.addi %761, %916 : vector<1x256xi32>
    %c0_i32_378 = arith.constant 0 : i32
    %918 = vector.broadcast %c0_i32_378 : i32 to vector<1x256xi32>
    %919 = arith.cmpi sge, %917, %918 : vector<1x256xi32>
    %920 = arith.andi %915, %919 : vector<1x256xi1>
    %c-1_i32_379 = arith.constant -1 : i32
    %921 = vector.broadcast %c-1_i32_379 : i32 to vector<1x256xi32>
    %922 = arith.addi %761, %921 : vector<1x256xi32>
    %c16_i32_380 = arith.constant 16 : i32
    %923 = vector.broadcast %c16_i32_380 : i32 to vector<1x256xi32>
    %924 = arith.cmpi slt, %922, %923 : vector<1x256xi32>
    %925 = arith.andi %920, %924 : vector<1x256xi1>
    %cst_381 = arith.constant 0.000000e+00 : bf16
    %926 = vector.broadcast %cst_381 : bf16 to vector<32x256xbf16>
    %927 = vector.shape_cast %925 : vector<1x256xi1> to vector<1x256xi1>
    %928 = vector.broadcast %927 : vector<1x256xi1> to vector<32x256xi1>
    %929 = arith.select %928, %906, %926 : vector<32x256xi1>, vector<32x256xbf16>
    %930 = vector.extract_strided_slice %756 {offsets = [0, 16], sizes = [32, 256], strides = [1, 1]} : vector<32x512xbf16> to vector<32x256xbf16>
    %c1_i32_382 = arith.constant 1 : i32
    %931 = vector.broadcast %c1_i32_382 : i32 to vector<1x256xi32>
    %932 = arith.addi %759, %931 : vector<1x256xi32>
    %c0_i32_383 = arith.constant 0 : i32
    %933 = vector.broadcast %c0_i32_383 : i32 to vector<1x256xi32>
    %934 = arith.cmpi sge, %932, %933 : vector<1x256xi32>
    %c1_i32_384 = arith.constant 1 : i32
    %935 = vector.broadcast %c1_i32_384 : i32 to vector<1x256xi32>
    %936 = arith.addi %759, %935 : vector<1x256xi32>
    %c16_i32_385 = arith.constant 16 : i32
    %937 = vector.broadcast %c16_i32_385 : i32 to vector<1x256xi32>
    %938 = arith.cmpi slt, %936, %937 : vector<1x256xi32>
    %939 = arith.andi %934, %938 : vector<1x256xi1>
    %c0_i32_386 = arith.constant 0 : i32
    %940 = vector.broadcast %c0_i32_386 : i32 to vector<1x256xi32>
    %941 = arith.addi %761, %940 : vector<1x256xi32>
    %c0_i32_387 = arith.constant 0 : i32
    %942 = vector.broadcast %c0_i32_387 : i32 to vector<1x256xi32>
    %943 = arith.cmpi sge, %941, %942 : vector<1x256xi32>
    %944 = arith.andi %939, %943 : vector<1x256xi1>
    %c0_i32_388 = arith.constant 0 : i32
    %945 = vector.broadcast %c0_i32_388 : i32 to vector<1x256xi32>
    %946 = arith.addi %761, %945 : vector<1x256xi32>
    %c16_i32_389 = arith.constant 16 : i32
    %947 = vector.broadcast %c16_i32_389 : i32 to vector<1x256xi32>
    %948 = arith.cmpi slt, %946, %947 : vector<1x256xi32>
    %949 = arith.andi %944, %948 : vector<1x256xi1>
    %cst_390 = arith.constant 0.000000e+00 : bf16
    %950 = vector.broadcast %cst_390 : bf16 to vector<32x256xbf16>
    %951 = vector.shape_cast %949 : vector<1x256xi1> to vector<1x256xi1>
    %952 = vector.broadcast %951 : vector<1x256xi1> to vector<32x256xi1>
    %953 = arith.select %952, %930, %950 : vector<32x256xi1>, vector<32x256xbf16>
    %954 = vector.extract_strided_slice %756 {offsets = [0, 17], sizes = [32, 256], strides = [1, 1]} : vector<32x512xbf16> to vector<32x256xbf16>
    %c1_i32_391 = arith.constant 1 : i32
    %955 = vector.broadcast %c1_i32_391 : i32 to vector<1x256xi32>
    %956 = arith.addi %759, %955 : vector<1x256xi32>
    %c0_i32_392 = arith.constant 0 : i32
    %957 = vector.broadcast %c0_i32_392 : i32 to vector<1x256xi32>
    %958 = arith.cmpi sge, %956, %957 : vector<1x256xi32>
    %c1_i32_393 = arith.constant 1 : i32
    %959 = vector.broadcast %c1_i32_393 : i32 to vector<1x256xi32>
    %960 = arith.addi %759, %959 : vector<1x256xi32>
    %c16_i32_394 = arith.constant 16 : i32
    %961 = vector.broadcast %c16_i32_394 : i32 to vector<1x256xi32>
    %962 = arith.cmpi slt, %960, %961 : vector<1x256xi32>
    %963 = arith.andi %958, %962 : vector<1x256xi1>
    %c1_i32_395 = arith.constant 1 : i32
    %964 = vector.broadcast %c1_i32_395 : i32 to vector<1x256xi32>
    %965 = arith.addi %761, %964 : vector<1x256xi32>
    %c0_i32_396 = arith.constant 0 : i32
    %966 = vector.broadcast %c0_i32_396 : i32 to vector<1x256xi32>
    %967 = arith.cmpi sge, %965, %966 : vector<1x256xi32>
    %968 = arith.andi %963, %967 : vector<1x256xi1>
    %c1_i32_397 = arith.constant 1 : i32
    %969 = vector.broadcast %c1_i32_397 : i32 to vector<1x256xi32>
    %970 = arith.addi %761, %969 : vector<1x256xi32>
    %c16_i32_398 = arith.constant 16 : i32
    %971 = vector.broadcast %c16_i32_398 : i32 to vector<1x256xi32>
    %972 = arith.cmpi slt, %970, %971 : vector<1x256xi32>
    %973 = arith.andi %968, %972 : vector<1x256xi1>
    %cst_399 = arith.constant 0.000000e+00 : bf16
    %974 = vector.broadcast %cst_399 : bf16 to vector<32x256xbf16>
    %975 = vector.shape_cast %973 : vector<1x256xi1> to vector<1x256xi1>
    %976 = vector.broadcast %975 : vector<1x256xi1> to vector<32x256xi1>
    %977 = arith.select %976, %954, %974 : vector<32x256xi1>, vector<32x256xbf16>
    %978 = tpu.concatenate %785, %809, %833, %857, %881, %905, %929, %953, %977 in 0 : vector<32x256xbf16>, vector<32x256xbf16>, vector<32x256xbf16>, vector<32x256xbf16>, vector<32x256xbf16>, vector<32x256xbf16>, vector<32x256xbf16>, vector<32x256xbf16>, vector<32x256xbf16> -> vector<288x256xbf16>
    %c0_400 = arith.constant 0 : index
    %c0_401 = arith.constant 0 : index
    %979 = vector.load %arg26[%c0_400, %c0_401] : memref<32x288xbf16, #tpu.memory_space<vmem>>, vector<32x288xbf16>
    %cst_402 = arith.constant dense<0.000000e+00> : vector<32x256xf32>
    %980 = tpu.matmul %979, %978, %cst_402 {dimension_numbers = #tpu.dot_dimension_numbers<[1], [0], [0], [1], [0, 0, 1, 1], [], []>} : vector<32x288xbf16>, vector<288x256xbf16>, vector<32x256xf32> -> vector<32x256xf32>
    %c0_403 = arith.constant 0 : index
    %c0_404 = arith.constant 0 : index
    %981 = vector.load %arg27[%c0_403, %c0_404] : memref<32x1xf32, #tpu.memory_space<vmem>>, vector<32x1xf32>
    %982 = vector.broadcast %981 : vector<32x1xf32> to vector<32x256xf32>
    %983 = arith.addf %980, %982 : vector<32x256xf32>
    %c0_405 = arith.constant 0 : index
    %c0_406 = arith.constant 0 : index
    %c0_407 = arith.constant 0 : index
    %984 = vector.load %arg32[%c0_405, %c0_406, %c0_407] : memref<1x32x256xf32, #tpu.memory_space<vmem>>, vector<1x32x256xf32>
    %985 = vector.shape_cast %984 : vector<1x32x256xf32> to vector<32x256xf32>
    %986 = vector.shape_cast %983 : vector<32x256xf32> to vector<1x32x256xf32>
    tpu.vector_store %arg32[%c0_405, %c0_406, %c0_407], %986 {strides = array<i32>} : memref<1x32x256xf32, #tpu.memory_space<vmem>>, vector<1x32x256xf32>,
    return
  }
  func.func @transform_0(%arg0: i32) -> (i32, i32, i32) {
    %c0_i32 = arith.constant 0 : i32
    %c0_i32_0 = arith.constant 0 : i32
    %c0_i32_1 = arith.constant 0 : i32
    return %arg0, %c0_i32, %c0_i32_0 : i32, i32, i32
  }
  func.func @transform_1(%arg0: i32) -> (i32, i32, i32) {
    %c0_i32 = arith.constant 0 : i32
    %c0_i32_0 = arith.constant 0 : i32
    %c0_i32_1 = arith.constant 0 : i32
    return %arg0, %c0_i32, %c0_i32_0 : i32, i32, i32
  }
  func.func @transform_2(%arg0: i32) -> (i32, i32, i32) {
    %c0_i32 = arith.constant 0 : i32
    %c0_i32_0 = arith.constant 0 : i32
    %c0_i32_1 = arith.constant 0 : i32
    return %arg0, %c0_i32, %c0_i32_0 : i32, i32, i32
  }
  func.func @transform_3(%arg0: i32) -> (i32, i32, i32) {
    %c0_i32 = arith.constant 0 : i32
    %c0_i32_0 = arith.constant 0 : i32
    %c0_i32_1 = arith.constant 0 : i32
    return %arg0, %c0_i32, %c0_i32_0 : i32, i32, i32
  }
  func.func @transform_4(%arg0: i32) -> (i32, i32) {
    %c0_i32 = arith.constant 0 : i32
    %c0_i32_0 = arith.constant 0 : i32
    %c0_i32_1 = arith.constant 0 : i32
    return %c0_i32, %c0_i32_0 : i32, i32
  }
  func.func @transform_5(%arg0: i32) -> (i32, i32) {
    %c0_i32 = arith.constant 0 : i32
    %c0_i32_0 = arith.constant 0 : i32
    %c0_i32_1 = arith.constant 0 : i32
    return %c0_i32, %c0_i32_0 : i32, i32
  }
  func.func @transform_6(%arg0: i32) -> (i32, i32) {
    %c0_i32 = arith.constant 0 : i32
    %c0_i32_0 = arith.constant 0 : i32
    %c0_i32_1 = arith.constant 0 : i32
    return %c0_i32, %c0_i32_0 : i32, i32
  }
  func.func @transform_7(%arg0: i32) -> (i32, i32) {
    %c0_i32 = arith.constant 0 : i32
    %c0_i32_0 = arith.constant 0 : i32
    %c0_i32_1 = arith.constant 0 : i32
    return %c0_i32, %c0_i32_0 : i32, i32
  }
  func.func @transform_8(%arg0: i32) -> (i32, i32) {
    %c0_i32 = arith.constant 0 : i32
    %c0_i32_0 = arith.constant 0 : i32
    %c0_i32_1 = arith.constant 0 : i32
    return %c0_i32, %c0_i32_0 : i32, i32
  }
  func.func @transform_9(%arg0: i32) -> (i32, i32) {
    %c0_i32 = arith.constant 0 : i32
    %c0_i32_0 = arith.constant 0 : i32
    %c0_i32_1 = arith.constant 0 : i32
    return %c0_i32, %c0_i32_0 : i32, i32
  }
  func.func @transform_10(%arg0: i32) -> (i32, i32) {
    %c0_i32 = arith.constant 0 : i32
    %c0_i32_0 = arith.constant 0 : i32
    %c0_i32_1 = arith.constant 0 : i32
    return %c0_i32, %c0_i32_0 : i32, i32
  }
  func.func @transform_11(%arg0: i32) -> (i32, i32) {
    %c0_i32 = arith.constant 0 : i32
    %c0_i32_0 = arith.constant 0 : i32
    %c0_i32_1 = arith.constant 0 : i32
    return %c0_i32, %c0_i32_0 : i32, i32
  }
  func.func @transform_12(%arg0: i32) -> (i32, i32) {
    %c0_i32 = arith.constant 0 : i32
    %c0_i32_0 = arith.constant 0 : i32
    %c0_i32_1 = arith.constant 0 : i32
    return %c0_i32, %c0_i32_0 : i32, i32
  }
  func.func @transform_13(%arg0: i32) -> (i32, i32) {
    %c0_i32 = arith.constant 0 : i32
    %c0_i32_0 = arith.constant 0 : i32
    %c0_i32_1 = arith.constant 0 : i32
    return %c0_i32, %c0_i32_0 : i32, i32
  }
  func.func @transform_14(%arg0: i32) -> (i32, i32) {
    %c0_i32 = arith.constant 0 : i32
    %c0_i32_0 = arith.constant 0 : i32
    %c0_i32_1 = arith.constant 0 : i32
    return %c0_i32, %c0_i32_0 : i32, i32
  }
  func.func @transform_15(%arg0: i32) -> (i32, i32) {
    %c0_i32 = arith.constant 0 : i32
    %c0_i32_0 = arith.constant 0 : i32
    %c0_i32_1 = arith.constant 0 : i32
    return %c0_i32, %c0_i32_0 : i32, i32
  }
  func.func @transform_16(%arg0: i32) -> (i32, i32) {
    %c0_i32 = arith.constant 0 : i32
    %c0_i32_0 = arith.constant 0 : i32
    %c0_i32_1 = arith.constant 0 : i32
    return %c0_i32, %c0_i32_0 : i32, i32
  }
  func.func @transform_17(%arg0: i32) -> (i32, i32) {
    %c0_i32 = arith.constant 0 : i32
    %c0_i32_0 = arith.constant 0 : i32
    %c0_i32_1 = arith.constant 0 : i32
    return %c0_i32, %c0_i32_0 : i32, i32
  }
  func.func @transform_18(%arg0: i32) -> (i32, i32) {
    %c0_i32 = arith.constant 0 : i32
    %c0_i32_0 = arith.constant 0 : i32
    %c0_i32_1 = arith.constant 0 : i32
    return %c0_i32, %c0_i32_0 : i32, i32
  }
  func.func @transform_19(%arg0: i32) -> (i32, i32) {
    %c0_i32 = arith.constant 0 : i32
    %c0_i32_0 = arith.constant 0 : i32
    %c0_i32_1 = arith.constant 0 : i32
    return %c0_i32, %c0_i32_0 : i32, i32
  }
  func.func @transform_20(%arg0: i32) -> (i32, i32) {
    %c0_i32 = arith.constant 0 : i32
    %c0_i32_0 = arith.constant 0 : i32
    %c0_i32_1 = arith.constant 0 : i32
    return %c0_i32, %c0_i32_0 : i32, i32
  }
  func.func @transform_21(%arg0: i32) -> (i32, i32) {
    %c0_i32 = arith.constant 0 : i32
    %c0_i32_0 = arith.constant 0 : i32
    %c0_i32_1 = arith.constant 0 : i32
    return %c0_i32, %c0_i32_0 : i32, i32
  }
  func.func @transform_22(%arg0: i32) -> (i32, i32) {
    %c0_i32 = arith.constant 0 : i32
    %c0_i32_0 = arith.constant 0 : i32
    %c0_i32_1 = arith.constant 0 : i32
    return %c0_i32, %c0_i32_0 : i32, i32
  }
  func.func @transform_23(%arg0: i32) -> (i32, i32) {
    %c0_i32 = arith.constant 0 : i32
    %c0_i32_0 = arith.constant 0 : i32
    %c0_i32_1 = arith.constant 0 : i32
    return %c0_i32, %c0_i32_0 : i32, i32
  }
  func.func @transform_24(%arg0: i32) -> (i32, i32) {
    %c0_i32 = arith.constant 0 : i32
    %c0_i32_0 = arith.constant 0 : i32
    %c0_i32_1 = arith.constant 0 : i32
    return %c0_i32, %c0_i32_0 : i32, i32
  }
  func.func @transform_25(%arg0: i32) -> (i32, i32) {
    %c0_i32 = arith.constant 0 : i32
    %c0_i32_0 = arith.constant 0 : i32
    %c0_i32_1 = arith.constant 0 : i32
    return %c0_i32, %c0_i32_0 : i32, i32
  }
  func.func @transform_26(%arg0: i32) -> (i32, i32) {
    %c0_i32 = arith.constant 0 : i32
    %c0_i32_0 = arith.constant 0 : i32
    %c0_i32_1 = arith.constant 0 : i32
    return %c0_i32, %c0_i32_0 : i32, i32
  }
  func.func @transform_27(%arg0: i32) -> (i32, i32, i32) {
    %c0_i32 = arith.constant 0 : i32
    %c0_i32_0 = arith.constant 0 : i32
    %c0_i32_1 = arith.constant 0 : i32
    return %arg0, %c0_i32, %c0_i32_0 : i32, i32, i32
  }
  func.func @transform_28(%arg0: i32) -> (i32, i32, i32) {
    %c0_i32 = arith.constant 0 : i32
    %c0_i32_0 = arith.constant 0 : i32
    %c0_i32_1 = arith.constant 0 : i32
    return %arg0, %c0_i32, %c0_i32_0 : i32, i32, i32
  }
  func.func @transform_29(%arg0: i32) -> (i32, i32, i32) {
    %c0_i32 = arith.constant 0 : i32
    %c0_i32_0 = arith.constant 0 : i32
    %c0_i32_1 = arith.constant 0 : i32
    return %arg0, %c0_i32, %c0_i32_0 : i32, i32, i32
  }
  func.func @transform_30(%arg0: i32) -> (i32, i32, i32) {
    %c0_i32 = arith.constant 0 : i32
    %c0_i32_0 = arith.constant 0 : i32
    %c0_i32_1 = arith.constant 0 : i32
    return %arg0, %c0_i32, %c0_i32_0 : i32, i32, i32
  }
  func.func @transform_31(%arg0: i32) -> (i32, i32, i32) {
    %c0_i32 = arith.constant 0 : i32
    %c0_i32_0 = arith.constant 0 : i32
    %c0_i32_1 = arith.constant 0 : i32
    return %arg0, %c0_i32, %c0_i32_0 : i32, i32, i32
  }
}

</mosaic_0001>

<bundles_post_ra>
// kernel: fpn_forward.1
= control target key start
LH: loop header
LB: loop body
LE: loop exit
PB: predicated region body
PF: predicated region fallthrough
CT: control target
= control target key end

     0   :  { %s5279_s6 = smov 1   ;;  %s5280_s10 = smov 2   ;;  %s6810_s0 = inlined_call_operand.smem [shape: u32[32], index: -1, kind: input, shape index: {}] }
   0x1   :  { %s5350_s5 = sld [smem:[%s6810_s0]]   ;;  %s5281_s14 = smov 3  }
   0x2   :  { %s5355_s9 = sld [smem:[%s6810_s0 + %s5279_s6]]   ;;  %s5282_s18 = smov 4  }
   0x3   :  { %s5360_s13 = sld [smem:[%s6810_s0 + %s5280_s10]]   ;;  %s5283_s22 = smov 5  }
   0x4   :  { %s5365_s17 = sld [smem:[%s6810_s0 + %s5281_s14]]   ;;  %s5284_s26 = smov 6  }
   0x5   :  { %s5370_s21 = sld [smem:[%s6810_s0 + %s5282_s18]]   ;;  %s5285_s30 = smov 7  }
   0x6   :  { %s5375_s25 = sld [smem:[%s6810_s0 + %s5283_s22]]   ;;  %s5286_s4 = smov 8  }
   0x7   :  { %6854 = sst [smem:[#allocation2_spill]] %s5350_s5  ;;  %s5287_s10 = smov 9  }
   0x8   :  { %s5380_s29 = sld [smem:[%s6810_s0 + %s5284_s26]]   ;;  %s5288_s15 = smov 10  }
   0x9   :  { %s5385_s3 = sld [smem:[%s6810_s0 + %s5285_s30]]   ;;  %s5289_s20 = smov 11  }
   0xa   :  { %6855 = sst [smem:[#allocation3_spill]] %s5365_s17  ;;  %s5290_s26 = smov 12  }
   0xb   :  { %s5390_s8 = sld [smem:[%s6810_s0 + %s5286_s4]]   ;;  %s5291_s1 = smov 13  }
   0xc   :  { %s5395_s14 = sld [smem:[%s6810_s0 + %s5287_s10]]   ;;  %s5292_s7 = smov 14  }
   0xd   :  { %s5400_s19 = sld [smem:[%s6810_s0 + %s5288_s15]]   ;;  %s5293_s15 = smov 15  }
   0xe   :  { %s5405_s24 = sld [smem:[%s6810_s0 + %s5289_s20]]   ;;  %s5294_s22 = smov 16  }
   0xf   :  { %6856 = sst [smem:[#allocation4_spill]] %s5385_s3  ;;  %s5295_s28 = smov 17  }
  0x10   :  { %s5410_s30 = sld [smem:[%s6810_s0 + %s5290_s26]]  }
  0x11   :  { %s5415_s6 = sld [smem:[%s6810_s0 + %s5291_s1]]  }
  0x12   :  { %s5420_s12 = sld [smem:[%s6810_s0 + %s5292_s7]]   ;;  %s5296_s7 = smov 18  }
  0x13   :  { %s5425_s20 = sld [smem:[%s6810_s0 + %s5293_s15]]   ;;  %s5297_s15 = smov 19  }
  0x14   :  { %s5430_s27 = sld [smem:[%s6810_s0 + %s5294_s22]]   ;;  %s5298_s22 = smov 20  }
  0x15   :  { %s5435_s4 = sld [smem:[%s6810_s0 + %s5295_s28]]   ;;  %s5299_s28 = smov 21  }
  0x16   :  { %6857 = sst [smem:[#allocation5_spill]] %s5410_s30 }
  0x17   :  { %6858 = sst [smem:[#allocation6_spill]] %s5415_s6 }
  0x18   :  { %6859 = sst [smem:[#allocation7_spill]] %s5420_s12 }
  0x19   :  { %6860 = sst [smem:[#allocation8_spill]] %s5425_s20 }
  0x1a   :  { %s5440_s12 = sld [smem:[%s6810_s0 + %s5296_s7]]   ;;  %s5300_s7 = smov 22  }
  0x1b   :  { %6861 = sst [smem:[#allocation9_spill]] %s5435_s4 }
  0x1c   :  { %s5445_s20 = sld [smem:[%s6810_s0 + %s5297_s15]]   ;;  %s5301_s15 = smov 23  }
  0x1d   :  { %s5450_s3 = sld [smem:[%s6810_s0 + %s5298_s22]]   ;;  %s5302_s22 = smov 24  }
  0x1e   :  { %s5455_s17 = sld [smem:[%s6810_s0 + %s5299_s28]]   ;;  %s5303_s28 = smov 25  }
  0x1f   :  { %s5465_s4 = sld [smem:[%s6810_s0 + %s5301_s15]]   ;;  %s5305_s15 = smov 27  }
  0x20   :  { %6862 = sst [smem:[#allocation10_spill]] %s5440_s12 }
  0x21   :  { %s5460_s12 = sld [smem:[%s6810_s0 + %s5300_s7]]   ;;  %s5304_s7 = smov 26  }
  0x22   :  { %s5475_s30 = sld [smem:[%s6810_s0 + %s5303_s28]]   ;;  %s5307_s28 = smov 29  }
  0x23   :  { %6863 = sst [smem:[#allocation11_spill]] %s5450_s3 }
  0x24   :  { %s5470_s3 = sld [smem:[%s6810_s0 + %s5302_s22]]   ;;  %s5306_s22 = smov 28  }
  0x25   :  { %6865 = sst [smem:[#allocation13_spill]] %s5465_s4 }
  0x26   :  { %s5485_s4 = sld [smem:[%s6810_s0 + %s5305_s15]]   ;;  %s5309_s15 = smov 31  }
  0x27   :  { %6864 = sst [smem:[#allocation12_spill]] %s5460_s12 }
  0x28   :  { %6867 = sst [smem:[#allocation15_spill]] %s5475_s30 }
  0x29   :  { %s5480_s12 = sld [smem:[%s6810_s0 + %s5304_s7]]   ;;  %s5308_s7 = smov 30  }
  0x2a   :  { %6866 = sst [smem:[#allocation14_spill]] %s5470_s3 }
  0x2b   :  { %s5490_s3 = sld [smem:[%s6810_s0 + %s5306_s22]]   ;;  %s5507_s22 = smov 0  }
  0x2c   :  { %6869 = sst [smem:[#allocation17_spill]] %s5485_s4 }
  0x2d   :  { %s5495_s30 = sld [smem:[%s6810_s0 + %s5307_s28]]  }
  0x2e   :  { %s5505_s4 = sld [smem:[%s6810_s0 + %s5309_s15]]  }
  0x2f   :  { %6868 = sst [smem:[#allocation16_spill]] %s5480_s12 }
  0x30   :  { %s5500_s12 = sld [smem:[%s6810_s0 + %s5308_s7]]  }
  0x31 LB: > { %s6870_s6 = sld [smem:[#allocation6_spill]]  ;;  %s4664_s23 = sadd.s32 4294967295, %s5277_s22   ;;  %s5277_s22 = sphi %s5507_s22, %s74_s22  }
  0x32   : > { %p4668_p0 = scmp.ge.s32.totalorder %s5277_s22, 1  ;;  %p905_p1 = scmp.lt.s32.totalorder %s5277_s22, 3 }
  0x34   : > { %p906_p2 = pnand %p4668_p0, %p905_p1 }
  0x35   : > { %p1017_p3 = scmp.lt.s32.totalorder (!%p906_p2), %s4664_s23, 1  ;;  %s6871_s5 = sld [smem:[#allocation2_spill]] (!%p906_p2)  ;;  %vm1104_vm0 = vcmask (!%p906_p2), 1040384   ;;  %vm1105_vm1 = vcmask (!%p906_p2), 1041408   ;;  %v5310_v0 = vmov (!%p906_p2), 65535   ;;  %v5181_v2 = vld [vmem:[%s5370_s21] sm:$0xff] (!%p906_p2)   ;;  %v1276_v12 = vlaneseq (!%p906_p2) }
  0x36   : > { %909 = sbr.rel (%p906_p2) target bundleno = 3418 (0xd5a), region = 128  ;;  %v1106_v1 = vsel (!%p906_p2), %vm1104_vm0, 4294967295, %v5310_v0  ;;  %vm1091_vm2 = vcmask (!%p906_p2), 23552   ;;  %v5182_v6 = vld [vmem:[%s5370_s21 + $0x8] sm:$0xff] (!%p906_p2)   ;;  %v5183_v7 = vld [vmem:[%s5370_s21 + $0x10] sm:$0xff] (!%p906_p2)   ;;  %v5184_v8 = vld [vmem:[%s5370_s21 + $0x18] sm:$0xff] (!%p906_p2)  }
  0x37   : > { %4938 = vmatprep.mubr.msk.bf16.mxu0 (!%p906_p2), %vm1091_vm2, %v5181_v2  ;;  %v5522_v3 = vsel (!%p906_p2), %vm1105_vm1, %v1106_v1, 0  ;;  %v5185_v9 = vld [vmem:[%s5390_s8] sm:$0xff] (!%p906_p2)   ;;  %vm6824_vm3 = vcmask (!%p906_p2), 523264   ;;  %v1186_v11 = vld [vmem:[%s5395_s14 + $0x10] sm:$0xff] (!%p906_p2)  ;;  %v5311_v13 = vmov (!%p906_p2), 0   ;;  %v5539_v14 = vand.u32 (!%p906_p2), 127, %v1276_v12 }
  0x38   : > { %v1184_v10 = vld [vmem:[%s5395_s14] sm:$0xff] (!%p906_p2)  ;;  %5179 = vset.pattern.permute.xlu0 (!%p906_p2), %v5311_v13  ;;  %5180 = vset.pattern.permute.xlu1 (!%p906_p2), %v5311_v13  ;;  %v1185_v15 = vld [vmem:[%s5395_s14 + $0x8] sm:$0xff] (!%p906_p2)  ;;  %v1187_v16 = vld [vmem:[%s5395_s14 + $0x18] sm:$0xff] (!%p906_p2)  ;;  %v5547_v19 = vshrl.u32 (!%p906_p2), %v1276_v12, 7  ;;  %s5312_s28 = smov (!%p906_p2), 3   ;;  %s5313_s1 = smov (!%p906_p2), 122  }
  0x39   : > { %1190 = vperm.xlu0 (!%p906_p2), %5179, %v1184_v10   ;;  %1200 = vperm.xlu1 (!%p906_p2), %5180, %v1186_v11   ;;  %v5544_v17 = vshra.s32 (!%p906_p2), %v5539_v14, 1  ;;  %v1279_v18 = vand.u32 (!%p906_p2), 1, %v5539_v14  ;;  %v5186_v38 = vld [vmem:[%s5390_s8 + $0x8] sm:$0xff] (!%p906_p2)   ;;  %s6822_s2 = smov (!%p906_p2), 126   ;;  %s5315_s7 = smov (!%p906_p2), 1  }
  0x3a   : > { %v5556_v22 = vsub.s32 (!%p906_p2), 0, %v5547_v19  ;;  %s6847_s10 = smov (!%p906_p2), 127   ;;  %s5317_s11 = smov (!%p906_p2), 2   ;;  %v5194_v63 = vld [vmem:[%s5445_s20 + $0x4] ss:$12 sps:$4 sm:$0xff] (!%p906_p2)  }
  0x3b   : > { %v5551_v20 = vadd.s32 (!%p906_p2), 1, %v1279_v18  ;;  %v1383_v21 = vadd.s32 (!%p906_p2), 1, %v5544_v17  ;;  %v1280_v56 = vadd.s32 (!%p906_p2), 4294967295, %v5544_v17  ;;  %vm1337_vm11 = vcmp.ge.s32.totalorder (!%p906_p2), %v5544_v17, 0  ;;  %s5318_s15 = smov (!%p906_p2), 125   ;;  %s5319_s18 = smov (!%p906_p2), 124  }
  0x3c   : > { %vm1338_vm12 = vcmp.lt.s32.totalorder (!%p906_p2), %v5544_v17, 2  ;;  %v1284_v58 = vadd.s32 (!%p906_p2), 4294967295, %v1279_v18  ;;  %v5187_v18 = vld [vmem:[%s5445_s20 + $0x8] ss:$12 sps:$4 sm:$0xff] (!%p906_p2)  }
  0x3d   : > { %s6960_s23 = smov (!%p1017_p3, %s4664_s23), 1  ;;  %1195 = vperm.xlu0 %5179, %v1185_v15   ;;  %1205 = vperm.xlu1 %5180, %v1187_v16   ;;  %vm1322_vm4 = vcmp.lt.s32.totalorder %v5551_v20, 2  ;;  %vm1384_vm5 = vcmp.ge.s32.totalorder %v1383_v21, 0  ;;  %vm1385_vm6 = vcmp.lt.s32.totalorder %v1383_v21, 2  ;;  %vm1281_vm13 = vcmp.ge.s32.totalorder %v1280_v56, 0  ;;  %vm5582_vm15 = vmand %vm1337_vm11, %vm1338_vm12 }
  0x3e   : > { %s5520_s0 = sshll.u32 %s6960_s23, 1  ;;  %vm5558_vm7 = vmand %vm1384_vm5, %vm1385_vm6  ;;  %vm1282_vm14 = vcmp.lt.s32.totalorder %v1280_v56, 2  ;;  %vm1285_vm6 = vcmp.ge.s32.totalorder %v1284_v58, 0 }
  0x3f   : > { %s1020_s26 = scalar_lea.vmem %s6871_s5, %s5520_s0  ;;  %vm1418_vm8 = vmand %vm5558_vm7, %vm1322_vm4  ;;  %s1024_s16 = scalar_lea.vmem %s5355_s9, %s5520_s0 }
  0x40   : > { %v1062_v4 = vld [vmem:[%s1020_s26] sm:$0x3]  ;;  %vm1421_vm9 = vmpackc.low %vm1418_vm8, %vm1418_vm8  ;;  %s5322_s26 = smov 123   ;;  %s6921_s5 = smov 95  }
  0x41   : > { %v1109_v5 = vand.u32 %v5522_v3, %v1062_v4  ;;  %v1422_v24 = vsel %vm1421_vm9, 65537, %v5311_v13  ;;  %vm5588_vm0 = vmand %vm1281_vm13, %vm1282_vm14 }
  0x42   : > { %v1426_v25 = vrot.slane %v1422_v24, %v5556_v22  ;;  %vm1369_vm1 = vmand %vm5582_vm15, %vm1322_vm4 }
  0x43   : > { %4936 = vmatprep.subr.bf16.mxu0 %v1109_v5  ;;  %vm1308_vm5 = vmpackc.low %vm5588_vm0, %vm5588_vm0 }
  0x44   : > { %4937 = vmatpush3.bf16.msra.mxu0 %v1109_v5  ;;  %1427 = vrot.lane.b32.xlu0 %v1426_v25, %s5312_s28  ;;  %vm1372_vm8 = vmpackc.low %vm1369_vm1, %vm1369_vm1  ;;  %v1309_v60 = vsel %vm1308_vm5, 65537, %v5311_v13  ;;  %v1730_v25 = vld [vmem:[%s1024_s16] sm:$0x3]  ;;  %s1028_s16 = scalar_lea.vmem %s5360_s13, %s5520_s0  ;;  %s5327_s0 = smov 118  }
  0x45   : > { %vm1323_vm9 = vmand %vm5588_vm0, %vm1322_vm4  ;;  %v1373_v61 = vsel %vm1372_vm8, 65537, %v5311_v13  ;;  %v1313_v1 = vrot.slane %v1309_v60, %v5556_v22 }
  0x46   : > { %vm1326_vm11 = vmpackc.low %vm1323_vm9, %vm1323_vm9  ;;  %v1377_v2 = vrot.slane %v1373_v61, %v5556_v22 }
  0x47   : > { %4939 = vmatmul.mubr.msk.bf16.vlgmr.msra.gmra.mrb[0].mxu0 %vm1091_vm2, %v5182_v6  ;;  %vm5611_vm13 = vmand %vm5582_vm15, %vm1285_vm6  ;;  %v1327_v4 = vsel %vm1326_vm11, 65537, %v5311_v13  ;;  %vm5321_vm11 = vmmov 0  }
  0x48   : > { %4942 = vmatprep.mubr.msk.bf16.mxu0 %vm1091_vm2, %v5183_v7  ;;  %vm1359_vm4 = vmpackc.low %vm5582_vm15, %vm5582_vm15  ;;  %v1331_v6 = vrot.slane %v1327_v4, %v5556_v22 }
  0x49   : > { %vm1344_vm14 = vmpackc.low %vm5611_vm13, %vm5611_vm13 }
  0x4a   : > { %vm1406_vm1 = vmpackc.low %vm5558_vm7, %vm5558_vm7 }
  0x4b   : > { %vm1286_vm5 = vmand %vm5588_vm0, %vm1285_vm6  ;;  %v1407_v10 = vsel %vm1406_vm1, 65537, %v5311_v13  ;;  %vm6825_vm0 = vcmask 261120  }
  0x4c   : > { %v1411_v15 = vrot.slane %v1407_v10, %v5556_v22  ;;  %4962 = vmatprep.mubr.msk.bf16.mxu1 %vm6825_vm0, %v5187_v18  ;;  %v2038_v18 = vand.u32 3, %v5539_v14 }
  0x4f   : > { %4943 = vmatmul.mubr.msk.bf16.gmra.mrb[4].mxu0 %vm1091_vm2, %v5184_v8  ;;  %v1345_v8 = vsel %vm1344_vm14, 65537, %v5311_v13 }
  0x50   : > { %4954 = vmatprep.mubr.msk.bf16.mxu0 %vm6824_vm3, %v5185_v9  ;;  %v1360_v9 = vsel %vm1359_vm4, 65537, %v5311_v13  ;;  %v1349_v11 = vrot.slane %v1345_v8, %v5556_v22  ;;  %v1828_v8 = vld [vmem:[%s5405_s24] sm:$0xff] }
  0x51   : > { %v1364_v12 = vrot.slane %v1360_v9, %v5556_v22 }
  0x53   : > { %vm1365_vm15 = vcmp.ne.s16.totalorder %v1364_v12, 0  ;;  %v1830_v12 = vld [vmem:[%s5405_s24 + $0x10] sm:$0xff] }
  0xb8   : > { %v1191_v39 = vpop.permute.xlu0 %1190  ;;  %v1201_v40 = vpop.permute.xlu1 %1200 }
  0xbc   : > { %v1196_v41 = vpop.permute.xlu0 %1195  ;;  %v1206_v45 = vpop.permute.xlu1 %1205 }
  0xc0   : > { %v1428_v44 = vpop.permute.xlu0 %1427 }
  0xc1   : > { %vm1429_vm10 = vcmp.ne.s16.totalorder %v1428_v44, 0 }
 0x11a   : > { %v4940_v26 = vpop.f32.mrb[0].mxu0 }
 0x11b   : > { %v1145_v27 = vpop.f32.mrb[1].mxu0 }
 0x11c   : > { %v4941_v28 = vpop.f32.mrb[2].mxu0 }
 0x11d   : > { %v1181_v29 = vpack.c.bf16 %v4941_v28, %v4940_v26  ;;  %v1148_v30 = vpop.f32.mrb[3].mxu0 }
 0x11e   : > { %v1180_v31 = vpack.c.bf16 %v1148_v30, %v1145_v27 }
 0x120   : > { %4946 = vmatprep.subr.bf16.mxu0 %v1180_v31 }
 0x121   : > { %4947 = vmatpush3.bf16.msra.mxu0 %v1180_v31  ;;  %v1762_v31 = vand.u32 %v1730_v25, %v5522_v3 }
 0x122   : > { %v4944_v32 = vpop.f32.mrb[4].mxu0  ;;  %4948 = vmatprep.subr.bf16.mxu0 %v1181_v29 }
 0x123   : > { %v1161_v33 = vpop.f32.mrb[5].mxu0 }
 0x124   : > { %v4945_v34 = vpop.f32.mrb[6].mxu0 }
 0x125   : > { %v1183_v35 = vpack.c.bf16 %v4945_v34, %v4944_v32  ;;  %v1164_v36 = vpop.f32.mrb[7].mxu0  ;;  %4949 = vmatpush3.bf16.msra.mxu0 %v1181_v29  ;;  %v5188_v29 = vld [vmem:[%s5445_s20 + $0x20] ss:$12 sps:$4 sm:$0xff]  }
 0x126   : > { %v1182_v37 = vpack.c.bf16 %v1164_v36, %v1161_v33  ;;  %v5320_v33 = vmov 0.0  }
 0x128   : > { %4950 = vmatprep.subr.bf16.mxu0 %v1182_v37 }
 0x129   : > { %4951 = vmatpush3.bf16.msra.mxu0 %v1182_v37 }
 0x12a   : > { %4952 = vmatprep.subr.bf16.mxu0 %v1183_v35 }
 0x12d   : > { %4953 = vmatpush3.bf16.msra.mxu0 %v1183_v35 }
 0x130   : > { %4955 = vmatmul.mubr.msk.bf16.vlgmr.msra.gmra.mrb[8].mxu0 %vm6824_vm3, %v5186_v38  ;;  %v5189_v38 = vld [vmem:[%s5375_s25] sm:$0xff]  }
 0x131   : > { %1654 = vmatprep.mubr.bf16.mxu0 %v5194_v63 }
 0x203   : > { %v4956_v42 = vpop.f32.mrb[8].mxu0 }
 0x204   : > { %v1259_v43 = vpop.f32.mrb[9].mxu0  ;;  %v1268_v47 = vadd.f32 %v4956_v42, %v1201_v40 }
 0x205   : > { %v4957_v46 = vpop.f32.mrb[10].mxu0  ;;  %v1260_v50 = vadd.f32 %v1259_v43, %v1191_v39 }
 0x206   : > { %v1271_v48 = vadd.f32 %v4957_v46, %v1206_v45  ;;  %v1262_v49 = vpop.f32.mrb[11].mxu0  ;;  %v5190_v45 = vld [vmem:[%s5375_s25 + $0x8] sm:$0xff]  }
 0x207   : > { %v1263_v51 = vadd.f32 %v1262_v49, %v1196_v41 }
 0x208   : > { %v5571_v52 = vpack.c.bf16 %v1271_v48, %v1268_v47 }
 0x209   : > { %v5573_v53 = vpack.c.bf16 %v1263_v51, %v1260_v50  ;;  %v5191_v51 = vld [vmem:[%s5375_s25 + $0x10] sm:$0xff]  }
 0x20a   : > { %v1431_v54 = vsel %vm1429_vm10, %v5571_v52, 0  ;;  %v1367_v21 = vsel %vm1365_vm15, %v5571_v52, 0 }
 0x20b   : > { %1480 = vrot.lane.b32.xlu0 %v1431_v54, %s5313_s1  ;;  %v1430_v55 = vsel %vm1429_vm10, %v5573_v53, 0  ;;  %vm1387_vm10 = vmand %vm5558_vm7, %vm1285_vm6  ;;  %v1366_v20 = vsel %vm1365_vm15, %v5573_v53, 0 }
 0x20c   : > { %1478 = vrot.lane.b32.xlu1 %v1430_v55, %s5313_s1  ;;  %vm1391_vm12 = vmpackc.low %vm1387_vm10, %vm1387_vm10 }
 0x20d   : > { %v1392_v5 = vsel %vm1391_vm12, 65537, %v5311_v13  ;;  %vm1291_vm7 = vmpackc.low %vm1286_vm5, %vm1286_vm5 }
 0x20e   : > { %v1396_v7 = vrot.slane %v1392_v5, %v5556_v22  ;;  %v1292_v16 = vsel %vm1291_vm7, 65537, %v5311_v13 }
 0x20f   : > { %v1296_v17 = vrot.slane %v1292_v16, %v5556_v22 }
 0x27d   : > { %v1481_v62 = vpop.permute.xlu0 %1480 }
 0x27e   : > { %1580 = vrot.lane.b32.xlu0 %v1481_v62, %s5312_s28  ;;  %v1479_v0 = vpop.permute.xlu1 %1478 }
 0x27f   : > { %1578 = vrot.lane.b32.xlu1 %v1479_v0, %s5312_s28 }
 0x282   : > { %1314 = vrot.lane.b32.xlu0 %v1313_v1, %s6822_s2 }
 0x283   : > { %1378 = vrot.lane.b32.xlu1 %v1377_v2, %s5315_s7 }
 0x286   : > { %1332 = vrot.lane.b32.xlu0 %v1331_v6, %s6847_s10 }
 0x287   : > { %1397 = vrot.lane.b32.xlu1 %v1396_v7, %s5315_s7  ;;  %v1829_v7 = vld [vmem:[%s5405_s24 + $0x8] sm:$0xff] }
 0x28a   : > { %1350 = vrot.lane.b32.xlu0 %v1349_v11, %s6847_s10  ;;  %v1831_v11 = vld [vmem:[%s5405_s24 + $0x18] sm:$0xff] }
 0x28b   : > { %1412 = vrot.lane.b32.xlu1 %v1411_v15, %s5317_s11  ;;  %s5323_s11 = smov 4  }
 0x28e   : > { %1454 = vrot.lane.b32.xlu0 %v1366_v20, %s5318_s15  ;;  %v5720_v20 = vadd.s32 1, %v2038_v18 }
 0x28f   : > { %1297 = vrot.lane.b32.xlu1 %v1296_v17, %s5318_s15  ;;  %v2037_v17 = vshra.s32 %v5539_v14, 2 }
 0x290   : > { %vm2081_vm7 = vcmp.lt.s32.totalorder %v5720_v20, 4 }
 0x291   : > { %vm2096_vm14 = vcmp.ge.s32.totalorder %v2037_v17, 0  ;;  %vm2097_vm1 = vcmp.lt.s32.totalorder %v2037_v17, 4  ;;  %v2039_v25 = vadd.s32 4294967295, %v2037_v17 }
 0x292   : > { %vm5722_vm5 = vmand %vm2096_vm14, %vm2097_vm1 }
 0x293   : > { %1456 = vrot.lane.b32.xlu1 %v1367_v21, %s5318_s15  ;;  %v2043_v21 = vadd.s32 4294967295, %v2038_v18  ;;  %vm2128_vm15 = vmand %vm5722_vm5, %vm2081_vm7  ;;  %v5200_v18 = vld [vmem:[%s5400_s19 + $0x8] sm:$0xff]  }
 0x2f0   : > { %v1581_v23 = vpop.permute.xlu0 %1580 }
 0x2f1   : > { %v1579_v24 = vpop.permute.xlu1 %1578 }
 0x2f2   : > { %4958 = vmatprep.subr.bf16.mxu1 %v1579_v24 }
 0x2f3   : > { %4959 = vmatpush3.bf16.msra.mxu1 %v1579_v24  ;;  %v2142_v24 = vadd.s32 1, %v2037_v17  ;;  %v5199_v17 = vld [vmem:[%s5430_s27] sm:$0xff]  }
 0x2f4   : > { %v1315_v26 = vpop.permute.xlu0 %1314  ;;  %4960 = vmatprep.subr.bf16.mxu1 %v1581_v23 }
 0x2f5   : > { %vm1316_vm6 = vcmp.ne.s16.totalorder %v1315_v26, 0  ;;  %v1379_v27 = vpop.permute.xlu1 %1378 }
 0x2f6   : > { %vm1380_vm8 = vcmp.ne.s16.totalorder %v1379_v27, 0  ;;  %v1317_v28 = vsel %vm1316_vm6, %v5573_v53, 0  ;;  %v1318_v35 = vsel %vm1316_vm6, %v5571_v52, 0  ;;  %vm2044_vm6 = vcmp.ge.s32.totalorder %v2043_v21, 0  ;;  %v5201_v21 = vld [vmem:[%s5430_s27 + $0x8] sm:$0xff]  }
 0x2f7   : > { %4961 = vmatpush3.bf16.msra.mxu1 %v1581_v23  ;;  %1434 = vrot.lane.b32.xlu1 %v1317_v28, %s6847_s10  ;;  %v1381_v30 = vsel %vm1380_vm8, %v5573_v53, 0  ;;  %v1382_v36 = vsel %vm1380_vm8, %v5571_v52, 0  ;;  %vm2143_vm8 = vcmp.ge.s32.totalorder %v2142_v24, 0 }
 0x2f8   : > { %v1333_v32 = vpop.permute.xlu0 %1332  ;;  %1460 = vrot.lane.b32.xlu0 %v1381_v30, %s5319_s18  ;;  %4966 = vmatprep.subr.bf16.mxu1 %v5320_v33 }
 0x2f9   : > { %v1398_v34 = vpop.permute.xlu1 %1397  ;;  %vm1334_vm9 = vcmp.ne.s16.totalorder %v1333_v32, 0 }
 0x2fa   : > { %4963 = vmatmul.mubr.msk.bf16.vlgmr.msra.gmra.mrb[0].mxu1 %vm6825_vm0, %v5188_v29  ;;  %vm1399_vm10 = vcmp.ne.s16.totalorder %v1398_v34, 0  ;;  %v1335_v37 = vsel %vm1334_vm9, %v5573_v53, 0  ;;  %v1336_v42 = vsel %vm1334_vm9, %v5571_v52, 0  ;;  %vm2144_vm9 = vcmp.lt.s32.totalorder %v2142_v24, 4  ;;  %v5202_v24 = vld [vmem:[%s5430_s27 + $0x10] sm:$0xff]  }
 0x2fb   : > { %1436 = vrot.lane.b32.xlu1 %v1318_v35, %s6847_s10  ;;  %4967 = vmatpush3.bf16.msra.mxu1 %v1762_v31  ;;  %v1400_v39 = vsel %vm1399_vm10, %v5573_v53, 0  ;;  %v1401_v43 = vsel %vm1399_vm10, %v5571_v52, 0  ;;  %vm2131_vm10 = vmpackc.low %vm2128_vm15, %vm2128_vm15 }
 0x2fc   : > { %1462 = vrot.lane.b32.xlu0 %v1382_v36, %s5319_s18  ;;  %4968 = vmatprep.mubr.msk.bf16.mxu1 %vm5321_vm11, %v5320_v33  ;;  %v1351_v40 = vpop.permute.xlu0 %1350  ;;  %v2132_v26 = vsel %vm2131_vm10, 65537, %v5311_v13 }
 0x2fd   : > { %v1413_v41 = vpop.permute.xlu1 %1412  ;;  %vm1352_vm12 = vcmp.ne.s16.totalorder %v1351_v40, 0  ;;  %v2136_v28 = vrot.slane %v2132_v26, %v5556_v22  ;;  %v5204_v26 = vld [vmem:[%s5430_s27 + $0x20] sm:$0xff]  }
 0x2fe   : > { %vm1414_vm13 = vcmp.ne.s16.totalorder %v1413_v41, 0  ;;  %v1353_v44 = vsel %vm1352_vm12, %v5573_v53, 0  ;;  %v1354_v48 = vsel %vm1352_vm12, %v5571_v52, 0  ;;  %vm2040_vm12 = vcmp.ge.s32.totalorder %v2039_v25, 0 }
 0x2ff   : > { %1441 = vrot.lane.b32.xlu1 %v1335_v37, %s6822_s2  ;;  %v1415_v46 = vsel %vm1414_vm13, %v5573_v53, 0  ;;  %v1416_v49 = vsel %vm1414_vm13, %v5571_v52, 0  ;;  %vm2041_vm13 = vcmp.lt.s32.totalorder %v2039_v25, 4  ;;  %v5203_v25 = vld [vmem:[%s5430_s27 + $0x18] sm:$0xff]  }
 0x300   : > { %1466 = vrot.lane.b32.xlu0 %v1400_v39, %s5319_s18  ;;  %v1455_v54 = vpop.permute.xlu0 %1454  ;;  %vm2042_vm1 = vmand %vm2040_vm12, %vm2041_vm13 }
 0x301   : > { %v1298_v47 = vpop.permute.xlu1 %1297  ;;  %vm2067_vm15 = vmpackc.low %vm2042_vm1, %vm2042_vm1 }
 0x302   : > { %4969 = vmatmul.mubr.msk.bf16.vlgmr.msra.gmra.mrb[4].mxu1 %vm1091_vm2, %v5189_v38  ;;  %vm1299_vm4 = vcmp.ne.s16.totalorder %v1298_v47, 0  ;;  %v2068_v31 = vsel %vm2067_vm15, 65537, %v5311_v13  ;;  %vm2045_vm12 = vmand %vm2042_vm1, %vm2044_vm6 }
 0x303   : > { %1443 = vrot.lane.b32.xlu1 %v1336_v42, %s6822_s2  ;;  %4972 = vmatprep.mubr.msk.bf16.mxu1 %vm5321_vm11, %v5320_v33  ;;  %v1300_v50 = vsel %vm1299_vm4, %v5573_v53, 0  ;;  %v1301_v55 = vsel %vm1299_vm4, %v5571_v52, 0  ;;  %v2072_v32 = vrot.slane %v2068_v31, %v5556_v22  ;;  %vm2050_vm13 = vmpackc.low %vm2045_vm12, %vm2045_vm12 }
 0x304   : > { %1468 = vrot.lane.b32.xlu0 %v1401_v43, %s5319_s18  ;;  %v2051_v37 = vsel %vm2050_vm13, 65537, %v5311_v13 }
 0x305   : > { %v1457_v56 = vpop.permute.xlu1 %1456  ;;  %v2055_v38 = vrot.slane %v2051_v37, %v5556_v22 }
 0x307   : > { %1448 = vrot.lane.b32.xlu1 %v1353_v44, %s6822_s2 }
 0x308   : > { %1472 = vrot.lane.b32.xlu0 %v1415_v46, %s5322_s26 }
 0x30a   : > { %4973 = vmatmul.mubr.msk.bf16.gmra.mrb[8].mxu1 %vm1091_vm2, %v5190_v45 }
 0x30b   : > { %1450 = vrot.lane.b32.xlu1 %v1354_v48, %s6822_s2  ;;  %4976 = vmatprep.mubr.msk.bf16.mxu1 %vm5321_vm11, %v5320_v33  ;;  %vm5732_vm11 = vmand %vm2143_vm8, %vm2144_vm9 }
 0x30c   : > { %1474 = vrot.lane.b32.xlu0 %v1416_v49, %s5322_s26  ;;  %vm2146_vm4 = vmand %vm5732_vm11, %vm2044_vm6 }
 0x30d   : > { %vm2150_vm14 = vmpackc.low %vm2146_vm4, %vm2146_vm4 }
 0x30e   : > { %v2151_v29 = vsel %vm2150_vm14, 65537, %v5311_v13  ;;  %vm2165_vm8 = vmpackc.low %vm5732_vm11, %vm5732_vm11 }
 0x30f   : > { %1546 = vrot.lane.b32.xlu1 %v1300_v50, %s5312_s28  ;;  %v2155_v30 = vrot.slane %v2151_v29, %v5556_v22  ;;  %v2166_v33 = vsel %vm2165_vm8, 65537, %v5311_v13  ;;  %vm2082_vm9 = vmand %vm2042_vm1, %vm2081_vm7  ;;  %v5206_v29 = vld [vmem:[%s5430_s27 + $0x30] sm:$0xff]  }
 0x310   : > { %1562 = vrot.lane.b32.xlu0 %v1455_v54, %s5312_s28  ;;  %v2170_v34 = vrot.slane %v2166_v33, %v5556_v22  ;;  %vm2085_vm10 = vmpackc.low %vm2082_vm9, %vm2082_vm9 }
 0x311   : > { %v2086_v35 = vsel %vm2085_vm10, 65537, %v5311_v13  ;;  %vm2099_vm4 = vmand %vm5722_vm5, %vm2044_vm6  ;;  %vm1862_vm6 = vcmask 392192  }
 0x312   : > { %4977 = vmatmul.mubr.msk.bf16.gmra.mrb[12].mxu1 %vm1091_vm2, %v5191_v51  ;;  %v2090_v36 = vrot.slane %v2086_v35, %v5556_v22  ;;  %vm2103_vm14 = vmpackc.low %vm2099_vm4, %vm2099_vm4 }
 0x313   : > { %1548 = vrot.lane.b32.xlu1 %v1301_v55, %s5312_s28  ;;  %v2104_v39 = vsel %vm2103_vm14, 65537, %v5311_v13  ;;  %vm2118_vm1 = vmpackc.low %vm5722_vm5, %vm5722_vm5 }
 0x314   : > { %1564 = vrot.lane.b32.xlu0 %v1457_v56, %s5312_s28  ;;  %v2108_v40 = vrot.slane %v2104_v39, %v5556_v22  ;;  %vm2177_vm14 = vmand %vm5732_vm11, %vm2081_vm7 }
 0x369   : > { %v1435_v57 = vpop.permute.xlu1 %1434 }
 0x36a   : > { %v1461_v58 = vpop.permute.xlu0 %1460  ;;  %1550 = vrot.lane.b32.xlu1 %v1435_v57, %s5312_s28 }
 0x36b   : > { %1566 = vrot.lane.b32.xlu0 %v1461_v58, %s5312_s28 }
 0x36d   : > { %v1437_v59 = vpop.permute.xlu1 %1436 }
 0x36e   : > { %v1463_v60 = vpop.permute.xlu0 %1462  ;;  %1552 = vrot.lane.b32.xlu1 %v1437_v59, %s5312_s28 }
 0x36f   : > { %1568 = vrot.lane.b32.xlu0 %v1463_v60, %s5312_s28 }
 0x371   : > { %v1442_v61 = vpop.permute.xlu1 %1441 }
 0x372   : > { %v1467_v62 = vpop.permute.xlu0 %1466  ;;  %1554 = vrot.lane.b32.xlu1 %v1442_v61, %s5312_s28 }
 0x373   : > { %1570 = vrot.lane.b32.xlu0 %v1467_v62, %s5312_s28 }
 0x375   : > { %v1444_v0 = vpop.permute.xlu1 %1443 }
 0x376   : > { %v1469_v1 = vpop.permute.xlu0 %1468  ;;  %1556 = vrot.lane.b32.xlu1 %v1444_v0, %s5312_s28 }
 0x377   : > { %1572 = vrot.lane.b32.xlu0 %v1469_v1, %s5312_s28 }
 0x379   : > { %v1449_v2 = vpop.permute.xlu1 %1448 }
 0x37a   : > { %v1473_v4 = vpop.permute.xlu0 %1472  ;;  %1558 = vrot.lane.b32.xlu1 %v1449_v2, %s5312_s28 }
 0x37b   : > { %1574 = vrot.lane.b32.xlu0 %v1473_v4, %s5312_s28 }
 0x37d   : > { %v1451_v5 = vpop.permute.xlu1 %1450 }
 0x37e   : > { %v1475_v6 = vpop.permute.xlu0 %1474  ;;  %1560 = vrot.lane.b32.xlu1 %v1451_v5, %s5312_s28 }
 0x37f   : > { %1576 = vrot.lane.b32.xlu0 %v1475_v6, %s5312_s28 }
 0x381   : > { %v1547_v9 = vpop.permute.xlu1 %1546 }
 0x382   : > { %v1563_v10 = vpop.permute.xlu0 %1562  ;;  %1839 = vperm.xlu1 %5180, %v1829_v7  }
 0x383   : > { %1834 = vperm.xlu0 %5179, %v1828_v8   ;;  %4804 = vmatprep.subr.bf16.mxu0 %v1563_v10 }
 0x384   : > { %4805 = vmatpush3.bf16.msra.mxu0 %v1547_v9 }
 0x385   : > { %v1549_v16 = vpop.permute.xlu1 %1548 }
 0x386   : > { %v1565_v15 = vpop.permute.xlu0 %1564  ;;  %1849 = vperm.xlu1 %5180, %v1831_v11   ;;  %v5192_v11 = vld [vmem:[%s5445_s20] ss:$12 sps:$4 sm:$0xff]  }
 0x387   : > { %1844 = vperm.xlu0 %5179, %v1830_v12   ;;  %4806 = vmatprep.subr.bf16.mxu0 %v1565_v15  ;;  %v5195_v12 = vld [vmem:[%s5445_s20 + $0x1c] ss:$12 sps:$4 sm:$0xff]   ;;  %v5197_v15 = vld [vmem:[%s5445_s20 + $0x18] ss:$12 sps:$4 sm:$0xff]  }
 0x388   : > { %4807 = vmatpush3.bf16.msra.mxu0 %v1549_v16  ;;  %v5198_v16 = vld [vmem:[%s5400_s19] sm:$0xff]  }
 0x38a   : > { %2073 = vrot.lane.b32.xlu1 %v2072_v32, %s5319_s18 }
 0x38b   : > { %2137 = vrot.lane.b32.xlu0 %v2136_v28, %s5315_s7  ;;  %v5205_v28 = vld [vmem:[%s5430_s27 + $0x28] sm:$0xff]  }
 0x38e   : > { %2091 = vrot.lane.b32.xlu1 %v2090_v36, %s5318_s15  ;;  %s5326_s15 = smov 5  }
 0x38f   : > { %2156 = vrot.lane.b32.xlu0 %v2155_v30, %s5312_s28  ;;  %v5207_v30 = vld [vmem:[%s5430_s27 + $0x38] sm:$0xff]   ;;  %s5324_s28 = smov 120  }
 0x392   : > { %2109 = vrot.lane.b32.xlu1 %v2108_v40, %s6847_s10 }
 0x393   : > { %2171 = vrot.lane.b32.xlu0 %v2170_v34, %s5323_s11  ;;  %s5330_s11 = smov 8  }
 0x397   : > { %2056 = vrot.lane.b32.xlu0 %v2055_v38, %s5322_s26 }
 0x3cd   : > { %v5767_v41 = vpop.f32.mrb[0].mxu1 }
 0x3ce   : > { %v5769_v42 = vpop.f32.mrb[1].mxu1 }
 0x3cf   : > { %v5771_v43 = vpop.f32.mrb[2].mxu1 }
 0x3d0   : > { %v5773_v44 = vpop.f32.mrb[3].mxu1 }
 0x3d5   : > { %v1798_v45 = vpop.f32.mrb[4].mxu1 }
 0x3d6   : > { %v4970_v46 = vpop.f32.mrb[5].mxu1 }
 0x3d7   : > { %v1801_v47 = vpop.f32.mrb[6].mxu1 }
 0x3d8   : > { %v1825_v48 = vpack.c.bf16 %v1801_v47, %v1798_v45  ;;  %v4971_v49 = vpop.f32.mrb[7].mxu1  ;;  %v2119_v47 = vsel %vm2118_vm1, 65537, %v5311_v13 }
 0x3d9   : > { %v2123_v49 = vrot.slane %v2119_v47, %v5556_v22  ;;  %v5210_v47 = vld [vmem:[%s5455_s17 + $0x4] ss:$12 sps:$4 sm:$0xff]  }
 0x3da   : > { %2410 = vmatprep.mubr.bf16.mxu1 %v5210_v47 }
 0x3db   : > { %vm2124_vm15 = vcmp.ne.s16.totalorder %v2123_v49, 0 }
 0x3dc   : > { %v1551_v50 = vpop.permute.xlu1 %1550 }
 0x3dd   : > { %v1567_v51 = vpop.permute.xlu0 %1566  ;;  %v1806_v54 = vpop.f32.mrb[8].mxu1 }
 0x3de   : > { %4808 = vmatprep.subr.bf16.mxu0 %v1567_v51  ;;  %v4974_v55 = vpop.f32.mrb[9].mxu1 }
 0x3df   : > { %4809 = vmatpush3.bf16.msra.mxu0 %v1551_v50  ;;  %v1809_v56 = vpop.f32.mrb[10].mxu1 }
 0x3e0   : > { %v1553_v57 = vpop.permute.xlu1 %1552  ;;  %v1826_v58 = vpack.c.bf16 %v1809_v56, %v1806_v54  ;;  %v4975_v59 = vpop.f32.mrb[11].mxu1 }
 0x3e1   : > { %v1569_v60 = vpop.permute.xlu0 %1568 }
 0x3e2   : > { %4810 = vmatprep.subr.bf16.mxu0 %v1569_v60 }
 0x3e3   : > { %4811 = vmatpush3.bf16.msra.mxu0 %v1553_v57 }
 0x3e4   : > { %v1555_v61 = vpop.permute.xlu1 %1554 }
 0x3e5   : > { %v1571_v62 = vpop.permute.xlu0 %1570  ;;  %v1814_v63 = vpop.f32.mrb[12].mxu1 }
 0x3e6   : > { %4812 = vmatprep.subr.bf16.mxu0 %v1571_v62  ;;  %v4978_v0 = vpop.f32.mrb[13].mxu1 }
 0x3e7   : > { %4813 = vmatpush3.bf16.msra.mxu0 %v1555_v61  ;;  %v1817_v1 = vpop.f32.mrb[14].mxu1 }
 0x3e8   : > { %v1557_v2 = vpop.permute.xlu1 %1556  ;;  %v1827_v4 = vpack.c.bf16 %v1817_v1, %v1814_v63  ;;  %v4979_v5 = vpop.f32.mrb[15].mxu1 }
 0x3e9   : > { %v1573_v6 = vpop.permute.xlu0 %1572 }
 0x3ea   : > { %4814 = vmatprep.subr.bf16.mxu0 %v1573_v6 }
 0x3eb   : > { %4815 = vmatpush3.bf16.msra.mxu0 %v1557_v2 }
 0x3ec   : > { %v1559_v7 = vpop.permute.xlu1 %1558 }
 0x3ed   : > { %v1575_v8 = vpop.permute.xlu0 %1574 }
 0x3ee   : > { %4816 = vmatprep.subr.bf16.mxu0 %v1575_v8 }
 0x3ef   : > { %4817 = vmatpush3.bf16.msra.mxu0 %v1559_v7 }
 0x3f0   : > { %v1561_v10 = vpop.permute.xlu1 %1560 }
 0x3f1   : > { %v1577_v9 = vpop.permute.xlu0 %1576 }
 0x3f2   : > { %4818 = vmatprep.subr.bf16.mxu0 %v1577_v9 }
 0x3f3   : > { %4819 = vmatpush3.bf16.msra.mxu0 %v1561_v10 }
 0x3f4   : > { %4980 = vmatprep.subr.bf16.mxu0 %v1825_v48 }
 0x3f6   : > { %1655 = vmatmul.mubr.bf16.vlgmr.msra.gmra.mrb[12].mxu0 %v5192_v11 }
 0x3f7   : > { %4981 = vmatpush3.bf16.msra.mxu0 %v1825_v48  ;;  %1662 = vmatprep.mubr.bf16.mxu0 %v5195_v12 }
 0x3f8   : > { %4982 = vmatprep.subr.bf16.mxu0 %v1826_v58 }
 0x3fb   : > { %4983 = vmatpush3.bf16.msra.mxu0 %v1826_v58 }
 0x3fc   : > { %4984 = vmatprep.subr.bf16.mxu0 %v1827_v4 }
 0x3fe   : > { %1663 = vmatmul.mubr.bf16.gmra.mrb[16].mxu0 %v5197_v15 }
 0x3ff   : > { %4985 = vmatpush3.bf16.msra.mxu0 %v1827_v4  ;;  %4986 = vmatprep.mubr.msk.bf16.mxu0 %vm1862_vm6, %v5198_v16 }
 0x400   : > { %4990 = vmatprep.subr.bf16.mxu0 %v5199_v17 }
 0x402   : > { %v1835_v46 = vpop.permute.xlu0 %1834 }
 0x406   : > { %4987 = vmatmul.mubr.msk.bf16.vlgmr.msra.gmra.mrb[20].mxu0 %vm1862_vm6, %v5200_v18  ;;  %v1845_v54 = vpop.permute.xlu0 %1844  ;;  %vm2180_vm6 = vmpackc.low %vm2177_vm14, %vm2177_vm14 }
 0x407   : > { %4991 = vmatpush3.bf16.msra.mxu0 %v5199_v17  ;;  %5006 = vmatprep.mubr.bf16.mxu0 %v5573_v53  ;;  %v2181_v49 = vsel %vm2180_vm6, 65537, %v5311_v13 }
 0x408   : > { %4992 = vmatprep.subr.bf16.mxu0 %v5201_v21  ;;  %v2185_v20 = vrot.slane %v2181_v49, %v5556_v22 }
 0x40a   : > { %v2138_v0 = vpop.permute.xlu0 %2137 }
 0x40b   : > { %4993 = vmatpush3.bf16.msra.mxu0 %v5201_v21  ;;  %vm2139_vm8 = vcmp.ne.s16.totalorder %v2138_v0, 0 }
 0x40c   : > { %4994 = vmatprep.subr.bf16.mxu0 %v5202_v24 }
 0x40e   : > { %v2157_v7 = vpop.permute.xlu0 %2156 }
 0x40f   : > { %4995 = vmatpush3.bf16.msra.mxu0 %v5202_v24  ;;  %vm2158_vm10 = vcmp.ne.s16.totalorder %v2157_v7, 0 }
 0x410   : > { %4996 = vmatprep.subr.bf16.mxu0 %v5203_v25 }
 0x412   : > { %v2172_v12 = vpop.permute.xlu0 %2171 }
 0x413   : > { %4997 = vmatpush3.bf16.msra.mxu0 %v5203_v25  ;;  %vm2173_vm13 = vcmp.ne.s16.totalorder %v2172_v12, 0 }
 0x414   : > { %4998 = vmatprep.subr.bf16.mxu0 %v5204_v26 }
 0x416   : > { %v2057_v21 = vpop.permute.xlu0 %2056 }
 0x417   : > { %4999 = vmatpush3.bf16.msra.mxu0 %v5204_v26  ;;  %vm2058_vm4 = vcmp.ne.s16.totalorder %v2057_v21, 0 }
 0x418   : > { %5000 = vmatprep.subr.bf16.mxu0 %v5205_v28 }
 0x41b   : > { %5001 = vmatpush3.bf16.msra.mxu0 %v5205_v28 }
 0x41c   : > { %5002 = vmatprep.subr.bf16.mxu0 %v5206_v29 }
 0x41f   : > { %5003 = vmatpush3.bf16.msra.mxu0 %v5206_v29 }
 0x420   : > { %5004 = vmatprep.subr.bf16.mxu0 %v5207_v30 }
 0x423   : > { %5005 = vmatpush3.bf16.msra.mxu0 %v5207_v30 }
 0x426   : > { %5007 = vmatmul.mubr.bf16.vlgmr.msra.gmra.mrb[20].mxu0 %v5571_v52  ;;  %v1840_v52 = vpop.permute.xlu1 %1839 }
 0x42a   : > { %v1850_v50 = vpop.permute.xlu1 %1849 }
 0x42e   : > { %v2074_v62 = vpop.permute.xlu1 %2073 }
 0x42f   : > { %vm2075_vm5 = vcmp.ne.s16.totalorder %v2074_v62, 0 }
 0x432   : > { %v2092_v5 = vpop.permute.xlu1 %2091 }
 0x433   : > { %vm2093_vm9 = vcmp.ne.s16.totalorder %v2092_v5, 0 }
 0x436   : > { %v2110_v11 = vpop.permute.xlu1 %2109 }
 0x437   : > { %vm2111_vm12 = vcmp.ne.s16.totalorder %v2110_v11, 0 }
 0x4c9   : > { %v4820_v53 = vpop.f32.mrb[12].mxu0 }
 0x4ca   : > { %v4821_v31 = vpop.f32.mrb[13].mxu0 }
 0x4cb   : > { %v5790_v32 = vadd.f32 %v4821_v31, %v4820_v53  ;;  %v4823_v33 = vpop.f32.mrb[14].mxu0 }
 0x4cc   : > { %v4824_v34 = vpop.f32.mrb[15].mxu0 }
 0x4cd   : > { %v5792_v35 = vadd.f32 %v4824_v34, %v4823_v33 }
 0x4d1   : > { %v4826_v36 = vpop.f32.mrb[16].mxu0 }
 0x4d2   : > { %v4827_v37 = vpop.f32.mrb[17].mxu0 }
 0x4d3   : > { %v5794_v38 = vadd.f32 %v4827_v37, %v4826_v36  ;;  %v4829_v39 = vpop.f32.mrb[18].mxu0 }
 0x4d4   : > { %v4830_v40 = vpop.f32.mrb[19].mxu0 }
 0x4d5   : > { %v5796_v45 = vadd.f32 %v4830_v40, %v4829_v39 }
 0x4f9   : > { %v5008_v48 = vpop.f32.mrb[20].mxu0 }
 0x4fa   : > { %v2016_v51 = vpop.f32.mrb[21].mxu0  ;;  %v5060_v56 = vadd.f32 %v5008_v48, %v1845_v54 }
 0x4fb   : > { %v5009_v55 = vpop.f32.mrb[22].mxu0  ;;  %v5061_v59 = vadd.f32 %v2016_v51, %v1835_v46 }
 0x4fc   : > { %v5062_v57 = vadd.f32 %v5009_v55, %v1850_v50  ;;  %v2019_v58 = vpop.f32.mrb[23].mxu0 }
 0x4fd   : > { %v5063_v60 = vadd.f32 %v2019_v58, %v1840_v52 }
 0x4fe   : > { %v5803_v23 = vpack.c.bf16 %v5062_v57, %v5060_v56 }
 0x4ff   : > { %v5805_v61 = vpack.c.bf16 %v5063_v60, %v5061_v59 }
 0x500   : > { %v2126_v63 = vsel %vm2124_vm15, %v5803_v23, 0  ;;  %v2077_v6 = vsel %vm2075_vm5, %v5803_v23, 0  ;;  %v2141_v8 = vsel %vm2139_vm8, %v5803_v23, 0  ;;  %v2095_v15 = vsel %vm2093_vm9, %v5803_v23, 0 }
 0x501   : > { %2213 = vrot.lane.b32.xlu0 %v2126_v63, %s5322_s26  ;;  %v2125_v1 = vsel %vm2124_vm15, %v5805_v61, 0  ;;  %v2076_v2 = vsel %vm2075_vm5, %v5805_v61, 0  ;;  %v2140_v4 = vsel %vm2139_vm8, %v5805_v61, 0  ;;  %v2094_v9 = vsel %vm2093_vm9, %v5805_v61, 0 }
 0x502   : > { %2211 = vrot.lane.b32.xlu1 %v2125_v1, %s5322_s26  ;;  %v2159_v10 = vsel %vm2158_vm10, %v5805_v61, 0  ;;  %v2160_v16 = vsel %vm2158_vm10, %v5803_v23, 0  ;;  %v2112_v17 = vsel %vm2111_vm12, %v5805_v61, 0  ;;  %v2174_v18 = vsel %vm2173_vm13, %v5805_v61, 0  ;;  %s5329_s26 = smov 121  }
 0x503   : > { %v2113_v24 = vsel %vm2111_vm12, %v5803_v23, 0  ;;  %v2175_v25 = vsel %vm2173_vm13, %v5803_v23, 0  ;;  %v2059_v26 = vsel %vm2058_vm4, %v5805_v61, 0  ;;  %v2060_v28 = vsel %vm2058_vm4, %v5803_v23, 0 }
 0x505   : > { %2193 = vrot.lane.b32.xlu0 %v2076_v2, %s6847_s10 }
 0x506   : > { %2217 = vrot.lane.b32.xlu1 %v2140_v4, %s5313_s1  ;;  %v2481_v4 = vld [vmem:[%s1028_s16] sm:$0x3]  ;;  %s6891_s16 = sld [smem:[#allocation9_spill]] }
 0x507   : > { %v2503_v5 = vand.u32 %v2481_v4, %v5522_v3 }
 0x509   : > { %2195 = vrot.lane.b32.xlu0 %v2077_v6, %s6847_s10 }
 0x50a   : > { %2219 = vrot.lane.b32.xlu1 %v2141_v8, %s5313_s1  ;;  %s5325_s1 = smov 119   ;;  %v5208_v8 = vld [vmem:[%s5455_s17] ss:$12 sps:$4 sm:$0xff]  }
 0x50d   : > { %2199 = vrot.lane.b32.xlu0 %v2094_v9, %s6822_s2  ;;  %v5211_v9 = vld [vmem:[%s5455_s17 + $0x1c] ss:$12 sps:$4 sm:$0xff]  }
 0x50e   : > { %2223 = vrot.lane.b32.xlu1 %v2159_v10, %s5324_s28 }
 0x511   : > { %2201 = vrot.lane.b32.xlu0 %v2095_v15, %s6822_s2  ;;  %v5213_v15 = vld [vmem:[%s5455_s17 + $0x18] ss:$12 sps:$4 sm:$0xff]  }
 0x512   : > { %2225 = vrot.lane.b32.xlu1 %v2160_v16, %s5324_s28  ;;  %v5214_v16 = vld [vmem:[%s5380_s29] sm:$0xff]  }
 0x515   : > { %2205 = vrot.lane.b32.xlu0 %v2112_v17, %s5319_s18  ;;  %v5215_v17 = vld [vmem:[%s5380_s29 + $0x8] sm:$0xff]  }
 0x516   : > { %2229 = vrot.lane.b32.xlu1 %v2174_v18, %s5325_s1  ;;  %v5216_v18 = vld [vmem:[%s5455_s17 + $0x8] ss:$12 sps:$4 sm:$0xff]  }
 0x517   : > { %5014 = vmatprep.mubr.msk.bf16.mxu0 %vm6825_vm0, %v5216_v18 }
 0x519   : > { %2207 = vrot.lane.b32.xlu0 %v2113_v24, %s5319_s18  ;;  %s5328_s18 = smov 7  }
 0x51a   : > { %2231 = vrot.lane.b32.xlu1 %v2175_v25, %s5325_s1  ;;  %v2561_v25 = vld [vmem:[%s6870_s6 + $0x8] sm:$0xff] }
 0x51d   : > { %2303 = vrot.lane.b32.xlu0 %v2059_v26, %s5326_s15  ;;  %v2560_v26 = vld [vmem:[%s6870_s6] sm:$0xff] }
 0x521   : > { %2305 = vrot.lane.b32.xlu0 %v2060_v28, %s5326_s15  ;;  %v2563_v28 = vld [vmem:[%s6870_s6 + $0x18] sm:$0xff] }
 0x573   : > { %v2214_v29 = vpop.permute.xlu0 %2213 }
 0x574   : > { %v2212_v30 = vpop.permute.xlu1 %2211 }
 0x575   : > { %2319 = vrot.lane.b32.xlu1 %v2212_v30, %s5326_s15  ;;  %v2768_v30 = vshra.s32 %v5539_v14, 3 }
 0x577   : > { %v2194_v53 = vpop.permute.xlu0 %2193  ;;  %vm2827_vm11 = vcmp.ge.s32.totalorder %v2768_v30, 0  ;;  %vm2828_vm1 = vcmp.lt.s32.totalorder %v2768_v30, 8 }
 0x578   : > { %2307 = vrot.lane.b32.xlu0 %v2194_v53, %s5326_s15  ;;  %v2218_v31 = vpop.permute.xlu1 %2217  ;;  %v2769_v53 = vand.u32 7, %v5539_v14  ;;  %vm5887_vm15 = vmand %vm2827_vm11, %vm2828_vm1 }
 0x579   : > { %2321 = vrot.lane.b32.xlu1 %v2214_v29, %s5326_s15  ;;  %v2562_v29 = vld [vmem:[%s6870_s6 + $0x10] sm:$0xff]  ;;  %s6922_s6 = smov 111  }
 0x57b   : > { %v2196_v33 = vpop.permute.xlu0 %2195 }
 0x57c   : > { %2309 = vrot.lane.b32.xlu0 %v2196_v33, %s5326_s15  ;;  %v2220_v34 = vpop.permute.xlu1 %2219  ;;  %v2770_v33 = vadd.s32 4294967295, %v2768_v30 }
 0x57d   : > { %2323 = vrot.lane.b32.xlu1 %v2218_v31, %s5326_s15  ;;  %v5885_v31 = vadd.s32 1, %v2769_v53 }
 0x57e   : > { %vm2771_vm8 = vcmp.ge.s32.totalorder %v2770_v33, 0  ;;  %vm2772_vm9 = vcmp.lt.s32.totalorder %v2770_v33, 8  ;;  %v5225_v33 = vld [vmem:[%s6891_s16 + $0x28] sm:$0xff]  }
 0x57f   : > { %v2200_v36 = vpop.permute.xlu0 %2199  ;;  %vm2812_vm5 = vcmp.lt.s32.totalorder %v5885_v31, 8  ;;  %vm5897_vm14 = vmand %vm2771_vm8, %vm2772_vm9 }
 0x580   : > { %2311 = vrot.lane.b32.xlu0 %v2200_v36, %s5326_s15  ;;  %v2224_v37 = vpop.permute.xlu1 %2223  ;;  %v2774_v36 = vadd.s32 4294967295, %v2769_v53  ;;  %vm2859_vm10 = vmand %vm5887_vm15, %vm2812_vm5  ;;  %v5224_v53 = vld [vmem:[%s6891_s16 + $0x20] sm:$0xff]  }
 0x581   : > { %2325 = vrot.lane.b32.xlu1 %v2220_v34, %s5326_s15  ;;  %vm2862_vm12 = vmpackc.low %vm2859_vm10, %vm2859_vm10 }
 0x582   : > { %vm2775_vm6 = vcmp.ge.s32.totalorder %v2774_v36, 0  ;;  %vm2813_vm9 = vmand %vm5897_vm14, %vm2812_vm5  ;;  %v5226_v36 = vld [vmem:[%s6891_s16 + $0x30] sm:$0xff]  }
 0x583   : > { %v2202_v39 = vpop.permute.xlu0 %2201  ;;  %vm2816_vm10 = vmpackc.low %vm2813_vm9, %vm2813_vm9 }
 0x584   : > { %2313 = vrot.lane.b32.xlu0 %v2202_v39, %s5326_s15  ;;  %v2226_v40 = vpop.permute.xlu1 %2225  ;;  %v2863_v39 = vsel %vm2862_vm12, 65537, %v5311_v13 }
 0x585   : > { %2327 = vrot.lane.b32.xlu1 %v2224_v37, %s5326_s15  ;;  %v2873_v37 = vadd.s32 1, %v2768_v30  ;;  %v5223_v30 = vld [vmem:[%s6891_s16 + $0x18] sm:$0xff]  }
 0x587   : > { %v2206_v52 = vpop.permute.xlu0 %2205  ;;  %vm2874_vm13 = vcmp.ge.s32.totalorder %v2873_v37, 0  ;;  %vm2875_vm4 = vcmp.lt.s32.totalorder %v2873_v37, 8  ;;  %v5227_v37 = vld [vmem:[%s6891_s16 + $0x38] sm:$0xff]  }
 0x588   : > { %2315 = vrot.lane.b32.xlu0 %v2206_v52, %s5326_s15  ;;  %v2230_v46 = vpop.permute.xlu1 %2229  ;;  %v2867_v52 = vrot.slane %v2863_v39, %v5556_v22  ;;  %vm5906_vm11 = vmand %vm2874_vm13, %vm2875_vm4 }
 0x589   : > { %2329 = vrot.lane.b32.xlu1 %v2226_v40, %s5326_s15  ;;  %vm2877_vm1 = vmand %vm5906_vm11, %vm2775_vm6 }
 0x58a   : > { %vm2881_vm8 = vmpackc.low %vm2877_vm1, %vm2877_vm1 }
 0x58b   : > { %v2208_v48 = vpop.permute.xlu0 %2207  ;;  %v2882_v49 = vsel %vm2881_vm8, 65537, %v5311_v13  ;;  %vm2896_vm12 = vmpackc.low %vm5906_vm11, %vm5906_vm11 }
 0x58c   : > { %2317 = vrot.lane.b32.xlu0 %v2208_v48, %s5326_s15  ;;  %v2232_v50 = vpop.permute.xlu1 %2231  ;;  %vm2830_vm13 = vmand %vm5887_vm15, %vm2775_vm6 }
 0x58d   : > { %2331 = vrot.lane.b32.xlu1 %v2230_v46, %s5326_s15  ;;  %vm2834_vm4 = vmpackc.low %vm2830_vm13, %vm2830_vm13 }
 0x58f   : > { %v2304_v27 = vpop.permute.xlu0 %2303 }
 0x591   : > { %2333 = vrot.lane.b32.xlu1 %v2232_v50, %s5326_s15  ;;  %v2886_v50 = vrot.slane %v2882_v49, %v5556_v22 }
 0x593   : > { %v2306_v51 = vpop.permute.xlu0 %2305 }
 0x595   : > { %2186 = vrot.lane.b32.xlu1 %v2185_v20, %s5326_s15  ;;  %v2817_v20 = vsel %vm2816_vm10, 65537, %v5311_v13 }
 0x5e7   : > { %v2320_v54 = vpop.permute.xlu1 %2319 }
 0x5e8   : > { %4855 = vmatprep.subr.bf16.mxu1 %v2320_v54 }
 0x5e9   : > { %4856 = vmatpush3.bf16.msra.mxu1 %v2304_v27  ;;  %v2821_v27 = vrot.slane %v2817_v20, %v5556_v22 }
 0x5ea   : > { %v2308_v55 = vpop.permute.xlu0 %2307 }
 0x5eb   : > { %v2322_v56 = vpop.permute.xlu1 %2321 }
 0x5ec   : > { %4857 = vmatprep.subr.bf16.mxu1 %v2322_v56 }
 0x5ed   : > { %4858 = vmatpush3.bf16.msra.mxu1 %v2306_v51  ;;  %v2897_v51 = vsel %vm2896_vm12, 65537, %v5311_v13 }
 0x5ee   : > { %v2310_v57 = vpop.permute.xlu0 %2309  ;;  %v2901_v54 = vrot.slane %v2897_v51, %v5556_v22 }
 0x5ef   : > { %v2324_v58 = vpop.permute.xlu1 %2323 }
 0x5f0   : > { %4859 = vmatprep.subr.bf16.mxu1 %v2324_v58 }
 0x5f1   : > { %4860 = vmatpush3.bf16.msra.mxu1 %v2308_v55  ;;  %v2835_v55 = vsel %vm2834_vm4, 65537, %v5311_v13 }
 0x5f2   : > { %v2312_v59 = vpop.permute.xlu0 %2311  ;;  %v2839_v56 = vrot.slane %v2835_v55, %v5556_v22 }
 0x5f3   : > { %v2326_v60 = vpop.permute.xlu1 %2325 }
 0x5f4   : > { %4861 = vmatprep.subr.bf16.mxu1 %v2326_v60 }
 0x5f5   : > { %4862 = vmatpush3.bf16.msra.mxu1 %v2310_v57 }
 0x5f6   : > { %v2314_v63 = vpop.permute.xlu0 %2313 }
 0x5f7   : > { %v2328_v62 = vpop.permute.xlu1 %2327 }
 0x5f8   : > { %4863 = vmatprep.subr.bf16.mxu1 %v2328_v62 }
 0x5f9   : > { %4864 = vmatpush3.bf16.msra.mxu1 %v2312_v59 }
 0x5fa   : > { %v2316_v1 = vpop.permute.xlu0 %2315 }
 0x5fb   : > { %v2330_v0 = vpop.permute.xlu1 %2329 }
 0x5fc   : > { %4865 = vmatprep.subr.bf16.mxu1 %v2330_v0 }
 0x5fd   : > { %4866 = vmatpush3.bf16.msra.mxu1 %v2314_v63 }
 0x5fe   : > { %v2318_v7 = vpop.permute.xlu0 %2317 }
 0x5ff   : > { %v2332_v2 = vpop.permute.xlu1 %2331 }
 0x600   : > { %4867 = vmatprep.subr.bf16.mxu1 %v2332_v2 }
 0x601   : > { %4868 = vmatpush3.bf16.msra.mxu1 %v2316_v1 }
 0x603   : > { %v2334_v6 = vpop.permute.xlu1 %2333 }
 0x604   : > { %4869 = vmatprep.subr.bf16.mxu1 %v2334_v6 }
 0x605   : > { %4870 = vmatpush3.bf16.msra.mxu1 %v2318_v7 }
 0x606   : > { %5018 = vmatprep.subr.bf16.mxu1 %v2503_v5 }
 0x607   : > { %v2187_v10 = vpop.permute.xlu1 %2186 }
 0x608   : > { %vm2188_vm7 = vcmp.ne.s16.totalorder %v2187_v10, 0  ;;  %2411 = vmatmul.mubr.bf16.vlgmr.msra.gmra.mrb[16].mxu1 %v5208_v8 }
 0x609   : > { %v2190_v11 = vsel %vm2188_vm7, %v5803_v23, 0  ;;  %v2189_v12 = vsel %vm2188_vm7, %v5805_v61, 0  ;;  %2418 = vmatprep.mubr.bf16.mxu1 %v5211_v9  ;;  %5019 = vmatpush3.bf16.msra.mxu1 %v2503_v5  ;;  %vm2798_vm7 = vmpackc.low %vm5897_vm14, %vm5897_vm14 }
 0x60a   : > { %2237 = vrot.lane.b32.xlu1 %v2190_v11, %s5327_s0  ;;  %2235 = vrot.lane.b32.xlu0 %v2189_v12, %s5327_s0  ;;  %v2799_v46 = vsel %vm2798_vm7, 65537, %v5311_v13  ;;  %vm2776_vm7 = vmand %vm5897_vm14, %vm2775_vm6 }
 0x60b   : > { %v2803_v48 = vrot.slane %v2799_v46, %v5556_v22  ;;  %vm2781_vm1 = vmpackc.low %vm2776_vm7, %vm2776_vm7 }
 0x60c   : > { %v2782_v57 = vsel %vm2781_vm1, 65537, %v5311_v13  ;;  %vm2849_vm14 = vmpackc.low %vm5887_vm15, %vm5887_vm15 }
 0x60d   : > { %v2786_v58 = vrot.slane %v2782_v57, %v5556_v22  ;;  %v2850_v49 = vsel %vm2849_vm14, 65537, %v5311_v13  ;;  %vm2908_vm7 = vmand %vm5906_vm11, %vm2812_vm5 }
 0x60e   : > { %v2854_v20 = vrot.slane %v2850_v49, %v5556_v22  ;;  %vm2911_vm1 = vmpackc.low %vm2908_vm7, %vm2908_vm7 }
 0x610   : > { %2419 = vmatmul.mubr.bf16.gmra.mrb[20].mxu1 %v5213_v15  ;;  %vm2855_vm6 = vcmp.ne.s16.totalorder %v2854_v20, 0 }
 0x611   : > { %5020 = vmatprep.mubr.msk.bf16.mxu1 %vm1091_vm2, %v5214_v16 }
 0x618   : > { %5021 = vmatmul.mubr.msk.bf16.vlgmr.msra.gmra.mrb[24].mxu1 %vm1091_vm2, %v5215_v17 }
 0x67c   : > { %v2238_v21 = vpop.permute.xlu1 %2237  ;;  %v2236_v24 = vpop.permute.xlu0 %2235 }
 0x67d   : > { %2337 = vrot.lane.b32.xlu1 %v2238_v21, %s5326_s15  ;;  %2335 = vrot.lane.b32.xlu0 %v2236_v24, %s5326_s15  ;;  %s6890_s15 = sld [smem:[#allocation5_spill]]  ;;  %v5217_v21 = vld [vmem:[%s5455_s17 + $0x20] ss:$12 sps:$4 sm:$0xff]  }
 0x681   : > { %2571 = vperm.xlu1 %5180, %v2561_v25   ;;  %2566 = vperm.xlu0 %5179, %v2560_v26   ;;  %v5220_v25 = vld [vmem:[%s6891_s16] sm:$0xff]  }
 0x683   : > { %v5218_v24 = vld [vmem:[%s6890_s15] sm:$0xff]   ;;  %v5219_v26 = vld [vmem:[%s6890_s15 + $0x8] sm:$0xff]  }
 0x685   : > { %2581 = vperm.xlu1 %5180, %v2563_v28   ;;  %2576 = vperm.xlu0 %5179, %v2562_v29   ;;  %v5221_v28 = vld [vmem:[%s6891_s16 + $0x8] sm:$0xff]   ;;  %v5222_v29 = vld [vmem:[%s6891_s16 + $0x10] sm:$0xff]  }
 0x689   : > { %2868 = vrot.lane.b32.xlu0 %v2867_v52, %s5315_s7  ;;  %2804 = vrot.lane.b32.xlu1 %v2803_v48, %s5324_s28 }
 0x68d   : > { %2887 = vrot.lane.b32.xlu0 %v2886_v50, %s5328_s18  ;;  %2822 = vrot.lane.b32.xlu1 %v2821_v27, %s5329_s26  ;;  %s5333_s18 = smov 9   ;;  %s6893_s26 = sld [smem:[#allocation3_spill]] }
 0x691   : > { %2902 = vrot.lane.b32.xlu0 %v2901_v54, %s5330_s11  ;;  %2840 = vrot.lane.b32.xlu1 %v2839_v56, %s6847_s10  ;;  %s4787_s11 = sshll.u32 %s6960_s23, 2 }
 0x695   : > { %2787 = vrot.lane.b32.xlu0 %v2786_v58, %s5325_s1 }
 0x6db   : > { %v4871_v59 = vpop.f32.mrb[16].mxu1 }
 0x6dc   : > { %v4872_v60 = vpop.f32.mrb[17].mxu1 }
 0x6dd   : > { %v5941_v62 = vadd.f32 %v4872_v60, %v4871_v59  ;;  %v4874_v63 = vpop.f32.mrb[18].mxu1 }
 0x6de   : > { %v4875_v0 = vpop.f32.mrb[19].mxu1 }
 0x6df   : > { %v5943_v1 = vadd.f32 %v4875_v0, %v4874_v63 }
 0x6e3   : > { %v4877_v2 = vpop.f32.mrb[20].mxu1 }
 0x6e4   : > { %v4878_v4 = vpop.f32.mrb[21].mxu1 }
 0x6e5   : > { %v5945_v5 = vadd.f32 %v4878_v4, %v4877_v2  ;;  %v4880_v6 = vpop.f32.mrb[22].mxu1 }
 0x6e6   : > { %v4881_v7 = vpop.f32.mrb[23].mxu1 }
 0x6e7   : > { %v5947_v8 = vadd.f32 %v4881_v7, %v4880_v6 }
 0x6eb   : > { %v5022_v9 = vpop.f32.mrb[24].mxu1 }
 0x6ec   : > { %v2539_v10 = vpop.f32.mrb[25].mxu1 }
 0x6ed   : > { %v5023_v11 = vpop.f32.mrb[26].mxu1 }
 0x6ee   : > { %v2559_v12 = vpack.c.bf16 %v5023_v11, %v5022_v9  ;;  %v2542_v15 = vpop.f32.mrb[27].mxu1 }
 0x6ef   : > { %v2336_v16 = vpop.permute.xlu0 %2335  ;;  %v2558_v17 = vpack.c.bf16 %v2542_v15, %v2539_v10  ;;  %v2338_v18 = vpop.permute.xlu1 %2337 }
 0x6f0   : > { %5010 = vmatprep.subr.bf16.mxu0 %v2336_v16 }
 0x6f1   : > { %5011 = vmatpush3.bf16.msra.mxu0 %v2336_v16 }
 0x6f2   : > { %5012 = vmatprep.subr.bf16.mxu0 %v2338_v18 }
 0x6f5   : > { %5013 = vmatpush3.bf16.msra.mxu0 %v2338_v18 }
 0x6f6   : > { %5024 = vmatprep.subr.bf16.mxu0 %v2558_v17 }
 0x6f8   : > { %5015 = vmatmul.mubr.msk.bf16.vlgmr.msra.gmra.mrb[24].mxu0 %vm6825_vm0, %v5217_v21 }
 0x6f9   : > { %5025 = vmatpush3.bf16.msra.mxu0 %v2558_v17  ;;  %5028 = vmatprep.mubr.msk.bf16.mxu0 %vm6825_vm0, %v5218_v24 }
 0x6fa   : > { %5026 = vmatprep.subr.bf16.mxu0 %v2559_v12 }
 0x6fd   : > { %5027 = vmatpush3.bf16.msra.mxu0 %v2559_v12 }
 0x6fe   : > { %5032 = vmatprep.subr.bf16.mxu0 %v5220_v25 }
 0x700   : > { %5029 = vmatmul.mubr.msk.bf16.vlgmr.msra.gmra.mrb[28].mxu0 %vm6825_vm0, %v5219_v26  ;;  %v2572_v46 = vpop.permute.xlu1 %2571  ;;  %v2567_v48 = vpop.permute.xlu0 %2566 }
 0x701   : > { %5033 = vmatpush3.bf16.msra.mxu0 %v5220_v25  ;;  %5048 = vmatprep.mubr.bf16.mxu0 %v5805_v61 }
 0x702   : > { %5034 = vmatprep.subr.bf16.mxu0 %v5221_v28 }
 0x704   : > { %v2577_v51 = vpop.permute.xlu0 %2576 }
 0x705   : > { %5035 = vmatpush3.bf16.msra.mxu0 %v5221_v28 }
 0x706   : > { %5036 = vmatprep.subr.bf16.mxu0 %v5222_v29 }
 0x708   : > { %v2869_v2 = vpop.permute.xlu0 %2868 }
 0x709   : > { %5037 = vmatpush3.bf16.msra.mxu0 %v5222_v29  ;;  %vm2870_vm8 = vcmp.ne.s16.totalorder %v2869_v2, 0 }
 0x70a   : > { %5038 = vmatprep.subr.bf16.mxu0 %v5223_v30 }
 0x70c   : > { %v2888_v11 = vpop.permute.xlu0 %2887 }
 0x70d   : > { %5039 = vmatpush3.bf16.msra.mxu0 %v5223_v30  ;;  %vm2889_vm10 = vcmp.ne.s16.totalorder %v2888_v11, 0 }
 0x70e   : > { %5040 = vmatprep.subr.bf16.mxu0 %v5224_v53 }
 0x710   : > { %v2903_v18 = vpop.permute.xlu0 %2902 }
 0x711   : > { %5041 = vmatpush3.bf16.msra.mxu0 %v5224_v53  ;;  %vm2904_vm13 = vcmp.ne.s16.totalorder %v2903_v18, 0 }
 0x712   : > { %5042 = vmatprep.subr.bf16.mxu0 %v5225_v33 }
 0x714   : > { %v2788_v28 = vpop.permute.xlu0 %2787 }
 0x715   : > { %5043 = vmatpush3.bf16.msra.mxu0 %v5225_v33  ;;  %vm2789_vm4 = vcmp.ne.s16.totalorder %v2788_v28, 0 }
 0x716   : > { %5044 = vmatprep.subr.bf16.mxu0 %v5226_v36 }
 0x719   : > { %5045 = vmatpush3.bf16.msra.mxu0 %v5226_v36 }
 0x71a   : > { %5046 = vmatprep.subr.bf16.mxu0 %v5227_v37 }
 0x71d   : > { %5047 = vmatpush3.bf16.msra.mxu0 %v5227_v37 }
 0x720   : > { %5049 = vmatmul.mubr.bf16.vlgmr.msra.gmra.mrb[28].mxu0 %v5803_v23  ;;  %v2582_v23 = vpop.permute.xlu1 %2581 }
 0x724   : > { %v2805_v63 = vpop.permute.xlu1 %2804 }
 0x725   : > { %vm2806_vm15 = vcmp.ne.s16.totalorder %v2805_v63, 0 }
 0x728   : > { %v2823_v9 = vpop.permute.xlu1 %2822 }
 0x729   : > { %vm2824_vm9 = vcmp.ne.s16.totalorder %v2823_v9, 0 }
 0x72c   : > { %v2841_v17 = vpop.permute.xlu1 %2840 }
 0x72d   : > { %vm2842_vm12 = vcmp.ne.s16.totalorder %v2841_v17, 0 }
 0x7cb   : > { %v5965_v61 = vpop.f32.mrb[24].mxu0 }
 0x7cc   : > { %v5967_v39 = vpop.f32.mrb[25].mxu0 }
 0x7cd   : > { %v5969_v40 = vpop.f32.mrb[26].mxu0 }
 0x7ce   : > { %v5971_v52 = vpop.f32.mrb[27].mxu0 }
 0x7f3   : > { %v5050_v50 = vpop.f32.mrb[28].mxu0 }
 0x7f4   : > { %v2747_v27 = vpop.f32.mrb[29].mxu0  ;;  %v5064_v55 = vadd.f32 %v5050_v50, %v2577_v51 }
 0x7f5   : > { %v5051_v54 = vpop.f32.mrb[30].mxu0  ;;  %v5065_v58 = vadd.f32 %v2747_v27, %v2567_v48 }
 0x7f6   : > { %v5066_v56 = vadd.f32 %v5051_v54, %v2582_v23  ;;  %v2750_v57 = vpop.f32.mrb[31].mxu0 }
 0x7f7   : > { %v5067_v59 = vadd.f32 %v2750_v57, %v2572_v46 }
 0x7f8   : > { %v5978_v34 = vpack.c.bf16 %v5066_v56, %v5064_v55 }
 0x7f9   : > { %v5980_v60 = vpack.c.bf16 %v5067_v59, %v5065_v58  ;;  %v2912_v58 = vsel %vm2911_vm1, 65537, %v5311_v13 }
 0x7fa   : > { %v2857_v0 = vsel %vm2855_vm6, %v5978_v34, 0  ;;  %v2808_v10 = vsel %vm2806_vm15, %v5978_v34, 0  ;;  %v2872_v12 = vsel %vm2870_vm8, %v5978_v34, 0  ;;  %v2826_v21 = vsel %vm2824_vm9, %v5978_v34, 0 }
 0x7fb   : > { %2944 = vrot.lane.b32.xlu0 %v2857_v0, %s5325_s1  ;;  %v2856_v4 = vsel %vm2855_vm6, %v5980_v60, 0  ;;  %v2807_v6 = vsel %vm2806_vm15, %v5980_v60, 0  ;;  %v2871_v7 = vsel %vm2870_vm8, %v5980_v60, 0  ;;  %v2825_v15 = vsel %vm2824_vm9, %v5980_v60, 0 }
 0x7fc   : > { %2942 = vrot.lane.b32.xlu1 %v2856_v4, %s5325_s1  ;;  %v2890_v16 = vsel %vm2889_vm10, %v5980_v60, 0  ;;  %s6835_s1 = smov 112   ;;  %v2891_v24 = vsel %vm2889_vm10, %v5978_v34, 0  ;;  %v2843_v25 = vsel %vm2842_vm12, %v5980_v60, 0  ;;  %v2905_v26 = vsel %vm2904_vm13, %v5980_v60, 0 }
 0x7fd   : > { %v2844_v29 = vsel %vm2842_vm12, %v5978_v34, 0  ;;  %v2906_v30 = vsel %vm2904_vm13, %v5978_v34, 0  ;;  %v2790_v53 = vsel %vm2789_vm4, %v5980_v60, 0  ;;  %v2791_v33 = vsel %vm2789_vm4, %v5978_v34, 0 }
 0x7fe   : > { %v2916_v31 = vrot.slane %v2912_v58, %v5556_v22 }
 0x7ff   : > { %2924 = vrot.lane.b32.xlu0 %v2807_v6, %s6847_s10 }
 0x800   : > { %2948 = vrot.lane.b32.xlu1 %v2871_v7, %s5327_s0 }
 0x803   : > { %2926 = vrot.lane.b32.xlu0 %v2808_v10, %s6847_s10 }
 0x804   : > { %2950 = vrot.lane.b32.xlu1 %v2872_v12, %s5327_s0  ;;  %s6840_s0 = smov 111  }
 0x807   : > { %2930 = vrot.lane.b32.xlu0 %v2825_v15, %s6822_s2 }
 0x808   : > { %2954 = vrot.lane.b32.xlu1 %v2890_v16, %s6835_s1 }
 0x80b   : > { %2932 = vrot.lane.b32.xlu0 %v2826_v21, %s6822_s2  ;;  %s1033_s2 = scalar_lea.vmem %s6893_s26, %s4787_s11  ;;  %s6894_s26 = sld [smem:[#allocation4_spill]] }
 0x80c   : > { %2956 = vrot.lane.b32.xlu1 %v2891_v24, %s6835_s1  ;;  %v4755_v16 = vld.sshfl [vmem:[%s1033_s2] sm:$0x33 pattern:$0x76325410]  ;;  %s6895_s2 = sld [smem:[#allocation8_spill]]  ;;  %s6829_s11 = smov 110  }
 0x80d   : > { %v3230_v18 = vcombine.high %v4755_v16, %v4755_v16 }
 0x80f   : > { %2936 = vrot.lane.b32.xlu0 %v2843_v25, %s5324_s28  ;;  %v3238_v24 = vand.u32 %v3230_v18, %v5522_v3 }
 0x810   : > { %2961 = vrot.lane.b32.xlu1 %v2905_v26, %s6840_s0 }
 0x813   : > { %2938 = vrot.lane.b32.xlu0 %v2844_v29, %s5324_s28  ;;  %s6892_s28 = sld [smem:[#allocation13_spill]] }
 0x814   : > { %2963 = vrot.lane.b32.xlu1 %v2906_v30, %s6840_s0  ;;  %v3235_v30 = vand.u32 %v4755_v16, %v5522_v3 }
 0x817   : > { %3037 = vrot.lane.b32.xlu0 %v2790_v53, %s5333_s18 }
 0x819   : > { %v5230_v56 = vld [vmem:[%s6892_s28 + $0x4] ss:$12 sps:$4 sm:$0xff]   ;;  %v5228_v28 = vld [vmem:[%s6892_s28] ss:$12 sps:$4 sm:$0xff]   ;;  %v5231_v29 = vld [vmem:[%s6892_s28 + $0x1c] ss:$12 sps:$4 sm:$0xff]  }
 0x81a   : > { %3144 = vmatprep.mubr.bf16.mxu1 %v5230_v56  ;;  %v5233_v3 = vld [vmem:[%s6892_s28 + $0x18] ss:$12 sps:$4 sm:$0xff]  }
 0x81b   : > { %3039 = vrot.lane.b32.xlu0 %v2791_v33, %s5333_s18 }
 0x86d   : > { %v2945_v36 = vpop.permute.xlu0 %2944 }
 0x86e   : > { %v2943_v37 = vpop.permute.xlu1 %2942 }
 0x86f   : > { %3053 = vrot.lane.b32.xlu1 %v2943_v37, %s5333_s18  ;;  %v5234_v37 = vld [vmem:[%s6894_s26] sm:$0xff]   ;;  %s5337_s26 = smov 16  }
 0x871   : > { %v2925_v46 = vpop.permute.xlu0 %2924 }
 0x872   : > { %v2949_v48 = vpop.permute.xlu1 %2948  ;;  %3041 = vrot.lane.b32.xlu0 %v2925_v46, %s5333_s18  ;;  %v5235_v46 = vld [vmem:[%s6892_s28 + $0x8] ss:$12 sps:$4 sm:$0xff]  }
 0x873   : > { %3055 = vrot.lane.b32.xlu1 %v2945_v36, %s5333_s18  ;;  %5056 = vmatprep.mubr.msk.bf16.mxu0 %vm6825_vm0, %v5235_v46 }
 0x875   : > { %v2927_v49 = vpop.permute.xlu0 %2926 }
 0x876   : > { %v2951_v50 = vpop.permute.xlu1 %2950  ;;  %3043 = vrot.lane.b32.xlu0 %v2927_v49, %s5333_s18 }
 0x877   : > { %3057 = vrot.lane.b32.xlu1 %v2949_v48, %s5333_s18 }
 0x879   : > { %v2931_v20 = vpop.permute.xlu0 %2930 }
 0x87a   : > { %v2955_v23 = vpop.permute.xlu1 %2954  ;;  %3045 = vrot.lane.b32.xlu0 %v2931_v20, %s5333_s18  ;;  %v3289_v20 = vld [vmem:[%s6895_s2] sm:$0xff] }
 0x87b   : > { %3059 = vrot.lane.b32.xlu1 %v2951_v50, %s5333_s18  ;;  %v3290_v50 = vld [vmem:[%s6895_s2 + $0x8] sm:$0xff] }
 0x87d   : > { %v2933_v27 = vpop.permute.xlu0 %2932 }
 0x87e   : > { %v2957_v51 = vpop.permute.xlu1 %2956  ;;  %3047 = vrot.lane.b32.xlu0 %v2933_v27, %s5333_s18  ;;  %v3291_v27 = vld [vmem:[%s6895_s2 + $0x10] sm:$0xff] }
 0x87f   : > { %3061 = vrot.lane.b32.xlu1 %v2955_v23, %s5333_s18  ;;  %v3292_v23 = vld [vmem:[%s6895_s2 + $0x18] sm:$0xff]  ;;  %s6920_s2 = smov 94  }
 0x881   : > { %v2937_v54 = vpop.permute.xlu0 %2936 }
 0x882   : > { %3049 = vrot.lane.b32.xlu0 %v2937_v54, %s5333_s18  ;;  %v2962_v55 = vpop.permute.xlu1 %2961  ;;  %v3544_v54 = vshra.s32 %v5539_v14, 4 }
 0x883   : > { %3063 = vrot.lane.b32.xlu1 %v2957_v51, %s5333_s18  ;;  %v3543_v51 = vadd.s32 128, %v5539_v14 }
 0x884   : > { %vm3671_vm11 = vcmp.lt.s32.totalorder %v3544_v54, 16 }
 0x885   : > { %v2939_v57 = vpop.permute.xlu0 %2938  ;;  %v3545_v56 = vshra.s32 %v3543_v51, 4  ;;  %v3547_v58 = vand.u32 15, %v3543_v51 }
 0x886   : > { %3051 = vrot.lane.b32.xlu0 %v2939_v57, %s5333_s18  ;;  %v2964_v59 = vpop.permute.xlu1 %2963  ;;  %v3548_v57 = vadd.s32 4294967295, %v3544_v54 }
 0x887   : > { %3065 = vrot.lane.b32.xlu1 %v2962_v55, %s5333_s18  ;;  %v3546_v55 = vand.u32 15, %v5539_v14  ;;  %v6074_v14 = vsub.s32 4, %v5547_v19 }
 0x888   : > { %vm3550_vm14 = vcmp.ge.s32.totalorder %v3548_v57, 0  ;;  %vm3552_vm6 = vcmp.lt.s32.totalorder %v3548_v57, 16 }
 0x889   : > { %v3038_v47 = vpop.permute.xlu0 %3037  ;;  %vm6069_vm8 = vmand %vm3550_vm14, %vm3552_vm6 }
 0x88b   : > { %3067 = vrot.lane.b32.xlu1 %v2964_v59, %s5333_s18  ;;  %v6061_v59 = vadd.s32 1, %v3546_v55 }
 0x88d   : > { %v3040_v63 = vpop.permute.xlu0 %3039  ;;  %vm6826_vm9 = vcmp.lt.s32.totalorder %v6061_v59, 16 }
 0x88e   : > { %vm3638_vm4 = vmand %vm6069_vm8, %vm6826_vm9 }
 0x88f   : > { %2917 = vrot.lane.b32.xlu1 %v2916_v31, %s5333_s18  ;;  %v3549_v31 = vadd.s32 4294967295, %v3545_v56 }
 0x891   : > { %vm3551_vm10 = vcmp.ge.s32.totalorder %v3549_v31, 0  ;;  %vm3553_vm12 = vcmp.lt.s32.totalorder %v3549_v31, 16 }
 0x892   : > { %vm6082_vm7 = vmand %vm3551_vm10, %vm3553_vm12 }
 0x893   : > { %vm3606_vm1 = vmpackc.low %vm6082_vm7, %vm6069_vm8 }
 0x894   : > { %v3607_v19 = vsel %vm3606_vm1, 65537, %v5311_v13 }
 0x8e1   : > { %v3054_v0 = vpop.permute.xlu1 %3053 }
 0x8e2   : > { %4904 = vmatprep.subr.bf16.mxu1 %v3054_v0 }
 0x8e3   : > { %4905 = vmatpush3.bf16.msra.mxu1 %v3038_v47  ;;  %v6063_v47 = vadd.s32 1, %v3547_v58 }
 0x8e4   : > { %v3042_v2 = vpop.permute.xlu0 %3041 }
 0x8e5   : > { %v3056_v4 = vpop.permute.xlu1 %3055  ;;  %vm3637_vm13 = vcmp.lt.s32.totalorder %v6063_v47, 16 }
 0x8e6   : > { %4906 = vmatprep.subr.bf16.mxu1 %v3056_v4  ;;  %v3557_v4 = vadd.s32 4294967295, %v3547_v58 }
 0x8e7   : > { %4907 = vmatpush3.bf16.msra.mxu1 %v3040_v63 }
 0x8e8   : > { %v3044_v6 = vpop.permute.xlu0 %3043  ;;  %vm3559_vm10 = vcmp.ge.s32.totalorder %v3557_v4, 0 }
 0x8e9   : > { %v3058_v7 = vpop.permute.xlu1 %3057 }
 0x8ea   : > { %4908 = vmatprep.subr.bf16.mxu1 %v3058_v7  ;;  %v3615_v7 = vrot.slane %v3607_v19, %v6074_v14 }
 0x8eb   : > { %4909 = vmatpush3.bf16.msra.mxu1 %v3042_v2  ;;  %v3556_v2 = vadd.s32 4294967295, %v3546_v55 }
 0x8ec   : > { %v3046_v9 = vpop.permute.xlu0 %3045 }
 0x8ed   : > { %v3060_v10 = vpop.permute.xlu1 %3059  ;;  %vm3558_vm14 = vcmp.ge.s32.totalorder %v3556_v2, 0 }
 0x8ee   : > { %4910 = vmatprep.subr.bf16.mxu1 %v3060_v10 }
 0x8ef   : > { %4911 = vmatpush3.bf16.msra.mxu1 %v3044_v6 }
 0x8f0   : > { %v3048_v12 = vpop.permute.xlu0 %3047 }
 0x8f1   : > { %v3062_v11 = vpop.permute.xlu1 %3061 }
 0x8f2   : > { %4912 = vmatprep.subr.bf16.mxu1 %v3062_v11 }
 0x8f3   : > { %4913 = vmatpush3.bf16.msra.mxu1 %v3046_v9  ;;  %v3611_v9 = vrot.slane %v3607_v19, %v5556_v22 }
 0x8f4   : > { %v3050_v17 = vpop.permute.xlu0 %3049 }
 0x8f5   : > { %v3064_v15 = vpop.permute.xlu1 %3063 }
 0x8f6   : > { %4914 = vmatprep.subr.bf16.mxu1 %v3064_v15 }
 0x8f7   : > { %4915 = vmatpush3.bf16.msra.mxu1 %v3048_v12  ;;  %v3764_v12 = vadd.s32 1, %v3544_v54 }
 0x8f8   : > { %v3052_v26 = vpop.permute.xlu0 %3051 }
 0x8f9   : > { %v3066_v21 = vpop.permute.xlu1 %3065 }
 0x8fa   : > { %4916 = vmatprep.subr.bf16.mxu1 %v3066_v21 }
 0x8fb   : > { %4917 = vmatpush3.bf16.msra.mxu1 %v3050_v17  ;;  %v3765_v17 = vadd.s32 1, %v3545_v56 }
 0x8fd   : > { %v3068_v25 = vpop.permute.xlu1 %3067 }
 0x8fe   : > { %4918 = vmatprep.subr.bf16.mxu1 %v3068_v25 }
 0x8ff   : > { %4919 = vmatpush3.bf16.msra.mxu1 %v3052_v26 }
 0x900   : > { %3240 = vmatprep.subr.bf16.mxu1 %v3238_v24 }
 0x901   : > { %v2918_v53 = vpop.permute.xlu1 %2917 }
 0x902   : > { %vm2919_vm5 = vcmp.ne.s16.totalorder %v2918_v53, 0  ;;  %3145 = vmatmul.mubr.bf16.vlgmr.msra.gmra.mrb[28].mxu1 %v5228_v28 }
 0x903   : > { %v2920_v33 = vsel %vm2919_vm5, %v5980_v60, 0  ;;  %v2921_v36 = vsel %vm2919_vm5, %v5978_v34, 0  ;;  %3152 = vmatprep.mubr.bf16.mxu1 %v5231_v29  ;;  %3241 = vmatpush1.bf16.msra.mxu1 %v3235_v30  ;;  %vm3670_vm5 = vcmp.ge.s32.totalorder %v3545_v56, 0 }
 0x904   : > { %2970 = vrot.lane.b32.xlu1 %v2921_v36, %s6829_s11  ;;  %2968 = vrot.lane.b32.xlu0 %v2920_v33, %s6829_s11  ;;  %s6831_s11 = smov 94  }
 0x90a   : > { %3153 = vmatmul.mubr.bf16.gmra.mrb[32].mxu1 %v5233_v3 }
 0x90b   : > { %3272 = vmatprep.mubr.bf16.mxu1 %v5311_v13 }
 0x912   : > { %4756 = vmatmul.mubr.msk.bf16.vlgmr.msra.gmra.mrb[36].mxu1 %vm1091_vm2, %v5234_v37  ;;  %vm3669_vm2 = vcmp.ge.s32.totalorder %v3544_v54, 0 }
 0x913   : > { %vm6065_vm15 = vmand %vm3669_vm2, %vm3671_vm11  ;;  %vm3672_vm2 = vcmp.lt.s32.totalorder %v3545_v56, 16 }
 0x914   : > { %vm3639_vm11 = vmand %vm6082_vm7, %vm3637_vm13 }
 0x915   : > { %vm3644_vm6 = vmpackc.low %vm3639_vm11, %vm3638_vm4  ;;  %vm3766_vm11 = vcmp.ge.s32.totalorder %v3764_v12, 0 }
 0x916   : > { %v3645_v10 = vsel %vm3644_vm6, 65537, %v5311_v13  ;;  %vm6098_vm12 = vmand %vm3670_vm5, %vm3672_vm2  ;;  %vm3768_vm6 = vcmp.lt.s32.totalorder %v3764_v12, 16 }
 0x917   : > { %v3653_v15 = vrot.slane %v3645_v10, %v6074_v14  ;;  %v3649_v16 = vrot.slane %v3645_v10, %v5556_v22  ;;  %vm3675_vm4 = vmand %vm6065_vm15, %vm3558_vm14 }
 0x918   : > { %vm3676_vm1 = vmand %vm6098_vm12, %vm3559_vm10 }
 0x919   : > { %vm3683_vm5 = vmpackc.low %vm3676_vm1, %vm3675_vm4  ;;  %vm3767_vm1 = vcmp.ge.s32.totalorder %v3765_v17, 0 }
 0x91a   : > { %v3684_v18 = vsel %vm3683_vm5, 65537, %v5311_v13  ;;  %vm3733_vm2 = vmand %vm6065_vm15, %vm6826_vm9  ;;  %vm3769_vm5 = vcmp.lt.s32.totalorder %v3765_v17, 16  ;;  %v5236_v17 = vld [vmem:[%s6892_s28 + $0x20] ss:$12 sps:$4 sm:$0xff]  }
 0x91b   : > { %v3692_v21 = vrot.slane %v3684_v18, %v6074_v14  ;;  %v3688_v24 = vrot.slane %v3684_v18, %v5556_v22  ;;  %vm3734_vm4 = vmand %vm6098_vm12, %vm3637_vm13 }
 0x91c   : > { %vm3739_vm3 = vmpackc.low %vm3734_vm4, %vm3733_vm2 }
 0x91d   : > { %v3740_v25 = vsel %vm3739_vm3, 65537, %v5311_v13  ;;  %vm6124_vm0 = vmand %vm3766_vm11, %vm3768_vm6 }
 0x91e   : > { %vm6128_vm9 = vmand %vm3767_vm1, %vm3769_vm5  ;;  %v3748_v29 = vrot.slane %v3740_v25, %v6074_v14  ;;  %v3744_v30 = vrot.slane %v3740_v25, %v5556_v22 }
 0x91f   : > { %vm3772_vm3 = vmand %vm6124_vm0, %vm3558_vm14 }
 0x920   : > { %vm3773_vm2 = vmand %vm6128_vm9, %vm3559_vm10 }
 0x921   : > { %vm3780_vm11 = vmpackc.low %vm3773_vm2, %vm3772_vm3  ;;  %vm6908_vm3 = vcmp.lt.s32.totalorder %v6061_v59, 16 }
 0x922   : > { %v3781_v53 = vsel %vm3780_vm11, 65537, %v5311_v13  ;;  %vm3813_vm6 = vmpackc.low %vm6128_vm9, %vm6124_vm0 }
 0x923   : > { %v3789_v33 = vrot.slane %v3781_v53, %v6074_v14  ;;  %v3785_v36 = vrot.slane %v3781_v53, %v5556_v22  ;;  %vm3560_vm4 = vmand %vm6069_vm8, %vm3558_vm14  ;;  %v3814_v3 = vsel %vm3813_vm6, 65537, %v5311_v13  ;;  %vm6834_vm14 = vcmask 916480  }
 0x924   : > { %vm3561_vm1 = vmand %vm6082_vm7, %vm3559_vm10  ;;  %v3822_v37 = vrot.slane %v3814_v3, %v6074_v14  ;;  %v3818_v46 = vrot.slane %v3814_v3, %v5556_v22  ;;  %vm3658_vm10 = vcmask 924672  }
 0x925   : > { %vm3570_vm5 = vmpackc.low %vm3561_vm1, %vm3560_vm4  ;;  %vm6838_vm1 = vcmask 1039360  }
 0x926   : > { %vm3840_vm2 = vmand %vm6124_vm0, %vm6908_vm3  ;;  %vm6911_vm0 = vcmask 261120  }
 0x927   : > { %vm3841_vm8 = vmand %vm6128_vm9, %vm3637_vm13  ;;  %vm6842_vm9 = vcmask 130048   ;;  %vm6833_vm13 = vcmask 908288  }
 0x928   : > { %vm3846_vm7 = vmpackc.low %vm3841_vm8, %vm3840_vm2 }
 0x929   : > { %vm3715_vm4 = vmpackc.low %vm6098_vm12, %vm6065_vm15 }
 0x92a   : > { %v3716_v11 = vsel %vm3715_vm4, 65537, %v5311_v13 }
 0x976   : > { %v2971_v48 = vpop.permute.xlu1 %2970  ;;  %v2969_v49 = vpop.permute.xlu0 %2968 }
 0x977   : > { %3071 = vrot.lane.b32.xlu1 %v2971_v48, %s5333_s18  ;;  %3069 = vrot.lane.b32.xlu0 %v2969_v49, %s5333_s18  ;;  %s5335_s18 = smov 113   ;;  %v3571_v48 = vsel %vm3570_vm5, 65537, %v5311_v13 }
 0x978   : > { %v3579_v49 = vrot.slane %v3571_v48, %v6074_v14 }
 0x97b   : > { %3300 = vperm.xlu1 %5180, %v3290_v50   ;;  %3295 = vperm.xlu0 %5179, %v3289_v20   ;;  %v3575_v50 = vrot.slane %v3571_v48, %v5556_v22  ;;  %v3847_v20 = vsel %vm3846_vm7, 65537, %v5311_v13 }
 0x97f   : > { %3310 = vperm.xlu1 %5180, %v3292_v23   ;;  %3305 = vperm.xlu0 %5179, %v3291_v27   ;;  %v3851_v23 = vrot.slane %v3847_v20, %v5556_v22  ;;  %v3855_v27 = vrot.slane %v3847_v20, %v6074_v14 }
 0x983   : > { %3618 = vrot.lane.b32.xlu1 %v3615_v7, %s6835_s1  ;;  %3616 = vrot.lane.b32.xlu0 %v3611_v9, %s6835_s1 }
 0x987   : > { %3656 = vrot.lane.b32.xlu1 %v3653_v15, %s5335_s18  ;;  %3654 = vrot.lane.b32.xlu0 %v3649_v16, %s5335_s18  ;;  %s6827_s18 = smov 17  }
 0x98b   : > { %3695 = vrot.lane.b32.xlu1 %v3692_v21, %s6847_s10  ;;  %3693 = vrot.lane.b32.xlu0 %v3688_v24, %s6847_s10 }
 0x98f   : > { %3751 = vrot.lane.b32.xlu1 %v3748_v29, %s5315_s7  ;;  %3749 = vrot.lane.b32.xlu0 %v3744_v30, %s5315_s7  ;;  %s5336_s7 = smov 15  }
 0x993   : > { %3792 = vrot.lane.b32.xlu1 %v3789_v33, %s5336_s7  ;;  %3790 = vrot.lane.b32.xlu0 %v3785_v36, %s5336_s7  ;;  %s6909_s7 = sld [smem:[#allocation10_spill]] }
 0x997   : > { %3825 = vrot.lane.b32.xlu1 %v3822_v37, %s5337_s26  ;;  %3823 = vrot.lane.b32.xlu0 %v3818_v46, %s5337_s26  ;;  %s6910_s26 = sld [smem:[#allocation7_spill]] }
 0x999   : > { %v5239_v18 = vld [vmem:[%s6909_s7 + $0x4] ss:$8 sps:$4 sm:$0xff]   ;;  %v5237_v24 = vld [vmem:[%s6909_s7] ss:$8 sps:$4 sm:$0xff]   ;;  %v5243_v25 = vld [vmem:[%s6909_s7 + $0x14] ss:$8 sps:$4 sm:$0xff]  }
 0x99a   : > { %v5241_v26 = vld [vmem:[%s6909_s7 + $0x10] ss:$8 sps:$4 sm:$0xff]   ;;  %v5246_v28 = vld [vmem:[%s6909_s7 + $0x24] ss:$8 sps:$4 sm:$0xff]   ;;  %v5244_v30 = vld [vmem:[%s6909_s7 + $0x20] ss:$8 sps:$4 sm:$0xff]  }
 0x99b   : > { %3582 = vrot.lane.b32.xlu1 %v3579_v49, %s6840_s0  ;;  %3580 = vrot.lane.b32.xlu0 %v3575_v50, %s6840_s0  ;;  %v5249_v53 = vld [vmem:[%s6909_s7 + $0x34] ss:$8 sps:$4 sm:$0xff]   ;;  %v5247_v33 = vld [vmem:[%s6909_s7 + $0x30] ss:$8 sps:$4 sm:$0xff]  }
 0x99c   : > { %v5252_v36 = vld [vmem:[%s6909_s7 + $0x44] ss:$8 sps:$4 sm:$0xff]   ;;  %v5250_v3 = vld [vmem:[%s6909_s7 + $0x40] ss:$8 sps:$4 sm:$0xff]   ;;  %v5255_v37 = vld [vmem:[%s6909_s7 + $0x54] ss:$8 sps:$4 sm:$0xff]  }
 0x99d   : > { %v5240_v21 = vld [vmem:[%s6910_s26] sm:$0xff]   ;;  %v5256_v29 = vld [vmem:[%s6910_s26 + $0x8] sm:$0xff]   ;;  %v5253_v46 = vld [vmem:[%s6909_s7 + $0x50] ss:$8 sps:$4 sm:$0xff]  }
 0x99e   : > { %v5259_v48 = vld [vmem:[%s6909_s7 + $0x64] ss:$8 sps:$4 sm:$0xff]   ;;  %v5257_v49 = vld [vmem:[%s6909_s7 + $0x60] ss:$8 sps:$4 sm:$0xff]   ;;  %v5262_v50 = vld [vmem:[%s6909_s7 + $0x74] ss:$8 sps:$4 sm:$0xff]  }
 0x99f   : > { %3856 = vrot.lane.b32.xlu1 %v3851_v23, %s6827_s18  ;;  %3858 = vrot.lane.b32.xlu0 %v3855_v27, %s6827_s18  ;;  %v5260_v20 = vld [vmem:[%s6909_s7 + $0x70] ss:$8 sps:$4 sm:$0xff]  }
 0x9d5   : > { %v4920_v51 = vpop.f32.mrb[28].mxu1 }
 0x9d6   : > { %v4921_v54 = vpop.f32.mrb[29].mxu1 }
 0x9d7   : > { %v6178_v55 = vadd.f32 %v4921_v54, %v4920_v51  ;;  %v4923_v56 = vpop.f32.mrb[30].mxu1 }
 0x9d8   : > { %v4924_v57 = vpop.f32.mrb[31].mxu1 }
 0x9d9   : > { %v6180_v58 = vadd.f32 %v4924_v57, %v4923_v56 }
 0x9dd   : > { %v4926_v59 = vpop.f32.mrb[32].mxu1 }
 0x9de   : > { %v4927_v31 = vpop.f32.mrb[33].mxu1 }
 0x9df   : > { %v6182_v47 = vadd.f32 %v4927_v31, %v4926_v59  ;;  %v4929_v0 = vpop.f32.mrb[34].mxu1 }
 0x9e0   : > { %v4930_v2 = vpop.f32.mrb[35].mxu1 }
 0x9e1   : > { %v6184_v4 = vadd.f32 %v4930_v2, %v4929_v0 }
 0x9e5   : > { %v3274_v6 = vpop.f32.mrb[36].mxu1 }
 0x9e6   : > { %v3276_v19 = vpop.f32.mrb[37].mxu1 }
 0x9e7   : > { %v3278_v7 = vpop.f32.mrb[38].mxu1 }
 0x9e8   : > { %v3287_v9 = vpack.c.bf16 %v3278_v7, %v3274_v6  ;;  %v3280_v10 = vpop.f32.mrb[39].mxu1 }
 0x9e9   : > { %v3070_v12 = vpop.permute.xlu0 %3069  ;;  %v3288_v15 = vpack.c.bf16 %v3280_v10, %v3276_v19  ;;  %v3072_v16 = vpop.permute.xlu1 %3071 }
 0x9ea   : > { %5052 = vmatprep.subr.bf16.mxu0 %v3070_v12 }
 0x9eb   : > { %5053 = vmatpush3.bf16.msra.mxu0 %v3070_v12 }
 0x9ec   : > { %5054 = vmatprep.subr.bf16.mxu0 %v3072_v16 }
 0x9ef   : > { %5055 = vmatpush3.bf16.msra.mxu0 %v3072_v16 }
 0x9f0   : > { %3329 = vmatprep.subr.bf16.mxu0 %v3288_v15 }
 0x9f2   : > { %5057 = vmatmul.mubr.msk.bf16.vlgmr.msra.gmra.mrb[32].mxu0 %vm6911_vm0, %v5236_v17 }
 0x9f3   : > { %3330 = vmatpush1.bf16.msra.mxu0 %v3287_v9  ;;  %3361 = vmatprep.mubr.bf16.mxu0 %v5311_v13 }
 0x9f4   : > { %3478 = vmatprep.subr.bf16.mxu0 %v5239_v18 }
 0x9fa   : > { %4759 = vmatmul.mubr.msk.bf16.vlgmr.msra.gmra.mrb[36].mxu0 %vm6842_vm9, %v5240_v21  ;;  %v3301_v23 = vpop.permute.xlu1 %3300  ;;  %v3296_v27 = vpop.permute.xlu0 %3295 }
 0x9fb   : > { %3479 = vmatpush1.bf16.msra.mxu0 %v5237_v24  ;;  %3371 = vmatprep.mubr.bf16.mxu0 %v5311_v13 }
 0x9fc   : > { %3480 = vmatprep.subr.bf16.mxu0 %v5243_v25 }
 0x9fe   : > { %v3311_v51 = vpop.permute.xlu1 %3310  ;;  %v3306_v54 = vpop.permute.xlu0 %3305 }
 0x9ff   : > { %3481 = vmatpush1.bf16.msra.mxu0 %v5241_v26 }
 0xa00   : > { %3482 = vmatprep.subr.bf16.mxu0 %v5246_v28 }
 0xa02   : > { %4760 = vmatmul.mubr.msk.bf16.gmra.mrb[40].mxu0 %vm6842_vm9, %v5256_v29  ;;  %v6222_v0 = vpop.permute.xlu1 %3618  ;;  %v6224_v2 = vpop.permute.xlu0 %3616 }
 0xa03   : > { %3483 = vmatpush1.bf16.msra.mxu0 %v5244_v30  ;;  %3510 = vmatprep.mubr.bf16.mxu0 %v5311_v13  ;;  %v6256_v28 = vsel %vm6834_vm14, %v6224_v2, %v6222_v0  ;;  %vm3623_vm12 = vcmp.ne.s16.totalorder %v6222_v0, 0 }
 0xa04   : > { %3484 = vmatprep.subr.bf16.mxu0 %v5249_v53  ;;  %vm3622_vm6 = vcmp.ne.s16.totalorder %v6256_v28, 0 }
 0xa06   : > { %v6228_v6 = vpop.permute.xlu0 %3654 }
 0xa07   : > { %3485 = vmatpush1.bf16.msra.mxu0 %v5247_v33 }
 0xa08   : > { %3486 = vmatprep.subr.bf16.mxu0 %v5252_v36 }
 0xa0a   : > { %v6232_v19 = vpop.permute.xlu0 %3693 }
 0xa0b   : > { %3487 = vmatpush1.bf16.msra.mxu0 %v5250_v3 }
 0xa0c   : > { %3488 = vmatprep.subr.bf16.mxu0 %v5255_v37 }
 0xa0e   : > { %v6236_v9 = vpop.permute.xlu0 %3749 }
 0xa0f   : > { %3489 = vmatpush1.bf16.msra.mxu0 %v5253_v46 }
 0xa10   : > { %3490 = vmatprep.subr.bf16.mxu0 %v5259_v48 }
 0xa12   : > { %v6240_v12 = vpop.permute.xlu0 %3790 }
 0xa13   : > { %3491 = vmatpush1.bf16.msra.mxu0 %v5257_v49  ;;  %vm3796_vm14 = vcmp.ne.s16.totalorder %v6240_v12, 0 }
 0xa14   : > { %3492 = vmatprep.subr.bf16.mxu0 %v5262_v50 }
 0xa16   : > { %v6244_v16 = vpop.permute.xlu0 %3823 }
 0xa17   : > { %3493 = vmatpush1.bf16.msra.mxu0 %v5260_v20 }
 0xa1a   : > { %3511 = vmatmul.mubr.bf16.vlgmr.msra.gmra.mrb[36].mxu0 %v5980_v60  ;;  %v6226_v60 = vpop.permute.xlu1 %3656  ;;  %v6248_v21 = vpop.permute.xlu0 %3580 }
 0xa1b   : > { %3520 = vmatprep.mubr.bf16.mxu0 %v5311_v13  ;;  %v6271_v48 = vsel %vm3658_vm10, %v6228_v6, %v6226_v60  ;;  %vm3662_vm8 = vcmp.ne.s16.totalorder %v6226_v60, 0  ;;  %vm3755_vm10 = vcmp.ne.s16.totalorder %v6236_v9, 0 }
 0xa1c   : > { %vm3661_vm15 = vcmp.ne.s16.totalorder %v6271_v48, 0 }
 0xa22   : > { %3521 = vmatmul.mubr.bf16.gmra.mrb[40].mxu0 %v5978_v34  ;;  %v6230_v34 = vpop.permute.xlu1 %3695 }
 0xa23   : > { %vm3700_vm0 = vcmp.ne.s16.totalorder %v6230_v34, 0 }
 0xa26   : > { %v6234_v7 = vpop.permute.xlu1 %3751 }
 0xa27   : > { %vm3757_vm4 = vcmp.ne.s16.totalorder %v6234_v7, 0 }
 0xa2a   : > { %v6238_v10 = vpop.permute.xlu1 %3792 }
 0xa2e   : > { %v6242_v15 = vpop.permute.xlu1 %3825 }
 0xa32   : > { %v6246_v17 = vpop.permute.xlu1 %3582 }
 0xa33   : > { %v3584_v25 = vsel %vm6833_vm13, %v6248_v21, %v6246_v17 }
 0xa34   : > { %vm3586_vm11 = vcmp.ne.s16.totalorder %v3584_v25, 0 }
 0xa36   : > { %v6260_v37 = vpop.permute.xlu1 %3856 }
 0xa37   : > { %vm3862_vm5 = vcmp.ne.s16.totalorder %v6260_v37, 0 }
 0xac5   : > { %v6214_v56 = vpop.f32.mrb[32].mxu0 }
 0xac6   : > { %v6216_v57 = vpop.f32.mrb[33].mxu0 }
 0xac7   : > { %v6218_v59 = vpop.f32.mrb[34].mxu0 }
 0xac8   : > { %v6220_v31 = vpop.f32.mrb[35].mxu0 }
 0xaed   : > { %v3512_v18 = vpop.f32.mrb[36].mxu0 }
 0xaee   : > { %v3514_v24 = vpop.f32.mrb[37].mxu0  ;;  %v5068_v29 = vadd.f32 %v3512_v18, %v3296_v27 }
 0xaef   : > { %v3516_v26 = vpop.f32.mrb[38].mxu0  ;;  %v5069_v33 = vadd.f32 %v3514_v24, %v3296_v27 }
 0xaf0   : > { %v5070_v30 = vadd.f32 %v3516_v26, %v3301_v23  ;;  %v3518_v53 = vpop.f32.mrb[39].mxu0 }
 0xaf1   : > { %v5071_v36 = vadd.f32 %v3518_v53, %v3301_v23  ;;  %v6286_v23 = vsel %vm6838_vm1, %v6232_v19, %v6230_v34 }
 0xaf2   : > { %v6258_v3 = vpack.c.bf16 %v5070_v30, %v5068_v29  ;;  %vm3699_vm3 = vcmp.ne.s16.totalorder %v6286_v23, 0  ;;  %v3859_v23 = vpop.permute.xlu0 %3858 }
 0xaf3   : > { %v6263_v46 = vpack.c.bf16 %v5071_v36, %v5069_v33  ;;  %v3720_v36 = vrot.slane %v3716_v11, %v5556_v22 }
 0xaf4   : > { %v3625_v49 = vsel %vm3622_vm6, %v6258_v3, 0  ;;  %v3589_v50 = vsel %vm3586_vm11, %v6258_v3, 0  ;;  %v3664_v29 = vsel %vm3661_vm15, %v6258_v3, 0  ;;  %v3865_v30 = vsel %vm3862_vm5, %v6258_v3, 0 }
 0xaf5   : > { %v3522_v20 = vpop.f32.mrb[40].mxu0  ;;  %3879 = vrot.lane.b32.xlu0 %v3625_v49, %s6847_s10  ;;  %4112 = vrot.lane.b32.xlu1 %v3589_v50, %s6827_s18  ;;  %s6912_s18 = smov 126   ;;  %vm6311_vm2 = vcmp.ne.s16.totalorder %v3720_v36, 0  ;;  %v3799_v36 = vsel %vm3796_vm14, %v6258_v3, 0 }
 0xaf6   : > { %v3524_v63 = vpop.f32.mrb[41].mxu0  ;;  %v5072_v18 = vadd.f32 %v3522_v20, %v3306_v54  ;;  %v3724_v20 = vrot.slane %v3716_v11, %v6074_v14  ;;  %v3758_v11 = vsel %vm3755_vm10, %v6258_v3, 0 }
 0xaf7   : > { %v3526_v27 = vpop.f32.mrb[42].mxu0  ;;  %v5073_v53 = vadd.f32 %v3524_v63, %v3306_v54  ;;  %v3702_v54 = vsel %vm3699_vm3, %v6258_v3, 0 }
 0xaf8   : > { %v5074_v24 = vadd.f32 %v3526_v27, %v3311_v51  ;;  %v3528_v26 = vpop.f32.mrb[43].mxu0  ;;  %v3727_v27 = vsel %vm6311_vm2, %v6258_v3, 0  ;;  %vm6334_vm7 = vcmp.ne.s16.totalorder %v3724_v20, 0 }
 0xaf9   : > { %v5075_v33 = vadd.f32 %v3528_v26, %v3311_v51  ;;  %3901 = vrot.lane.b32.xlu0 %v3664_v29, %s6912_s18  ;;  %4025 = vrot.lane.b32.xlu1 %v3865_v30, %s6831_s11  ;;  %v3626_v51 = vsel %vm3623_vm12, %v6263_v46, 0  ;;  %v3703_v26 = vsel %vm3700_vm0, %v6263_v46, 0  ;;  %s6917_s11 = smov 110   ;;  %v3760_v30 = vsel %vm3757_vm4, %v6258_v3, 0 }
 0xafa   : > { %v6297_v49 = vpack.c.bf16 %v5074_v24, %v5072_v18  ;;  %v3665_v18 = vsel %vm3662_vm8, %v6263_v46, 0 }
 0xafb   : > { %v6301_v50 = vpack.c.bf16 %v5075_v33, %v5073_v53  ;;  %v3728_v53 = vsel %vm6334_vm7, %v6263_v46, 0 }
 0xafc   : > { %v6318_v63 = vsel %vm3586_vm11, %v6297_v49, 0  ;;  %v6330_v24 = vsel %vm3862_vm5, %v6297_v49, 0  ;;  %vm6837_vm11 = vcmask 7168   ;;  %vm3794_vm5 = vcmask 121856  }
 0xafd   : > { %3923 = vrot.lane.b32.xlu0 %v3702_v54, %s6835_s1  ;;  %3881 = vrot.lane.b32.xlu1 %v3626_v51, %s6847_s10  ;;  %v3730_v25 = vsel %vm6334_vm7, %v6301_v50, 0  ;;  %v6355_v29 = vsel %vm6837_vm11, %v6236_v9, %v6234_v7  ;;  %v6369_v33 = vsel %vm3794_vm5, %v6240_v12, %v6238_v10  ;;  %vm3798_vm11 = vcmp.ne.s16.totalorder %v6238_v10, 0 }
 0xafe   : > { %vm6839_vm13 = vcmp.ne.s16.totalorder %v6355_v29, 0  ;;  %vm6846_vm1 = vcmp.ne.s16.totalorder %v6369_v33, 0  ;;  %v6384_v51 = vsel %vm6842_vm9, %v6244_v16, %v6242_v15  ;;  %v3801_v20 = vsel %vm3798_vm11, %v6258_v3, 0 }
 0xaff   : > { %v3759_v54 = vsel %vm6839_vm13, %v6263_v46, 0  ;;  %vm3829_vm5 = vcmp.ne.s16.totalorder %v6244_v16, 0  ;;  %vm6843_vm13 = vcmp.ne.s16.totalorder %v6384_v51, 0  ;;  %vm3831_vm9 = vcmp.ne.s16.totalorder %v6242_v15, 0 }
 0xb00   : > { %v3804_v7 = vsel %vm3798_vm11, %v6297_v49, 0  ;;  %v3835_v12 = vsel %vm3829_vm5, %v6297_v49, 0  ;;  %v3837_v10 = vsel %vm3831_vm9, %v6297_v49, 0  ;;  %v3668_v16 = vsel %vm3662_vm8, %v6301_v50, 0 }
 0xb01   : > { %3941 = vrot.lane.b32.xlu0 %v3727_v27, %s6840_s0  ;;  %3903 = vrot.lane.b32.xlu1 %v3665_v18, %s6912_s18  ;;  %v3800_v27 = vsel %vm6846_vm1, %v6263_v46, 0  ;;  %v3832_v18 = vsel %vm3829_vm5, %v6258_v3, 0  ;;  %vm3860_vm1 = vcmask 138240   ;;  %v3706_v0 = vsel %vm3700_vm0, %v6301_v50, 0 }
 0xb02   : > { %v3861_v9 = vsel %vm3860_vm1, %v6260_v37, %v3859_v23  ;;  %vm6929_vm8 = vcmask 1039360   ;;  %vm1445_vm7 = vcmask 1031168   ;;  %vm6931_vm11 = vcmask 916480  }
 0xb03   : > { %vm6930_vm0 = vmmov %vm6929_vm8 }
 0xb04   : > { %vm6933_vm5 = vmmov %vm6930_vm0 }
 0xb05   : > { %3957 = vrot.lane.b32.xlu0 %v3758_v11, %s6917_s11  ;;  %3925 = vrot.lane.b32.xlu1 %v3703_v26, %s6835_s1  ;;  %s6852_s1 = smov 96   ;;  %v3833_v11 = vsel %vm6843_vm13, %v6263_v46, 0  ;;  %v3834_v26 = vsel %vm3831_vm9, %v6258_v3, 0  ;;  %vm3621_vm13 = vcmp.ne.s16.totalorder %v6224_v2, 0  ;;  %vm3864_vm9 = vcmp.ne.s16.totalorder %v3859_v23, 0 }
 0xb06   : > { %v3627_v15 = vsel %vm3621_vm13, %v6301_v50, 0  ;;  %v3867_v60 = vsel %vm3864_vm9, %v6258_v3, 0 }
 0xb09   : > { %3961 = vrot.lane.b32.xlu0 %v3760_v30, %s6917_s11  ;;  %3943 = vrot.lane.b32.xlu1 %v3728_v53, %s6840_s0  ;;  %s6844_s0 = smov 95   ;;  %v3628_v30 = vsel %vm3622_vm6, %v6297_v49, 0  ;;  %v3624_v53 = vsel %vm3621_vm13, %v6263_v46, 0  ;;  %vm3660_vm6 = vcmp.ne.s16.totalorder %v6228_v6, 0  ;;  %vm6925_vm13 = vcmp.ne.s16.totalorder %v6369_v33, 0 }
 0xb0a   : > { %v3663_v28 = vsel %vm3660_vm6, %v6263_v46, 0  ;;  %v3666_v2 = vsel %vm3660_vm6, %v6301_v50, 0  ;;  %v3803_v34 = vsel %vm6925_vm13, %v6301_v50, 0  ;;  %vm2972_vm6 = vcmask 900096  }
 0xb0b   : > { %vm3991_vm13 = vcmask 785408  }
 0xb0d   : > { %3979 = vrot.lane.b32.xlu0 %v3799_v36, %s6852_s1  ;;  %3959 = vrot.lane.b32.xlu1 %v3759_v54, %s6917_s11  ;;  %v3667_v36 = vsel %vm3661_vm15, %v6297_v49, 0  ;;  %v3705_v54 = vsel %vm3699_vm3, %v6297_v49, 0  ;;  %vm3698_vm15 = vcmp.ne.s16.totalorder %v6232_v19, 0  ;;  %vm6849_vm3 = vcmp.ne.s16.totalorder %v6246_v17, 0 }
 0xb0e   : > { %v3701_v48 = vsel %vm3698_vm15, %v6263_v46, 0  ;;  %v3704_v6 = vsel %vm3698_vm15, %v6301_v50, 0  ;;  %vm6934_vm15 = vmmov %vm6930_vm0 }
 0xb11   : > { %3983 = vrot.lane.b32.xlu0 %v3801_v20, %s6852_s1  ;;  %3981 = vrot.lane.b32.xlu1 %v3800_v27, %s6852_s1  ;;  %v3761_v20 = vsel %vm3755_vm10, %v6297_v49, 0  ;;  %v3590_v27 = vsel %vm6849_vm3, %v6263_v46, 0  ;;  %vm3585_vm10 = vcmp.ne.s16.totalorder %v6248_v21, 0  ;;  %vm3863_vm3 = vcmp.ne.s16.totalorder %v3861_v9, 0 }
 0xb12   : > { %v3866_v37 = vsel %vm3863_vm3, %v6263_v46, 0  ;;  %v3591_v19 = vsel %vm3585_vm10, %v6301_v50, 0 }
 0xb15   : > { %4002 = vrot.lane.b32.xlu0 %v3832_v18, %s6844_s0  ;;  %4004 = vrot.lane.b32.xlu1 %v3833_v11, %s6844_s0  ;;  %v3763_v18 = vsel %vm3757_vm4, %v6297_v49, 0  ;;  %v3588_v11 = vsel %vm3585_vm10, %v6263_v46, 0  ;;  %v3629_v46 = vsel %vm3623_vm12, %v6301_v50, 0  ;;  %vm6927_vm12 = vcmp.ne.s16.totalorder %v6384_v51, 0  ;;  %vm6932_vm4 = vmmov %vm6931_vm11 }
 0xb16   : > { %v3836_v3 = vsel %vm6927_vm12, %v6301_v50, 0  ;;  %vm6936_vm10 = vmmov %vm6932_vm4  ;;  %vm4014_vm12 = vcmask 777216  }
 0xb19   : > { %4006 = vrot.lane.b32.xlu0 %v3834_v26, %s6844_s0  ;;  %3885 = vrot.lane.b32.xlu1 %v3628_v30, %s6847_s10  ;;  %s6918_s0 = smov 112   ;;  %v3802_v26 = vsel %vm3796_vm14, %v6297_v49, 0  ;;  %v3729_v30 = vsel %vm6311_vm2, %v6297_v49, 0  ;;  %vm6924_vm14 = vcmp.ne.s16.totalorder %v6355_v29, 0  ;;  %vm6928_vm2 = vcmp.ne.s16.totalorder %v6246_v17, 0 }
 0xb1a   : > { %v3762_v22 = vsel %vm6924_vm14, %v6301_v50, 0  ;;  %v3870_v29 = vsel %vm3864_vm9, %v6297_v49, 0  ;;  %vm6937_vm9 = vmmov %vm6932_vm4 }
 0xb1d   : > { %3877 = vrot.lane.b32.xlu0 %v3624_v53, %s6847_s10  ;;  %3907 = vrot.lane.b32.xlu1 %v3667_v36, %s6912_s18  ;;  %s6919_s10 = smov 17  }
 0xb21   : > { %3899 = vrot.lane.b32.xlu0 %v3663_v28, %s6912_s18  ;;  %3929 = vrot.lane.b32.xlu1 %v3705_v54, %s6918_s0 }
 0xb25   : > { %3921 = vrot.lane.b32.xlu0 %v3701_v48, %s6918_s0  ;;  %3963 = vrot.lane.b32.xlu1 %v3761_v20, %s6917_s11 }
 0xb29   : > { %4114 = vrot.lane.b32.xlu0 %v3590_v27, %s6919_s10  ;;  %3967 = vrot.lane.b32.xlu1 %v3763_v18, %s6917_s11 }
 0xb2d   : > { %4110 = vrot.lane.b32.xlu0 %v3588_v11, %s6919_s10  ;;  %3985 = vrot.lane.b32.xlu1 %v3802_v26, %s6852_s1 }
 0xb31   : > { %3989 = vrot.lane.b32.xlu1 %v3804_v7, %s6852_s1  ;;  %4027 = vrot.lane.b32.xlu0 %v3866_v37, %s6920_s2  ;;  %s6923_s1 = smov 127  }
 0xb35   : > { %4008 = vrot.lane.b32.xlu1 %v3835_v12, %s6921_s5  ;;  %3945 = vrot.lane.b32.xlu0 %v3729_v30, %s6922_s6 }
 0xb39   : > { %4012 = vrot.lane.b32.xlu1 %v3837_v10, %s6921_s5  ;;  %3887 = vrot.lane.b32.xlu0 %v3629_v46, %s6923_s1 }
 0xb3d   : > { %4118 = vrot.lane.b32.xlu1 %v6318_v63, %s6919_s10  ;;  %3909 = vrot.lane.b32.xlu0 %v3668_v16, %s6912_s18  ;;  %v3593_v63 = vsel %vm6928_vm2, %v6301_v50, 0  ;;  %vm4037_vm2 = vcmask 769024  }
 0xb41   : > { %3883 = vrot.lane.b32.xlu1 %v3627_v15, %s6923_s1  ;;  %3931 = vrot.lane.b32.xlu0 %v3706_v0, %s6918_s0  ;;  %s6926_s1 = smov 96  }
 0xb45   : > { %4029 = vrot.lane.b32.xlu1 %v3867_v60, %s6920_s2  ;;  %3965 = vrot.lane.b32.xlu0 %v3762_v22, %s6917_s11  ;;  %s6943_s11 = sld [smem:[#allocation16_spill]] }
 0xb49   : > { %3905 = vrot.lane.b32.xlu1 %v3666_v2, %s6912_s18  ;;  %3987 = vrot.lane.b32.xlu0 %v3803_v34, %s6926_s1  ;;  %s6753_s18 = sshll.u32 %s6960_s23, 5 }
 0xb4d   : > { %4031 = vrot.lane.b32.xlu1 %v6330_v24, %s6920_s2  ;;  %4010 = vrot.lane.b32.xlu0 %v3836_v3, %s6921_s5  ;;  %v3869_v24 = vsel %vm3863_vm3, %v6301_v50, 0  ;;  %vm6935_vm3 = vcmask 908288   ;;  %s6939_s5 = sld [smem:[#allocation15_spill]] }
 0xb4e   : > { %vm6938_vm14 = vmmov %vm6935_vm3 }
 0xb51   : > { %3927 = vrot.lane.b32.xlu1 %v3704_v6, %s6918_s0  ;;  %4120 = vrot.lane.b32.xlu0 %v3593_v63, %s6919_s10  ;;  %s6941_s0 = sld [smem:[#allocation12_spill]] }
 0xb55   : > { %4035 = vrot.lane.b32.xlu1 %v3870_v29, %s6920_s2  ;;  %4033 = vrot.lane.b32.xlu0 %v3869_v24, %s6920_s2  ;;  %s6942_s2 = sld [smem:[#allocation14_spill]] }
 0xb59   : > { %3947 = vrot.lane.b32.xlu1 %v3730_v25, %s6922_s6  ;;  %s6940_s6 = sld [smem:[#allocation11_spill]] }
 0xb5d   : > { %4116 = vrot.lane.b32.xlu1 %v3591_v19, %s6919_s10 }
 0xb67   : > { %v4113_v17 = vpop.permute.xlu1 %4112  ;;  %v3880_v49 = vpop.permute.xlu0 %3879 }
 0xb6b   : > { %v6541_v33 = vpop.permute.xlu1 %4025  ;;  %v3902_v51 = vpop.permute.xlu0 %3901 }
 0xb6f   : > { %v3882_v53 = vpop.permute.xlu1 %3881  ;;  %v3924_v36 = vpop.permute.xlu0 %3923 }
 0xb70   : > { %4126 = vrot.lane.b32.xlu1 %v3882_v53, %s6919_s10  ;;  %v3890_v21 = vsel %vm6929_vm8, %v3880_v49, %v3882_v53  ;;  %vm6945_vm8 = vcmask 261120  }
 0xb73   : > { %v3904_v28 = vpop.permute.xlu1 %3903  ;;  %v6544_v14 = vpop.permute.xlu0 %3941 }
 0xb74   : > { %4138 = vrot.lane.b32.xlu0 %v3904_v28, %s6919_s10  ;;  %v3912_v20 = vsel %vm1445_vm7, %v3902_v51, %v3904_v28 }
 0xb77   : > { %v3926_v25 = vpop.permute.xlu1 %3925  ;;  %v6547_v54 = vpop.permute.xlu0 %3957 }
 0xb78   : > { %4150 = vrot.lane.b32.xlu1 %v3926_v25, %s6919_s10  ;;  %4124 = vrot.lane.b32.xlu0 %v3890_v21, %s6919_s10  ;;  %v3934_v22 = vsel %vm6931_vm11, %v3924_v36, %v3926_v25 }
 0xb7b   : > { %v3944_v50 = vpop.permute.xlu1 %3943  ;;  %v3962_v48 = vpop.permute.xlu0 %3961 }
 0xb7c   : > { %4136 = vrot.lane.b32.xlu1 %v3912_v20, %s6919_s10 }
 0xb7f   : > { %v6554_v23 = vpop.permute.xlu1 %3959  ;;  %v6556_v27 = vpop.permute.xlu0 %3979 }
 0xb83   : > { %v6558_v18 = vpop.permute.xlu1 %3981  ;;  %v6560_v9 = vpop.permute.xlu0 %3983 }
 0xb87   : > { %v6562_v11 = vpop.permute.xlu1 %4004  ;;  %v6564_v26 = vpop.permute.xlu0 %4002 }
 0xb8b   : > { %v3886_v7 = vpop.permute.xlu1 %3885  ;;  %v6566_v37 = vpop.permute.xlu0 %4006 }
 0xb8f   : > { %v3908_v12 = vpop.permute.xlu1 %3907  ;;  %v3878_v30 = vpop.permute.xlu0 %3877 }
 0xb90   : > { %v3889_v10 = vsel %vm6930_vm0, %v3878_v30, %v3880_v49  ;;  %vm6947_vm0 = vcmask 7168  }
 0xb91   : > { %4122 = vrot.lane.b32.xlu0 %v3889_v10, %s6919_s10  ;;  %vm6948_vm11 = vmmov %vm6947_vm0 }
 0xb93   : > { %v6570_v46 = vpop.permute.xlu1 %3929  ;;  %v3900_v16 = vpop.permute.xlu0 %3899 }
 0xb94   : > { %v3911_v15 = vsel %vm1445_vm7, %v3900_v16, %v3902_v51 }
 0xb95   : > { %4134 = vrot.lane.b32.xlu0 %v3911_v15, %s6919_s10 }
 0xb97   : > { %v6574_v0 = vpop.permute.xlu1 %3963  ;;  %v3922_v60 = vpop.permute.xlu0 %3921 }
 0xb98   : > { %v3933_v3 = vsel %vm6932_vm4, %v3922_v60, %v3924_v36  ;;  %v3970_v60 = vsel %vm2972_vm6, %v6554_v23, %v3962_v48  ;;  %vm6949_vm4 = vmmov %vm6947_vm0 }
 0xb99   : > { %4148 = vrot.lane.b32.xlu0 %v3934_v22, %s6919_s10 }
 0xb9b   : > { %v6578_v2 = vpop.permute.xlu1 %3967  ;;  %v4115_v34 = vpop.permute.xlu0 %4114 }
 0xb9c   : > { %v4219_v6 = vsel %vm3860_vm1, %v4113_v17, %v4115_v34 }
 0xb9d   : > { %4146 = vrot.lane.b32.xlu0 %v3933_v3, %s6919_s10  ;;  %4296 = vmatprep.subr.bf16.mxu1 %v4219_v6  ;;  %v3949_v3 = vsel %vm6935_vm3, %v6544_v14, %v3944_v50 }
 0xb9f   : > { %v6583_v63 = vpop.permute.xlu1 %3985  ;;  %v4111_v29 = vpop.permute.xlu0 %4110 }
 0xba0   : > { %v4218_v24 = vsel %vm3860_vm1, %v4111_v29, %v4113_v17 }
 0xba1   : > { %4297 = vmatpush1.bf16.msra.mxu1 %v4218_v24 }
 0xba3   : > { %v6586_v19 = vpop.permute.xlu1 %3989  ;;  %v6588_v49 = vpop.permute.xlu0 %4027 }
 0xba7   : > { %v6590_v51 = vpop.permute.xlu1 %4008  ;;  %v3946_v53 = vpop.permute.xlu0 %3945 }
 0xbab   : > { %v6592_v28 = vpop.permute.xlu1 %4012  ;;  %v3888_v36 = vpop.permute.xlu0 %3887 }
 0xbac   : > { %v3892_v25 = vsel %vm6933_vm5, %v3886_v7, %v3888_v36  ;;  %4132 = vrot.lane.b32.xlu0 %v3888_v36, %s6919_s10  ;;  %vm6950_vm5 = vmmov %vm6947_vm0 }
 0xbad   : > { %4130 = vrot.lane.b32.xlu1 %v3892_v25, %s6919_s10 }
 0xbaf   : > { %v4119_v21 = vpop.permute.xlu1 %4118  ;;  %v3910_v20 = vpop.permute.xlu0 %3909 }
 0xbb0   : > { %4144 = vrot.lane.b32.xlu0 %v3910_v20, %s6919_s10  ;;  %v3914_v29 = vsel %vm1445_vm7, %v3908_v12, %v3910_v20 }
 0xbb1   : > { %4162 = vrot.lane.b32.xlu1 %v3944_v50, %s6919_s10 }
 0xbb3   : > { %v3884_v17 = vpop.permute.xlu1 %3883  ;;  %v3932_v30 = vpop.permute.xlu0 %3931 }
 0xbb4   : > { %4156 = vrot.lane.b32.xlu0 %v3932_v30, %s6919_s10  ;;  %v3891_v10 = vsel %vm6934_vm15, %v3884_v17, %v3886_v7  ;;  %v3936_v17 = vsel %vm6936_vm10, %v6570_v46, %v3932_v30 }
 0xbb5   : > { %4164 = vrot.lane.b32.xlu1 %v3946_v53, %s6919_s10 }
 0xbb7   : > { %v6602_v16 = vpop.permute.xlu1 %4029  ;;  %v3966_v15 = vpop.permute.xlu0 %3965 }
 0xbb8   : > { %4128 = vrot.lane.b32.xlu0 %v3891_v10, %s6919_s10  ;;  %v3969_v10 = vsel %vm2972_vm6, %v6547_v54, %v6554_v23  ;;  %v3992_v23 = vsel %vm3991_vm13, %v6556_v27, %v6558_v18 }
 0xbb9   : > { %4174 = vrot.lane.b32.xlu1 %v3970_v60, %s6919_s10 }
 0xbbb   : > { %v3906_v22 = vpop.permute.xlu1 %3905  ;;  %v3988_v34 = vpop.permute.xlu0 %3987 }
 0xbbc   : > { %4160 = vrot.lane.b32.xlu0 %v3949_v3, %s6919_s10  ;;  %v3913_v36 = vsel %vm1445_vm7, %v3906_v22, %v3908_v12  ;;  %v1493_v3 = vld [vmem:[%s6940_s6 + $0x18] sm:$0xff]  ;;  %vm6946_vm7 = vmmov %vm6945_vm8 }
 0xbbd   : > { %4176 = vrot.lane.b32.xlu1 %v6574_v0, %s6919_s10 }
 0xbbf   : > { %v6613_v7 = vpop.permute.xlu1 %4031  ;;  %v4011_v6 = vpop.permute.xlu0 %4010 }
 0xbc0   : > { %4158 = vrot.lane.b32.xlu0 %v6544_v14, %s6919_s10  ;;  %v4017_v30 = vsel %vm4014_vm12, %v6590_v51, %v4011_v6 }
 0xbc1   : > { %4142 = vrot.lane.b32.xlu1 %v3914_v29, %s6919_s10  ;;  %v2248_v29 = vld [vmem:[%s6941_s0 + $0x8] sm:$0xff] }
 0xbc3   : > { %v3928_v48 = vpop.permute.xlu1 %3927  ;;  %v4121_v24 = vpop.permute.xlu0 %4120 }
 0xbc4   : > { %v4221_v50 = vsel %vm3860_vm1, %v4119_v21, %v4121_v24  ;;  %v3935_v14 = vsel %vm6937_vm9, %v3928_v48, %v6570_v46  ;;  %v3993_v46 = vsel %vm3991_vm13, %v6558_v18, %v6560_v9  ;;  %v3994_v18 = vsel %vm3991_vm13, %v6583_v63, %v3988_v34  ;;  %v2247_v48 = vld [vmem:[%s6941_s0] sm:$0xff]  ;;  %v2250_v24 = vld [vmem:[%s6941_s0 + $0x18] sm:$0xff] }
 0xbc5   : > { %4140 = vrot.lane.b32.xlu1 %v3913_v36, %s6919_s10  ;;  %4298 = vmatprep.subr.bf16.mxu1 %v4221_v50  ;;  %v2249_v36 = vld [vmem:[%s6941_s0 + $0x10] sm:$0xff]  ;;  %v2982_v50 = vld [vmem:[%s6942_s2 + $0x8] sm:$0xff]  ;;  %s1043_s0 = scalar_lea.vmem %s5490_s3, %s6753_s18  ;;  %vm6955_vm9 = vcmask 523264  }
 0xbc7   : > { %v4036_v25 = vpop.permute.xlu1 %4035  ;;  %v4034_v9 = vpop.permute.xlu0 %4033 }
 0xbc9   : > { %4154 = vrot.lane.b32.xlu1 %v3936_v17, %s6919_s10 }
 0xbcb   : > { %v3948_v20 = vpop.permute.xlu1 %3947 }
 0xbcc   : > { %4168 = vrot.lane.b32.xlu0 %v3948_v20, %s6919_s10  ;;  %v3950_v60 = vsel %vm6938_vm14, %v3946_v53, %v3948_v20  ;;  %v3971_v53 = vsel %vm2972_vm6, %v6574_v0, %v3966_v15  ;;  %v4015_v0 = vsel %vm4014_vm12, %v6564_v26, %v6562_v11  ;;  %v2984_v20 = vld [vmem:[%s6942_s2 + $0x18] sm:$0xff]  ;;  %vm6956_vm14 = vmmov %vm6955_vm9 }
 0xbcd   : > { %4152 = vrot.lane.b32.xlu1 %v3935_v14, %s6919_s10  ;;  %v2983_v14 = vld [vmem:[%s6942_s2 + $0x10] sm:$0xff] }
 0xbcf   : > { %v4117_v12 = vpop.permute.xlu1 %4116 }
 0xbd0   : > { %v4220_v22 = vsel %vm3860_vm1, %v4117_v12, %v4119_v21  ;;  %4172 = vrot.lane.b32.xlu0 %v3969_v10, %s6919_s10  ;;  %v3995_v21 = vsel %vm3991_vm13, %v3988_v34, %v6586_v19  ;;  %v4018_v19 = vsel %vm4014_vm12, %v4011_v6, %v6592_v28  ;;  %v4039_v34 = vsel %vm4037_vm2, %v6588_v49, %v6602_v16  ;;  %v1491_v28 = vld [vmem:[%s6940_s6 + $0x8] sm:$0xff]  ;;  %v1492_v6 = vld [vmem:[%s6940_s6 + $0x10] sm:$0xff]  ;;  %vm6957_vm13 = vmmov %vm6955_vm9 }
 0xbd1   : > { %4166 = vrot.lane.b32.xlu1 %v3950_v60, %s6919_s10  ;;  %4299 = vmatpush1.bf16.msra.mxu1 %v4220_v22  ;;  %v4041_v16 = vsel %vm4037_vm2, %v4034_v9, %v4036_v25  ;;  %v2981_v25 = vld [vmem:[%s6942_s2] sm:$0xff]  ;;  %v4051_v12 = vld [vmem:[%s6943_s11 + $0x8] sm:$0xff] }
 0xbd2   : > { %v4050_v22 = vld [vmem:[%s6943_s11] sm:$0xff] }
 0xbd4   : > { %4170 = vrot.lane.b32.xlu0 %v6547_v54, %s6919_s10  ;;  %v3972_v54 = vsel %vm2972_vm6, %v3966_v15, %v6578_v2  ;;  %vm6951_vm6 = vcmask 130048  }
 0xbd5   : > { %4186 = vrot.lane.b32.xlu1 %v3993_v46, %s6919_s10  ;;  %v4053_v46 = vld [vmem:[%s6943_s11 + $0x18] sm:$0xff]  ;;  %vm6952_vm15 = vmmov %vm6951_vm6 }
 0xbd6   : > { %vm6953_vm3 = vmmov %vm6951_vm6 }
 0xbd7   : > { %vm6954_vm10 = vmmov %vm6953_vm3 }
 0xbd8   : > { %4184 = vrot.lane.b32.xlu0 %v3992_v23, %s6919_s10  ;;  %v4052_v23 = vld [vmem:[%s6943_s11 + $0x10] sm:$0xff] }
 0xbd9   : > { %4178 = vrot.lane.b32.xlu1 %v3971_v53, %s6919_s10 }
 0xbdc   : > { %4182 = vrot.lane.b32.xlu0 %v6556_v27, %s6919_s10  ;;  %v4016_v27 = vsel %vm4014_vm12, %v6562_v11, %v6566_v37  ;;  %vm6958_vm12 = vmmov %vm6955_vm9 }
 0xbdd   : > { %4188 = vrot.lane.b32.xlu1 %v6583_v63, %s6919_s10  ;;  %v5265_v63 = vld [vmem:[%s6939_s5 + $0x4] ss:$12 sps:$4 sm:$0xff]  }
 0xbde   : > { %4328 = vmatprep.mubr.bf16.mxu1 %v5265_v63 }
 0xbe0   : > { %4180 = vrot.lane.b32.xlu0 %v3972_v54, %s6919_s10 }
 0xbe1   : > { %4190 = vrot.lane.b32.xlu1 %v3994_v18, %s6919_s10 }
 0xbe2   : > { %v4127_v15 = vpop.permute.xlu1 %4126 }
 0xbe4   : > { %4196 = vrot.lane.b32.xlu0 %v4015_v0, %s6919_s10 }
 0xbe5   : > { %4198 = vrot.lane.b32.xlu1 %v4016_v27, %s6919_s10 }
 0xbe6   : > { %v6667_v2 = vpop.permute.xlu0 %4138 }
 0xbe8   : > { %4192 = vrot.lane.b32.xlu0 %v3995_v21, %s6919_s10 }
 0xbe9   : > { %4202 = vrot.lane.b32.xlu1 %v4017_v30, %s6919_s10 }
 0xbea   : > { %v4125_v11 = vpop.permute.xlu0 %4124  ;;  %v4151_v60 = vpop.permute.xlu1 %4150 }
 0xbeb   : > { %v4223_v37 = vsel %vm3860_vm1, %v4125_v11, %v4127_v15 }
 0xbec   : > { %4194 = vrot.lane.b32.xlu0 %v6564_v26, %s6919_s10  ;;  %4300 = vmatprep.subr.bf16.mxu1 %v4223_v37  ;;  %v4038_v26 = vsel %vm4037_vm2, %v6541_v33, %v6588_v49  ;;  %v1490_v49 = vld [vmem:[%s6940_s6] sm:$0xff] }
 0xbed   : > { %4200 = vrot.lane.b32.xlu1 %v6590_v51, %s6919_s10  ;;  %v4040_v51 = vsel %vm4037_vm2, %v6613_v7, %v4034_v9 }
 0xbee   : > { %v4137_v54 = vpop.permute.xlu1 %4136 }
 0xbf0   : > { %4204 = vrot.lane.b32.xlu0 %v4018_v19, %s6919_s10  ;;  %v4227_v19 = vsel %vm3860_vm1, %v4137_v54, %v6667_v2 }
 0xbf1   : > { %4210 = vrot.lane.b32.xlu1 %v4039_v34, %s6919_s10 }
 0xbf4   : > { %4208 = vrot.lane.b32.xlu0 %v4038_v26, %s6919_s10 }
 0xbf5   : > { %4214 = vrot.lane.b32.xlu1 %v4040_v51, %s6919_s10 }
 0xbf8   : > { %4206 = vrot.lane.b32.xlu0 %v6541_v33, %s6919_s10 }
 0xbf9   : > { %4212 = vrot.lane.b32.xlu1 %v6613_v7, %s6919_s10 }
 0xbfc   : > { %4216 = vrot.lane.b32.xlu0 %v4041_v16, %s6919_s10  ;;  %s6944_s10 = sld [smem:[#allocation17_spill]] }
 0xbfd   : > { %1501 = vperm.xlu1 %5180, %v1491_v28  }
 0xc00   : > { %1496 = vperm.xlu0 %5179, %v1490_v49  }
 0xc01   : > { %1511 = vperm.xlu1 %5180, %v1493_v3  }
 0xc02   : > { %s1038_s1 = scalar_lea.vmem %s6944_s10, %s6753_s18  ;;  %s1048_s10 = scalar_lea.vmem %s5495_s30, %s6753_s18 }
 0xc03   : > { %v4123_v33 = vpop.permute.xlu0 %4122 }
 0xc04   : > { %v4222_v7 = vsel %vm3860_vm1, %v4123_v33, %v4125_v11  ;;  %1506 = vperm.xlu0 %5179, %v1492_v6  }
 0xc05   : > { %2258 = vperm.xlu1 %5180, %v2248_v29   ;;  %4301 = vmatpush1.bf16.msra.mxu1 %v4222_v7 }
 0xc07   : > { %v4135_v17 = vpop.permute.xlu0 %4134 }
 0xc08   : > { %2253 = vperm.xlu0 %5179, %v2247_v48   ;;  %v4226_v34 = vsel %vm3860_vm1, %v4135_v17, %v4137_v54 }
 0xc09   : > { %2268 = vperm.xlu1 %5180, %v2250_v24  }
 0xc0b   : > { %v4149_v10 = vpop.permute.xlu0 %4148 }
 0xc0c   : > { %2263 = vperm.xlu0 %5179, %v2249_v36   ;;  %v4231_v6 = vsel %vm3860_vm1, %v4149_v10, %v4151_v60 }
 0xc0d   : > { %2992 = vperm.xlu1 %5180, %v2982_v50  }
 0xc0f   : > { %v4147_v53 = vpop.permute.xlu0 %4146 }
 0xc10   : > { %2987 = vperm.xlu0 %5179, %v2981_v25   ;;  %v4230_v2 = vsel %vm3860_vm1, %v4147_v53, %v4149_v10 }
 0xc11   : > { %3002 = vperm.xlu1 %5180, %v2984_v20  }
 0xc14   : > { %2997 = vperm.xlu0 %5179, %v2983_v14  }
 0xc15   : > { %4061 = vperm.xlu1 %5180, %v4051_v12  }
 0xc18   : > { %4056 = vperm.xlu0 %5179, %v4050_v22  }
 0xc19   : > { %4071 = vperm.xlu1 %5180, %v4053_v46  }
 0xc1c   : > { %4066 = vperm.xlu0 %5179, %v4052_v23  }
 0xc1e   : > { %v4133_v18 = vpop.permute.xlu0 %4132 }
 0xc1f   : > { %v4131_v9 = vpop.permute.xlu1 %4130 }
 0xc20   : > { %v4225_v0 = vsel %vm3860_vm1, %v4131_v9, %v4133_v18 }
 0xc21   : > { %4302 = vmatprep.subr.bf16.mxu1 %v4225_v0 }
 0xc22   : > { %v4145_v27 = vpop.permute.xlu0 %4144 }
 0xc23   : > { %v4163_v63 = vpop.permute.xlu1 %4162 }
 0xc26   : > { %v4157_v21 = vpop.permute.xlu0 %4156 }
 0xc27   : > { %v4165_v30 = vpop.permute.xlu1 %4164 }
 0xc2a   : > { %v4129_v15 = vpop.permute.xlu0 %4128 }
 0xc2b   : > { %v4224_v11 = vsel %vm3860_vm1, %v4129_v15, %v4131_v9  ;;  %v4175_v37 = vpop.permute.xlu1 %4174 }
 0xc2c   : > { %4303 = vmatpush1.bf16.msra.mxu1 %v4224_v11 }
 0xc2d   : > { %4304 = vmatprep.subr.bf16.mxu1 %v4227_v19 }
 0xc2e   : > { %v4161_v28 = vpop.permute.xlu0 %4160 }
 0xc2f   : > { %v4177_v26 = vpop.permute.xlu1 %4176  ;;  %v4235_v50 = vsel %vm3860_vm1, %v4161_v28, %v4163_v63 }
 0xc30   : > { %4305 = vmatpush1.bf16.msra.mxu1 %v4226_v34 }
 0xc32   : > { %v4159_v29 = vpop.permute.xlu0 %4158 }
 0xc33   : > { %v4143_v51 = vpop.permute.xlu1 %4142  ;;  %v4234_v20 = vsel %vm3860_vm1, %v4159_v29, %v4161_v28 }
 0xc34   : > { %v4229_v16 = vsel %vm3860_vm1, %v4143_v51, %v4145_v27 }
 0xc35   : > { %4306 = vmatprep.subr.bf16.mxu1 %v4229_v16 }
 0xc37   : > { %v4141_v49 = vpop.permute.xlu1 %4140 }
 0xc38   : > { %v4228_v3 = vsel %vm3860_vm1, %v4141_v49, %v4143_v51 }
 0xc39   : > { %4307 = vmatpush1.bf16.msra.mxu1 %v4228_v3 }
 0xc3a   : > { %4308 = vmatprep.subr.bf16.mxu1 %v4231_v6 }
 0xc3b   : > { %v4155_v33 = vpop.permute.xlu1 %4154 }
 0xc3c   : > { %v4233_v7 = vsel %vm3860_vm1, %v4155_v33, %v4157_v21 }
 0xc3d   : > { %4309 = vmatpush1.bf16.msra.mxu1 %v4230_v2  ;;  %v5263_v2 = vld [vmem:[%s6939_s5] ss:$12 sps:$4 sm:$0xff]  }
 0xc3e   : > { %4310 = vmatprep.subr.bf16.mxu1 %v4233_v7  ;;  %v4169_v48 = vpop.permute.xlu0 %4168  ;;  %v5266_v7 = vld [vmem:[%s6939_s5 + $0x1c] ss:$12 sps:$4 sm:$0xff]  }
 0xc3f   : > { %v4153_v24 = vpop.permute.xlu1 %4152 }
 0xc40   : > { %v4232_v36 = vsel %vm3860_vm1, %v4153_v24, %v4155_v33 }
 0xc41   : > { %4311 = vmatpush1.bf16.msra.mxu1 %v4232_v36 }
 0xc42   : > { %4312 = vmatprep.subr.bf16.mxu1 %v4235_v50  ;;  %v4173_v25 = vpop.permute.xlu0 %4172 }
 0xc43   : > { %v4167_v17 = vpop.permute.xlu1 %4166  ;;  %v4239_v22 = vsel %vm3860_vm1, %v4173_v25, %v4175_v37 }
 0xc44   : > { %v4237_v14 = vsel %vm3860_vm1, %v4167_v17, %v4169_v48  ;;  %v4236_v60 = vsel %vm3860_vm1, %v4165_v30, %v4167_v17  ;;  %v5268_v17 = vld [vmem:[%s6939_s5 + $0x18] ss:$12 sps:$4 sm:$0xff]  }
 0xc45   : > { %4313 = vmatpush1.bf16.msra.mxu1 %v4234_v20 }
 0xc46   : > { %4314 = vmatprep.subr.bf16.mxu1 %v4237_v14  ;;  %v4171_v12 = vpop.permute.xlu0 %4170 }
 0xc47   : > { %v4187_v10 = vpop.permute.xlu1 %4186  ;;  %v4238_v53 = vsel %vm3860_vm1, %v4171_v12, %v4173_v25 }
 0xc49   : > { %4315 = vmatpush1.bf16.msra.mxu1 %v4236_v60  ;;  %v5269_v60 = vld [vmem:[%s6939_s5 + $0x8] ss:$12 sps:$4 sm:$0xff]  }
 0xc4a   : > { %4316 = vmatprep.subr.bf16.mxu1 %v4239_v22  ;;  %v4185_v46 = vpop.permute.xlu0 %4184 }
 0xc4b   : > { %v4179_v23 = vpop.permute.xlu1 %4178  ;;  %v4243_v21 = vsel %vm3860_vm1, %v4185_v46, %v4187_v10 }
 0xc4c   : > { %v4240_v63 = vsel %vm3860_vm1, %v4177_v26, %v4179_v23 }
 0xc4d   : > { %4317 = vmatpush1.bf16.msra.mxu1 %v4238_v53 }
 0xc4e   : > { %v4183_v54 = vpop.permute.xlu0 %4182 }
 0xc4f   : > { %v4189_v18 = vpop.permute.xlu1 %4188  ;;  %v4242_v11 = vsel %vm3860_vm1, %v4183_v54, %v4185_v46  ;;  %v5270_v46 = vld [vmem:[%s6939_s5 + $0x20] ss:$12 sps:$4 sm:$0xff]  }
 0xc52   : > { %v4181_v9 = vpop.permute.xlu0 %4180 }
 0xc53   : > { %v4191_v0 = vpop.permute.xlu1 %4190  ;;  %v4241_v27 = vsel %vm3860_vm1, %v4179_v23, %v4181_v9 }
 0xc54   : > { %4318 = vmatprep.subr.bf16.mxu1 %v4241_v27  ;;  %v4244_v51 = vsel %vm3860_vm1, %v4189_v18, %v4191_v0 }
 0xc55   : > { %4319 = vmatpush1.bf16.msra.mxu1 %v4240_v63 }
 0xc56   : > { %4320 = vmatprep.subr.bf16.mxu1 %v4243_v21  ;;  %v4197_v30 = vpop.permute.xlu0 %4196 }
 0xc57   : > { %v4199_v15 = vpop.permute.xlu1 %4198 }
 0xc58   : > { %v4247_v26 = vsel %vm3860_vm1, %v4197_v30, %v4199_v15 }
 0xc59   : > { %4321 = vmatpush1.bf16.msra.mxu1 %v4242_v11 }
 0xc5a   : > { %v4193_v37 = vpop.permute.xlu0 %4192 }
 0xc5b   : > { %v4203_v19 = vpop.permute.xlu1 %4202  ;;  %v4245_v34 = vsel %vm3860_vm1, %v4191_v0, %v4193_v37 }
 0xc5c   : > { %4322 = vmatprep.subr.bf16.mxu1 %v4245_v34 }
 0xc5d   : > { %4323 = vmatpush1.bf16.msra.mxu1 %v4244_v51 }
 0xc5e   : > { %4324 = vmatprep.subr.bf16.mxu1 %v4247_v26  ;;  %v4195_v28 = vpop.permute.xlu0 %4194 }
 0xc5f   : > { %v4246_v16 = vsel %vm3860_vm1, %v4195_v28, %v4197_v30  ;;  %v4201_v49 = vpop.permute.xlu1 %4200 }
 0xc60   : > { %v4248_v33 = vsel %vm3860_vm1, %v4201_v49, %v4203_v19 }
 0xc61   : > { %4325 = vmatpush1.bf16.msra.mxu1 %v4246_v16 }
 0xc62   : > { %v4205_v3 = vpop.permute.xlu0 %4204 }
 0xc63   : > { %v4211_v6 = vpop.permute.xlu1 %4210  ;;  %v4249_v29 = vsel %vm3860_vm1, %v4203_v19, %v4205_v3 }
 0xc64   : > { %4326 = vmatprep.subr.bf16.mxu1 %v4249_v29 }
 0xc65   : > { %4327 = vmatpush1.bf16.msra.mxu1 %v4248_v33 }
 0xc66   : > { %v4209_v48 = vpop.permute.xlu0 %4208 }
 0xc67   : > { %v4215_v24 = vpop.permute.xlu1 %4214  ;;  %v4251_v36 = vsel %vm3860_vm1, %v4209_v48, %v4211_v6 }
 0xc68   : > { %4329 = vmatmul.mubr.bf16.vlgmr.msra.gmra.mrb[40].mxu1 %v5263_v2  ;;  %4349 = vmatprep.subr.bf16.mxu1 %v4251_v36 }
 0xc69   : > { %4338 = vmatprep.mubr.bf16.mxu1 %v5266_v7 }
 0xc6a   : > { %v4207_v50 = vpop.permute.xlu0 %4206 }
 0xc6b   : > { %v4250_v25 = vsel %vm3860_vm1, %v4207_v50, %v4209_v48  ;;  %v4213_v20 = vpop.permute.xlu1 %4212 }
 0xc6c   : > { %4350 = vmatpush1.bf16.msra.mxu1 %v4250_v25  ;;  %v4252_v10 = vsel %vm3860_vm1, %v4213_v20, %v4215_v24 }
 0xc6e   : > { %v4217_v14 = vpop.permute.xlu0 %4216 }
 0xc6f   : > { %v4253_v12 = vsel %vm3860_vm1, %v4215_v24, %v4217_v14  ;;  %vm1720_vm1 = vcmask 31744  }
 0xc70   : > { %4339 = vmatmul.mubr.bf16.gmra.mrb[44].mxu1 %v5268_v17  ;;  %4351 = vmatprep.subr.bf16.mxu1 %v4253_v12 }
 0xc71   : > { %4352 = vmatpush1.bf16.msra.mxu1 %v4252_v10  ;;  %4381 = vmatprep.mubr.bf16.mxu1 %v5311_v13 }
 0xc78   : > { %4783 = vmatmul.mubr.msk.bf16.vlgmr.msra.gmra.mrb[40].mxu1 %vm6945_vm8, %v5269_v60 }
 0xc79   : > { %4391 = vmatprep.mubr.bf16.mxu1 %v5311_v13 }
 0xc7c   : > { %v1502_v22 = vpop.permute.xlu1 %1501 }
 0xc7d   : > { %v1660_v23 = vadd.f32 %v5792_v35, %v1502_v22 }
 0xc7f   : > { %v1709_v53 = vadd.f32 %v5773_v44, %v1660_v23  ;;  %v1497_v54 = vpop.permute.xlu0 %1496 }
 0xc80   : > { %v1657_v18 = vadd.f32 %v5790_v32, %v1497_v54  ;;  %v1512_v9 = vpop.permute.xlu1 %1511  ;;  %4784 = vmatmul.mubr.msk.bf16.gmra.mrb[44].mxu1 %vm6946_vm7, %v5270_v46 }
 0xc81   : > { %1722 = vst.msk [vmem:[%s1043_s0 + $0x8] sm:$0xff] %vm1720_vm1, %v1709_v53  ;;  %v1668_v13 = vadd.f32 %v5796_v45, %v1512_v9 }
 0xc82   : > { %1727 = vst.msk [vmem:[%s1038_s1 + $0x8] sm:$0xff] %vm6947_vm0, %v1709_v53  ;;  %v1706_v35 = vadd.f32 %v5769_v42, %v1657_v18 }
 0xc83   : > { %v1717_v0 = vadd.f32 %v5771_v43, %v1668_v13  ;;  %v1507_v27 = vpop.permute.xlu0 %1506 }
 0xc84   : > { %1721 = vst.msk [vmem:[%s1043_s0] sm:$0xff] %vm1720_vm1, %v1706_v35  ;;  %v1665_v44 = vadd.f32 %v5794_v38, %v1507_v27  ;;  %v2259_v32 = vpop.permute.xlu1 %2258 }
 0xc85   : > { %1726 = vst.msk [vmem:[%s1038_s1] sm:$0xff] %vm6948_vm11, %v1706_v35  ;;  %v2416_v63 = vadd.f32 %v5943_v1, %v2259_v32 }
 0xc86   : > { %1724 = vst.msk [vmem:[%s1043_s0 + $0x18] sm:$0xff] %vm1720_vm1, %v1717_v0  ;;  %v1714_v45 = vadd.f32 %v5767_v41, %v1665_v44 }
 0xc87   : > { %1729 = vst.msk [vmem:[%s1038_s1 + $0x18] sm:$0xff] %vm6949_vm4, %v1717_v0  ;;  %v2465_v42 = vadd.f32 %v5971_v52, %v2416_v63  ;;  %v2254_v43 = vpop.permute.xlu0 %2253 }
 0xc88   : > { %1723 = vst.msk [vmem:[%s1043_s0 + $0x10] sm:$0xff] %vm1720_vm1, %v1714_v45  ;;  %v2413_v38 = vadd.f32 %v5941_v62, %v2254_v43  ;;  %v2269_v21 = vpop.permute.xlu1 %2268  ;;  %s1053_s0 = scalar_lea.vmem %s5500_s12, %s6753_s18  ;;  %s4792_s18 = sshll.u32 %s6960_s23, 6 }
 0xc89   : > { %1728 = vst.msk [vmem:[%s1038_s1 + $0x10] sm:$0xff] %vm6950_vm5, %v1714_v45  ;;  %v2424_v30 = vadd.f32 %v5947_v8, %v2269_v21  ;;  %s1058_s1 = scalar_lea.vmem %s5505_s4, %s4792_s18 }
 0xc8a   : > { %2478 = vst.msk [vmem:[%s1048_s10 + $0x8] sm:$0xff] %vm6951_vm6, %v2465_v42  ;;  %v2462_v1 = vadd.f32 %v5967_v39, %v2413_v38 }
 0xc8b   : > { %v2473_v41 = vadd.f32 %v5969_v40, %v2424_v30  ;;  %v2264_v15 = vpop.permute.xlu0 %2263 }
 0xc8c   : > { %2477 = vst.msk [vmem:[%s1048_s10] sm:$0xff] %vm6952_vm15, %v2462_v1  ;;  %v2421_v52 = vadd.f32 %v5945_v5, %v2264_v15  ;;  %v2993_v11 = vpop.permute.xlu1 %2992 }
 0xc8d   : > { %2480 = vst.msk [vmem:[%s1048_s10 + $0x18] sm:$0xff] %vm6953_vm3, %v2473_v41  ;;  %v3150_v37 = vadd.f32 %v6180_v58, %v2993_v11 }
 0xc8e   : > { %v2470_v62 = vadd.f32 %v5965_v61, %v2421_v52 }
 0xc8f   : > { %v3199_v8 = vadd.f32 %v6220_v31, %v3150_v37  ;;  %v2988_v19 = vpop.permute.xlu0 %2987 }
 0xc90   : > { %2479 = vst.msk [vmem:[%s1048_s10 + $0x10] sm:$0xff] %vm6954_vm10, %v2470_v62  ;;  %v3147_v39 = vadd.f32 %v6178_v55, %v2988_v19  ;;  %v3003_v40 = vpop.permute.xlu1 %3002 }
 0xc91   : > { %3211 = vst.msk [vmem:[%s1053_s0 + $0x8] sm:$0xff] %vm6955_vm9, %v3199_v8  ;;  %v3158_v5 = vadd.f32 %v6184_v4, %v3003_v40 }
 0xc92   : > { %v3196_v34 = vadd.f32 %v6216_v57, %v3147_v39 }
 0xc93   : > { %v3207_v58 = vadd.f32 %v6218_v59, %v3158_v5  ;;  %v2998_v61 = vpop.permute.xlu0 %2997 }
 0xc94   : > { %3210 = vst.msk [vmem:[%s1053_s0] sm:$0xff] %vm6956_vm14, %v3196_v34  ;;  %v3155_v31 = vadd.f32 %v6182_v47, %v2998_v61  ;;  %v4062_v57 = vpop.permute.xlu1 %4061 }
 0xc95   : > { %3213 = vst.msk [vmem:[%s1053_s0 + $0x18] sm:$0xff] %vm6957_vm13, %v3207_v58 }
 0xc96   : > { %v3204_v51 = vadd.f32 %v6214_v56, %v3155_v31 }
 0xc97   : > { %v4057_v55 = vpop.permute.xlu0 %4056 }
 0xc98   : > { %3212 = vst.msk [vmem:[%s1053_s0 + $0x10] sm:$0xff] %vm6958_vm12, %v3204_v51  ;;  %v4072_v2 = vpop.permute.xlu1 %4071 }
 0xc9b   : > { %v4067_v6 = vpop.permute.xlu0 %4066 }
 0xd4b   : > { %v4383_v26 = vpop.f32.mrb[40].mxu1 }
 0xd4c   : > { %v5076_v4 = vadd.f32 %v4383_v26, %v4057_v55  ;;  %v4385_v28 = vpop.f32.mrb[41].mxu1 }
 0xd4d   : > { %v5077_v16 = vadd.f32 %v4385_v28, %v4057_v55  ;;  %v4387_v59 = vpop.f32.mrb[42].mxu1 }
 0xd4e   : > { %4402 = vst [vmem:[%s1058_s1] sm:$0xff] %v5076_v4  ;;  %v5078_v49 = vadd.f32 %v4387_v59, %v4062_v57  ;;  %v4389_v3 = vpop.f32.mrb[43].mxu1 }
 0xd4f   : > { %4403 = vst [vmem:[%s1058_s1 + $0x8] sm:$0xff] %v5077_v16  ;;  %v5079_v47 = vadd.f32 %v4389_v3, %v4062_v57 }
 0xd50   : > { %4404 = vst [vmem:[%s1058_s1 + $0x10] sm:$0xff] %v5078_v49 }
 0xd51   : > { %4405 = vst [vmem:[%s1058_s1 + $0x18] sm:$0xff] %v5079_v47 }
 0xd53   : > { %v4393_v56 = vpop.f32.mrb[44].mxu1 }
 0xd54   : > { %v5080_v29 = vadd.f32 %v4393_v56, %v4067_v6  ;;  %v4395_v33 = vpop.f32.mrb[45].mxu1 }
 0xd55   : > { %v5081_v7 = vadd.f32 %v4395_v33, %v4067_v6  ;;  %v4397_v48 = vpop.f32.mrb[46].mxu1 }
 0xd56   : > { %4406 = vst [vmem:[%s1058_s1 + $0x20] sm:$0xff] %v5080_v29  ;;  %v5082_v24 = vadd.f32 %v4397_v48, %v4072_v2  ;;  %v4399_v36 = vpop.f32.mrb[47].mxu1 }
 0xd57   : > { %4407 = vst [vmem:[%s1058_s1 + $0x28] sm:$0xff] %v5081_v7  ;;  %v5083_v50 = vadd.f32 %v4399_v36, %v4072_v2 }
 0xd58   : > { %4408 = vst [vmem:[%s1058_s1 + $0x30] sm:$0xff] %v5082_v24 }
 0xd59   : > { %4409 = vst [vmem:[%s1058_s1 + $0x38] sm:$0xff] %v5083_v50 }
 0xd5a PF: > { %s74_s22 = sadd.s32 1, %s5277_s22  }
 0xd5b   : > { %p71_p4 = scmp.ge.s32.totalorder %s74_s22, 4  }
 0xd5d   :  { %73 = sbr.rel (!%p71_p4) target bundleno = 49 (0x31), region = 246 }

</bundles_post_ra>
